<compile_context>
chip_gen: v6e
topology: v6e:2x2x1
jax: 0.10.0
libtpu: 0.0.40
codegen_flags: <defaults>
</compile_context>

<pallas_src>
from typing import NamedTuple

import jax
import jax.numpy as jnp
from jax.experimental import pallas as pl
from jax.experimental.pallas import tpu as pltpu


# ------------------------------ kernel body ---------------------------------

def _mlp_kernel(x_ref,
                w1_ref, b1_ref,
                w2_ref, b2_ref,
                w3_ref, b3_ref,
                w4_ref, b4_ref,
                w5_ref, b5_ref,
                o_ref):
    """Whole forward pass for one batch tile, fused in VMEM.

    Matmuls run on the MXU in the weight dtype (f32 or bf16) with f32
    accumulation; the bias add is f32.  tanh and the inter-layer hand-off run
    in the compute dtype (bf16 on v6e/v7x -> native bf16 VPU/EUP path and no
    cast before the next dot; f32 everywhere when compute dtype is f32).
    """
    def layer(h, w_ref, b_ref, activate):
        y = jnp.dot(h, w_ref[...], preferred_element_type=jnp.float32)
        y = y + b_ref[...]                          # bias add in f32
        if activate:
            return jnp.tanh(y.astype(w_ref.dtype))  # tanh in compute dtype
        return y                                    # last layer: keep f32

    h = x_ref[...]
    h = layer(h, w1_ref, b1_ref, True)
    h = layer(h, w2_ref, b2_ref, True)
    h = layer(h, w3_ref, b3_ref, True)
    h = layer(h, w4_ref, b4_ref, True)
    y = layer(h, w5_ref, b5_ref, False)
    o_ref[...] = y.astype(o_ref.dtype)


# --------------------------- one-time param prep ----------------------------

def _round_up(n, m):
    return ((n + m - 1) // m) * m


class PreppedParams(NamedTuple):
    flat: tuple            # (w1, b1, ..., w5, b5) device arrays, kernel-ready
    d_in: int
    d_out: int             # true (unpadded) output width
    n_pad: int             # lane-dense padded output width (multiple of 128)
    compute_dtype: object


def prep_params(params, compute_dtype=jnp.bfloat16):
    """One-time parameter prep, hoisted out of the per-call hot path.

    params: list of 5 (W_t, b) with W_t of shape (in, out), b of shape (out,).
      * last-layer W/b are zero-padded to a lane-dense multiple of 128 columns
        (exact: pad columns are all-zero),
      * weights are cast to compute_dtype (bf16 recommended on v6e/v7x;
        f32 on v5e or for bit-exact validation),
      * biases are reshaped to (1, out) and kept f32.
    """
    d_in = params[0][0].shape[0]
    d_out = params[-1][0].shape[1]
    n_pad = max(128, _round_up(d_out, 128))

    flat = []
    n_layers = len(params)
    for li, (w, b) in enumerate(params):
        if li == n_layers - 1 and n_pad != d_out:
            w = jnp.pad(w, ((0, 0), (0, n_pad - d_out)))
            b = jnp.pad(b, (0, n_pad - d_out))
        flat.append(jnp.asarray(w, compute_dtype))
        flat.append(jnp.asarray(b, jnp.float32).reshape(1, -1))
    return PreppedParams(tuple(flat), d_in, d_out, n_pad, compute_dtype)


# ------------------------------ forward pass --------------------------------

_FULL_BATCH_MAX = 2048   # (padded) batches up to this run as a single block
_BATCH_TILE = 1024       # rows per grid step for larger batches (<1 MiB/tile)

_weight_buffered_ok = None   # cache: does this jax build accept Buffered(1)?


def _weight_spec(shape, use_buffered):
    # Constant block index: fetched once, stays resident across grid steps.
    if use_buffered:
        return pl.BlockSpec(shape, lambda i: (0, 0),
                            pipeline_mode=pl.Buffered(1))
    return pl.BlockSpec(shape, lambda i: (0, 0))


def mlp_forward(x, prepped: PreppedParams, *, batch_tile=None, unpad=True,
                core_parallel=False, out_dtype=None):
    """Fused MLP forward.

    unpad=False returns the lane-padded (B, n_pad) slab so perf-critical
    callers can slice/fuse the narrowing in the consumer instead of paying a
    second HBM pass here.  out_dtype=jnp.bfloat16 halves writeback bytes
    (useful on v5e, the lowest-HBM-BW chip).  core_parallel=True uses
    pltpu.CORE_PARALLEL on the batch axis to engage both v7x TensorCores.
    """
    B, d_in = x.shape
    assert d_in == prepped.d_in, (d_in, prepped.d_in)
    out_dtype = x.dtype if out_dtype is None else out_dtype
    compute_dtype = prepped.compute_dtype
    n_pad = prepped.n_pad

    # ---- batch tiling: few, big steps (kernel is overhead/DMA-bound) ----
    B8 = _round_up(B, 8)
    if batch_tile is None:
        batch_tile = B8 if B8 <= _FULL_BATCH_MAX else _BATCH_TILE
    batch_tile = _round_up(batch_tile, 8)
    B_grid = _round_up(B8, batch_tile)
    grid = (B_grid // batch_tile,)

    x_in = x if x.dtype == compute_dtype else x.astype(compute_dtype)
    if B_grid != B:
        x_in = jnp.pad(x_in, ((0, B_grid - B), (0, 0)))   # zero rows: harmless

    # ---- advisory cost estimate for the XLA scheduler ----
    w_shapes = [prepped.flat[2 * i].shape for i in range(5)]
    flops = 2 * B_grid * sum(k * n for k, n in w_shapes)
    transcendentals = B_grid * sum(n for _, n in w_shapes[:-1])
    bytes_accessed = (x_in.size * x_in.dtype.itemsize
                      + B_grid * n_pad * jnp.dtype(out_dtype).itemsize
                      + sum(a.size * a.dtype.itemsize for a in prepped.flat))
    cost = pl.CostEstimate(flops=flops, transcendentals=transcendentals,
                           bytes_accessed=bytes_accessed)

    sem = (pltpu.CORE_PARALLEL,) if core_parallel else ("parallel",)

    def build(use_buffered):
        in_specs = [pl.BlockSpec((batch_tile, d_in), lambda i: (i, 0))]
        for a in prepped.flat:
            in_specs.append(_weight_spec(a.shape, use_buffered))
        out_spec = pl.BlockSpec((batch_tile, n_pad), lambda i: (i, 0))
        return pl.pallas_call(
            _mlp_kernel,
            out_shape=jax.ShapeDtypeStruct((B_grid, n_pad), out_dtype),
            grid_spec=pltpu.PrefetchScalarGridSpec(
                num_scalar_prefetch=0,
                grid=grid,
                in_specs=in_specs,
                out_specs=out_spec,
            ),
            compiler_params=pltpu.CompilerParams(dimension_semantics=sem),
            cost_estimate=cost,
        )

    global _weight_buffered_ok
    order = [True, False] if _weight_buffered_ok in (None, True) else [False]
    out, last_err = None, None
    for use_buffered in order:
        try:
            out = build(use_buffered)(x_in, *prepped.flat)
            _weight_buffered_ok = use_buffered
            break
        except Exception as e:   # fall back if Buffered(1) is rejected
            last_err = e
            out = None
    if out is None:
        raise last_err

    if B_grid != B:
        out = out[:B]
    if unpad and n_pad != prepped.d_out:
        # Separate XLA slice over the padded slab; perf-critical callers pass
        # unpad=False and narrow/fuse in the consumer (or jit the whole chain).
        out = out[:, :prepped.d_out]
    return out


# ------------------------- parameter construction ---------------------------

def _orthogonal(key, out_dim, in_dim, dtype=jnp.float32):
    """Deterministic orthogonal init matching torch.nn.init.orthogonal_
    semantics (shape (out, in), rows/cols orthonormal)."""
    n, m = out_dim, in_dim
    a = jax.random.normal(key, (max(n, m), min(n, m)), dtype=jnp.float32)
    q, r = jnp.linalg.qr(a)
    q = q * jnp.sign(jnp.diagonal(r))[None, :]
    if n < m:
        q = q.T
    return q[:n, :m].astype(dtype)


def make_params(dims, key):
    """Returns list of (W_transposed (in,out), b (out,)) for the 5 layers."""
    params = []
    keys = jax.random.split(key, len(dims) - 1)
    for li in range(len(dims) - 1):
        d_in, d_out = dims[li], dims[li + 1]
        w = _orthogonal(keys[li], d_out, d_in)          # (out, in), like torch
        bkey = jax.random.fold_in(keys[li], 1)
        bound = 1.0 / jnp.sqrt(jnp.float32(d_in))
        b = jax.random.uniform(bkey, (d_out,), minval=-bound, maxval=bound,
                               dtype=jnp.float32)
        params.append((w.T, b))                          # store transposed
    return params


def mlp_reference(x, params, compute_dtype=jnp.float32):
    """Pure-JAX reference with the same numeric contract as the kernel:
    matmuls in compute_dtype with f32 accumulation, bias add in f32, tanh and
    inter-layer activations in compute_dtype, final layer kept f32."""
    h = x.astype(compute_dtype)
    for i, (w, b) in enumerate(params):
        y = jnp.dot(h, w.astype(compute_dtype),
                    preferred_element_type=jnp.float32) + b
        h = jnp.tanh(y.astype(compute_dtype)) if i < len(params) - 1 else y
    return h


if __name__ == "__main__":
    key = jax.random.PRNGKey(0)
    dims = [32, 64, 64, 64, 64, 16]   # dims[0]..dims[5] for fc1..fc5
    batch = 512

    kx, kp = jax.random.split(key)
    x = jax.random.normal(kx, (batch, dims[0]), dtype=jnp.float32)
    params = make_params(dims, kp)

    # f32 operands: exact check vs pure-JAX reference (validation / v5e path).
    pp_f32 = prep_params(params, compute_dtype=jnp.float32)
    out_f32 = jax.block_until_ready(mlp_forward(x, pp_f32))
    ref_f32 = mlp_reference(x, params, jnp.float32)
    assert out_f32.shape == (batch, dims[-1]), out_f32.shape
    assert jnp.allclose(out_f32, ref_f32, atol=1e-5, rtol=1e-5), \
        float(jnp.max(jnp.abs(out_f32 - ref_f32)))

    # Multi-step grid path (forces batch_tile=256, grid=(2,)): exercises the
    # resident/Buffered weight specs across grid steps.
    out_tiled = jax.block_until_ready(mlp_forward(x, pp_f32, batch_tile=256))
    assert jnp.allclose(out_tiled, ref_f32, atol=1e-5, rtol=1e-5)

    # Irregular batch (B % 8 != 0): row-padded tile, rows sliced off after.
    x_irr = jax.random.normal(jax.random.fold_in(kx, 7), (100, dims[0]),
                              dtype=jnp.float32)
    out_irr = jax.block_until_ready(mlp_forward(x_irr, pp_f32))
    ref_irr = mlp_reference(x_irr, params, jnp.float32)
    assert out_irr.shape == (100, dims[-1]), out_irr.shape
    assert jnp.allclose(out_irr, ref_irr, atol=1e-5, rtol=1e-5)

    # bf16 operands + bf16 tanh (native MXU/VPU/EUP path on v6e/v7x),
    # f32 accumulation preserved.
    pp_bf16 = prep_params(params, compute_dtype=jnp.bfloat16)
    out_bf16 = jax.block_until_ready(mlp_forward(x, pp_bf16))
    ref_bf16 = mlp_reference(x, params, jnp.bfloat16)
    assert out_bf16.shape == (batch, dims[-1]), out_bf16.shape
    assert jnp.allclose(out_bf16, ref_bf16, atol=5e-2, rtol=5e-2), \
        float(jnp.max(jnp.abs(out_bf16 - ref_bf16)))

    # Padded-output path (consumer-side narrowing, no extra HBM pass here).
    out_pad = jax.block_until_ready(mlp_forward(x, pp_f32, unpad=False))
    assert out_pad.shape == (batch, 128), out_pad.shape
    assert jnp.allclose(out_pad[:, :dims[-1]], ref_f32, atol=1e-5, rtol=1e-5)

    # TODO(synk): on v7x, call mlp_forward(..., core_parallel=True) to shard
    # the batch-tile grid across both TensorCores.
    print("KERNEL_OK")
</pallas_src>

<mosaic_0001>
module attributes {stable_mosaic.version = 11 : i64} {
  func.func @_mlp_kernel(%arg0: i32, %arg1: memref<512x32xf32, #tpu.memory_space<vmem>>, %arg2: memref<32x64xf32, #tpu.memory_space<vmem>>, %arg3: memref<1x64xf32, #tpu.memory_space<vmem>>, %arg4: memref<64x64xf32, #tpu.memory_space<vmem>>, %arg5: memref<1x64xf32, #tpu.memory_space<vmem>>, %arg6: memref<64x64xf32, #tpu.memory_space<vmem>>, %arg7: memref<1x64xf32, #tpu.memory_space<vmem>>, %arg8: memref<64x64xf32, #tpu.memory_space<vmem>>, %arg9: memref<1x64xf32, #tpu.memory_space<vmem>>, %arg10: memref<64x128xf32, #tpu.memory_space<vmem>>, %arg11: memref<1x128xf32, #tpu.memory_space<vmem>>, %arg12: memref<512x128xf32, #tpu.memory_space<vmem>>) attributes {dimension_semantics = [#tpu.dimension_semantics<parallel>], iteration_bounds = array<i64: 1>, scalar_prefetch = 0 : i64, scratch_operands = 0 : i64, tpu.core_type = #tpu.core_type<tc>, window_params = [{transform_indices = @transform_0, window_bounds = array<i64: 512, 32>}, {pipeline_mode = #tpu.pipeline_mode<synchronous>, transform_indices = @transform_1, window_bounds = array<i64: 32, 64>}, {pipeline_mode = #tpu.pipeline_mode<synchronous>, transform_indices = @transform_2, window_bounds = array<i64: 1, 64>}, {pipeline_mode = #tpu.pipeline_mode<synchronous>, transform_indices = @transform_3, window_bounds = array<i64: 64, 64>}, {pipeline_mode = #tpu.pipeline_mode<synchronous>, transform_indices = @transform_4, window_bounds = array<i64: 1, 64>}, {pipeline_mode = #tpu.pipeline_mode<synchronous>, transform_indices = @transform_5, window_bounds = array<i64: 64, 64>}, {pipeline_mode = #tpu.pipeline_mode<synchronous>, transform_indices = @transform_6, window_bounds = array<i64: 1, 64>}, {pipeline_mode = #tpu.pipeline_mode<synchronous>, transform_indices = @transform_7, window_bounds = array<i64: 64, 64>}, {pipeline_mode = #tpu.pipeline_mode<synchronous>, transform_indices = @transform_8, window_bounds = array<i64: 1, 64>}, {pipeline_mode = #tpu.pipeline_mode<synchronous>, transform_indices = @transform_9, window_bounds = array<i64: 64, 128>}, {pipeline_mode = #tpu.pipeline_mode<synchronous>, transform_indices = @transform_10, window_bounds = array<i64: 1, 128>}, {transform_indices = @transform_11, window_bounds = array<i64: 512, 128>}]} {
    %c0 = arith.constant 0 : index
    %c0_0 = arith.constant 0 : index
    %0 = vector.load %arg1[%c0, %c0_0] : memref<512x32xf32, #tpu.memory_space<vmem>>, vector<512x32xf32>
    %c0_1 = arith.constant 0 : index
    %c0_2 = arith.constant 0 : index
    %1 = vector.load %arg2[%c0_1, %c0_2] : memref<32x64xf32, #tpu.memory_space<vmem>>, vector<32x64xf32>
    %cst = arith.constant dense<0.000000e+00> : vector<512x64xf32>
    %2 = tpu.matmul %0, %1, %cst {dimension_numbers = #tpu.dot_dimension_numbers<[1], [0], [0], [1], [0, 0, 1, 1], [], []>} : vector<512x32xf32>, vector<32x64xf32>, vector<512x64xf32> -> vector<512x64xf32>
    %c0_3 = arith.constant 0 : index
    %c0_4 = arith.constant 0 : index
    %3 = vector.load %arg3[%c0_3, %c0_4] : memref<1x64xf32, #tpu.memory_space<vmem>>, vector<1x64xf32>
    %4 = vector.broadcast %3 : vector<1x64xf32> to vector<512x64xf32>
    %5 = arith.addf %2, %4 : vector<512x64xf32>
    %6 = math.tanh %5 : vector<512x64xf32>
    %c0_5 = arith.constant 0 : index
    %c0_6 = arith.constant 0 : index
    %7 = vector.load %arg4[%c0_5, %c0_6] : memref<64x64xf32, #tpu.memory_space<vmem>>, vector<64x64xf32>
    %cst_7 = arith.constant dense<0.000000e+00> : vector<512x64xf32>
    %8 = tpu.matmul %6, %7, %cst_7 {dimension_numbers = #tpu.dot_dimension_numbers<[1], [0], [0], [1], [0, 0, 1, 1], [], []>} : vector<512x64xf32>, vector<64x64xf32>, vector<512x64xf32> -> vector<512x64xf32>
    %c0_8 = arith.constant 0 : index
    %c0_9 = arith.constant 0 : index
    %9 = vector.load %arg5[%c0_8, %c0_9] : memref<1x64xf32, #tpu.memory_space<vmem>>, vector<1x64xf32>
    %10 = vector.broadcast %9 : vector<1x64xf32> to vector<512x64xf32>
    %11 = arith.addf %8, %10 : vector<512x64xf32>
    %12 = math.tanh %11 : vector<512x64xf32>
    %c0_10 = arith.constant 0 : index
    %c0_11 = arith.constant 0 : index
    %13 = vector.load %arg6[%c0_10, %c0_11] : memref<64x64xf32, #tpu.memory_space<vmem>>, vector<64x64xf32>
    %cst_12 = arith.constant dense<0.000000e+00> : vector<512x64xf32>
    %14 = tpu.matmul %12, %13, %cst_12 {dimension_numbers = #tpu.dot_dimension_numbers<[1], [0], [0], [1], [0, 0, 1, 1], [], []>} : vector<512x64xf32>, vector<64x64xf32>, vector<512x64xf32> -> vector<512x64xf32>
    %c0_13 = arith.constant 0 : index
    %c0_14 = arith.constant 0 : index
    %15 = vector.load %arg7[%c0_13, %c0_14] : memref<1x64xf32, #tpu.memory_space<vmem>>, vector<1x64xf32>
    %16 = vector.broadcast %15 : vector<1x64xf32> to vector<512x64xf32>
    %17 = arith.addf %14, %16 : vector<512x64xf32>
    %18 = math.tanh %17 : vector<512x64xf32>
    %c0_15 = arith.constant 0 : index
    %c0_16 = arith.constant 0 : index
    %19 = vector.load %arg8[%c0_15, %c0_16] : memref<64x64xf32, #tpu.memory_space<vmem>>, vector<64x64xf32>
    %cst_17 = arith.constant dense<0.000000e+00> : vector<512x64xf32>
    %20 = tpu.matmul %18, %19, %cst_17 {dimension_numbers = #tpu.dot_dimension_numbers<[1], [0], [0], [1], [0, 0, 1, 1], [], []>} : vector<512x64xf32>, vector<64x64xf32>, vector<512x64xf32> -> vector<512x64xf32>
    %c0_18 = arith.constant 0 : index
    %c0_19 = arith.constant 0 : index
    %21 = vector.load %arg9[%c0_18, %c0_19] : memref<1x64xf32, #tpu.memory_space<vmem>>, vector<1x64xf32>
    %22 = vector.broadcast %21 : vector<1x64xf32> to vector<512x64xf32>
    %23 = arith.addf %20, %22 : vector<512x64xf32>
    %24 = math.tanh %23 : vector<512x64xf32>
    %c0_20 = arith.constant 0 : index
    %c0_21 = arith.constant 0 : index
    %25 = vector.load %arg10[%c0_20, %c0_21] : memref<64x128xf32, #tpu.memory_space<vmem>>, vector<64x128xf32>
    %cst_22 = arith.constant dense<0.000000e+00> : vector<512x128xf32>
    %26 = tpu.matmul %24, %25, %cst_22 {dimension_numbers = #tpu.dot_dimension_numbers<[1], [0], [0], [1], [0, 0, 1, 1], [], []>} : vector<512x64xf32>, vector<64x128xf32>, vector<512x128xf32> -> vector<512x128xf32>
    %c0_23 = arith.constant 0 : index
    %c0_24 = arith.constant 0 : index
    %27 = vector.load %arg11[%c0_23, %c0_24] : memref<1x128xf32, #tpu.memory_space<vmem>>, vector<1x128xf32>
    %28 = vector.broadcast %27 : vector<1x128xf32> to vector<512x128xf32>
    %29 = arith.addf %26, %28 : vector<512x128xf32>
    %c0_25 = arith.constant 0 : index
    %c0_26 = arith.constant 0 : index
    %30 = vector.load %arg12[%c0_25, %c0_26] : memref<512x128xf32, #tpu.memory_space<vmem>>, vector<512x128xf32>
    tpu.vector_store %arg12[%c0_25, %c0_26], %29 {strides = array<i32>} : memref<512x128xf32, #tpu.memory_space<vmem>>, vector<512x128xf32>,
    return
  }
  func.func @transform_0(%arg0: i32) -> (i32, i32) {
    %c0_i32 = arith.constant 0 : i32
    %c0_i32_0 = arith.constant 0 : i32
    return %arg0, %c0_i32 : i32, i32
  }
  func.func @transform_1(%arg0: i32) -> (i32, i32) {
    %c0_i32 = arith.constant 0 : i32
    %c0_i32_0 = arith.constant 0 : i32
    %c0_i32_1 = arith.constant 0 : i32
    return %c0_i32, %c0_i32_0 : i32, i32
  }
  func.func @transform_2(%arg0: i32) -> (i32, i32) {
    %c0_i32 = arith.constant 0 : i32
    %c0_i32_0 = arith.constant 0 : i32
    %c0_i32_1 = arith.constant 0 : i32
    return %c0_i32, %c0_i32_0 : i32, i32
  }
  func.func @transform_3(%arg0: i32) -> (i32, i32) {
    %c0_i32 = arith.constant 0 : i32
    %c0_i32_0 = arith.constant 0 : i32
    %c0_i32_1 = arith.constant 0 : i32
    return %c0_i32, %c0_i32_0 : i32, i32
  }
  func.func @transform_4(%arg0: i32) -> (i32, i32) {
    %c0_i32 = arith.constant 0 : i32
    %c0_i32_0 = arith.constant 0 : i32
    %c0_i32_1 = arith.constant 0 : i32
    return %c0_i32, %c0_i32_0 : i32, i32
  }
  func.func @transform_5(%arg0: i32) -> (i32, i32) {
    %c0_i32 = arith.constant 0 : i32
    %c0_i32_0 = arith.constant 0 : i32
    %c0_i32_1 = arith.constant 0 : i32
    return %c0_i32, %c0_i32_0 : i32, i32
  }
  func.func @transform_6(%arg0: i32) -> (i32, i32) {
    %c0_i32 = arith.constant 0 : i32
    %c0_i32_0 = arith.constant 0 : i32
    %c0_i32_1 = arith.constant 0 : i32
    return %c0_i32, %c0_i32_0 : i32, i32
  }
  func.func @transform_7(%arg0: i32) -> (i32, i32) {
    %c0_i32 = arith.constant 0 : i32
    %c0_i32_0 = arith.constant 0 : i32
    %c0_i32_1 = arith.constant 0 : i32
    return %c0_i32, %c0_i32_0 : i32, i32
  }
  func.func @transform_8(%arg0: i32) -> (i32, i32) {
    %c0_i32 = arith.constant 0 : i32
    %c0_i32_0 = arith.constant 0 : i32
    %c0_i32_1 = arith.constant 0 : i32
    return %c0_i32, %c0_i32_0 : i32, i32
  }
  func.func @transform_9(%arg0: i32) -> (i32, i32) {
    %c0_i32 = arith.constant 0 : i32
    %c0_i32_0 = arith.constant 0 : i32
    %c0_i32_1 = arith.constant 0 : i32
    return %c0_i32, %c0_i32_0 : i32, i32
  }
  func.func @transform_10(%arg0: i32) -> (i32, i32) {
    %c0_i32 = arith.constant 0 : i32
    %c0_i32_0 = arith.constant 0 : i32
    %c0_i32_1 = arith.constant 0 : i32
    return %c0_i32, %c0_i32_0 : i32, i32
  }
  func.func @transform_11(%arg0: i32) -> (i32, i32) {
    %c0_i32 = arith.constant 0 : i32
    %c0_i32_0 = arith.constant 0 : i32
    return %arg0, %c0_i32 : i32, i32
  }
}

module attributes {stable_mosaic.version = 11 : i64} {
  func.func @_mlp_kernel(%arg0: i32, %arg1: memref<512x32xf32, #tpu.memory_space<vmem>>, %arg2: memref<32x64xf32, #tpu.memory_space<vmem>>, %arg3: memref<1x64xf32, #tpu.memory_space<vmem>>, %arg4: memref<64x64xf32, #tpu.memory_space<vmem>>, %arg5: memref<1x64xf32, #tpu.memory_space<vmem>>, %arg6: memref<64x64xf32, #tpu.memory_space<vmem>>, %arg7: memref<1x64xf32, #tpu.memory_space<vmem>>, %arg8: memref<64x64xf32, #tpu.memory_space<vmem>>, %arg9: memref<1x64xf32, #tpu.memory_space<vmem>>, %arg10: memref<64x128xf32, #tpu.memory_space<vmem>>, %arg11: memref<1x128xf32, #tpu.memory_space<vmem>>, %arg12: memref<512x128xf32, #tpu.memory_space<vmem>>) attributes {dimension_semantics = [#tpu.dimension_semantics<parallel>], iteration_bounds = array<i64: 1>, scalar_prefetch = 0 : i64, scratch_operands = 0 : i64, tpu.core_type = #tpu.core_type<tc>, window_params = [{transform_indices = @transform_0, window_bounds = array<i64: 512, 32>}, {pipeline_mode = #tpu.pipeline_mode<synchronous>, transform_indices = @transform_1, window_bounds = array<i64: 32, 64>}, {pipeline_mode = #tpu.pipeline_mode<synchronous>, transform_indices = @transform_2, window_bounds = array<i64: 1, 64>}, {pipeline_mode = #tpu.pipeline_mode<synchronous>, transform_indices = @transform_3, window_bounds = array<i64: 64, 64>}, {pipeline_mode = #tpu.pipeline_mode<synchronous>, transform_indices = @transform_4, window_bounds = array<i64: 1, 64>}, {pipeline_mode = #tpu.pipeline_mode<synchronous>, transform_indices = @transform_5, window_bounds = array<i64: 64, 64>}, {pipeline_mode = #tpu.pipeline_mode<synchronous>, transform_indices = @transform_6, window_bounds = array<i64: 1, 64>}, {pipeline_mode = #tpu.pipeline_mode<synchronous>, transform_indices = @transform_7, window_bounds = array<i64: 64, 64>}, {pipeline_mode = #tpu.pipeline_mode<synchronous>, transform_indices = @transform_8, window_bounds = array<i64: 1, 64>}, {pipeline_mode = #tpu.pipeline_mode<synchronous>, transform_indices = @transform_9, window_bounds = array<i64: 64, 128>}, {pipeline_mode = #tpu.pipeline_mode<synchronous>, transform_indices = @transform_10, window_bounds = array<i64: 1, 128>}, {transform_indices = @transform_11, window_bounds = array<i64: 512, 128>}]} {
    %c0 = arith.constant 0 : index
    %c0_0 = arith.constant 0 : index
    %0 = vector.load %arg1[%c0, %c0_0] : memref<512x32xf32, #tpu.memory_space<vmem>>, vector<512x32xf32>
    %c0_1 = arith.constant 0 : index
    %c0_2 = arith.constant 0 : index
    %1 = vector.load %arg2[%c0_1, %c0_2] : memref<32x64xf32, #tpu.memory_space<vmem>>, vector<32x64xf32>
    %cst = arith.constant dense<0.000000e+00> : vector<512x64xf32>
    %2 = tpu.matmul %0, %1, %cst {dimension_numbers = #tpu.dot_dimension_numbers<[1], [0], [0], [1], [0, 0, 1, 1], [], []>} : vector<512x32xf32>, vector<32x64xf32>, vector<512x64xf32> -> vector<512x64xf32>
    %c0_3 = arith.constant 0 : index
    %c0_4 = arith.constant 0 : index
    %3 = vector.load %arg3[%c0_3, %c0_4] : memref<1x64xf32, #tpu.memory_space<vmem>>, vector<1x64xf32>
    %4 = vector.broadcast %3 : vector<1x64xf32> to vector<512x64xf32>
    %5 = arith.addf %2, %4 : vector<512x64xf32>
    %6 = math.tanh %5 : vector<512x64xf32>
    %c0_5 = arith.constant 0 : index
    %c0_6 = arith.constant 0 : index
    %7 = vector.load %arg4[%c0_5, %c0_6] : memref<64x64xf32, #tpu.memory_space<vmem>>, vector<64x64xf32>
    %cst_7 = arith.constant dense<0.000000e+00> : vector<512x64xf32>
    %8 = tpu.matmul %6, %7, %cst_7 {dimension_numbers = #tpu.dot_dimension_numbers<[1], [0], [0], [1], [0, 0, 1, 1], [], []>} : vector<512x64xf32>, vector<64x64xf32>, vector<512x64xf32> -> vector<512x64xf32>
    %c0_8 = arith.constant 0 : index
    %c0_9 = arith.constant 0 : index
    %9 = vector.load %arg5[%c0_8, %c0_9] : memref<1x64xf32, #tpu.memory_space<vmem>>, vector<1x64xf32>
    %10 = vector.broadcast %9 : vector<1x64xf32> to vector<512x64xf32>
    %11 = arith.addf %8, %10 : vector<512x64xf32>
    %12 = math.tanh %11 : vector<512x64xf32>
    %c0_10 = arith.constant 0 : index
    %c0_11 = arith.constant 0 : index
    %13 = vector.load %arg6[%c0_10, %c0_11] : memref<64x64xf32, #tpu.memory_space<vmem>>, vector<64x64xf32>
    %cst_12 = arith.constant dense<0.000000e+00> : vector<512x64xf32>
    %14 = tpu.matmul %12, %13, %cst_12 {dimension_numbers = #tpu.dot_dimension_numbers<[1], [0], [0], [1], [0, 0, 1, 1], [], []>} : vector<512x64xf32>, vector<64x64xf32>, vector<512x64xf32> -> vector<512x64xf32>
    %c0_13 = arith.constant 0 : index
    %c0_14 = arith.constant 0 : index
    %15 = vector.load %arg7[%c0_13, %c0_14] : memref<1x64xf32, #tpu.memory_space<vmem>>, vector<1x64xf32>
    %16 = vector.broadcast %15 : vector<1x64xf32> to vector<512x64xf32>
    %17 = arith.addf %14, %16 : vector<512x64xf32>
    %18 = math.tanh %17 : vector<512x64xf32>
    %c0_15 = arith.constant 0 : index
    %c0_16 = arith.constant 0 : index
    %19 = vector.load %arg8[%c0_15, %c0_16] : memref<64x64xf32, #tpu.memory_space<vmem>>, vector<64x64xf32>
    %cst_17 = arith.constant dense<0.000000e+00> : vector<512x64xf32>
    %20 = tpu.matmul %18, %19, %cst_17 {dimension_numbers = #tpu.dot_dimension_numbers<[1], [0], [0], [1], [0, 0, 1, 1], [], []>} : vector<512x64xf32>, vector<64x64xf32>, vector<512x64xf32> -> vector<512x64xf32>
    %c0_18 = arith.constant 0 : index
    %c0_19 = arith.constant 0 : index
    %21 = vector.load %arg9[%c0_18, %c0_19] : memref<1x64xf32, #tpu.memory_space<vmem>>, vector<1x64xf32>
    %22 = vector.broadcast %21 : vector<1x64xf32> to vector<512x64xf32>
    %23 = arith.addf %20, %22 : vector<512x64xf32>
    %24 = math.tanh %23 : vector<512x64xf32>
    %c0_20 = arith.constant 0 : index
    %c0_21 = arith.constant 0 : index
    %25 = vector.load %arg10[%c0_20, %c0_21] : memref<64x128xf32, #tpu.memory_space<vmem>>, vector<64x128xf32>
    %cst_22 = arith.constant dense<0.000000e+00> : vector<512x128xf32>
    %26 = tpu.matmul %24, %25, %cst_22 {dimension_numbers = #tpu.dot_dimension_numbers<[1], [0], [0], [1], [0, 0, 1, 1], [], []>} : vector<512x64xf32>, vector<64x128xf32>, vector<512x128xf32> -> vector<512x128xf32>
    %c0_23 = arith.constant 0 : index
    %c0_24 = arith.constant 0 : index
    %27 = vector.load %arg11[%c0_23, %c0_24] : memref<1x128xf32, #tpu.memory_space<vmem>>, vector<1x128xf32>
    %28 = vector.broadcast %27 : vector<1x128xf32> to vector<512x128xf32>
    %29 = arith.addf %26, %28 : vector<512x128xf32>
    %c0_25 = arith.constant 0 : index
    %c0_26 = arith.constant 0 : index
    %30 = vector.load %arg12[%c0_25, %c0_26] : memref<512x128xf32, #tpu.memory_space<vmem>>, vector<512x128xf32>
    tpu.vector_store %arg12[%c0_25, %c0_26], %29 {strides = array<i32>} : memref<512x128xf32, #tpu.memory_space<vmem>>, vector<512x128xf32>,
    return
  }
  func.func @transform_0(%arg0: i32) -> (i32, i32) {
    %c0_i32 = arith.constant 0 : i32
    %c0_i32_0 = arith.constant 0 : i32
    return %arg0, %c0_i32 : i32, i32
  }
  func.func @transform_1(%arg0: i32) -> (i32, i32) {
    %c0_i32 = arith.constant 0 : i32
    %c0_i32_0 = arith.constant 0 : i32
    %c0_i32_1 = arith.constant 0 : i32
    return %c0_i32, %c0_i32_0 : i32, i32
  }
  func.func @transform_2(%arg0: i32) -> (i32, i32) {
    %c0_i32 = arith.constant 0 : i32
    %c0_i32_0 = arith.constant 0 : i32
    %c0_i32_1 = arith.constant 0 : i32
    return %c0_i32, %c0_i32_0 : i32, i32
  }
  func.func @transform_3(%arg0: i32) -> (i32, i32) {
    %c0_i32 = arith.constant 0 : i32
    %c0_i32_0 = arith.constant 0 : i32
    %c0_i32_1 = arith.constant 0 : i32
    return %c0_i32, %c0_i32_0 : i32, i32
  }
  func.func @transform_4(%arg0: i32) -> (i32, i32) {
    %c0_i32 = arith.constant 0 : i32
    %c0_i32_0 = arith.constant 0 : i32
    %c0_i32_1 = arith.constant 0 : i32
    return %c0_i32, %c0_i32_0 : i32, i32
  }
  func.func @transform_5(%arg0: i32) -> (i32, i32) {
    %c0_i32 = arith.constant 0 : i32
    %c0_i32_0 = arith.constant 0 : i32
    %c0_i32_1 = arith.constant 0 : i32
    return %c0_i32, %c0_i32_0 : i32, i32
  }
  func.func @transform_6(%arg0: i32) -> (i32, i32) {
    %c0_i32 = arith.constant 0 : i32
    %c0_i32_0 = arith.constant 0 : i32
    %c0_i32_1 = arith.constant 0 : i32
    return %c0_i32, %c0_i32_0 : i32, i32
  }
  func.func @transform_7(%arg0: i32) -> (i32, i32) {
    %c0_i32 = arith.constant 0 : i32
    %c0_i32_0 = arith.constant 0 : i32
    %c0_i32_1 = arith.constant 0 : i32
    return %c0_i32, %c0_i32_0 : i32, i32
  }
  func.func @transform_8(%arg0: i32) -> (i32, i32) {
    %c0_i32 = arith.constant 0 : i32
    %c0_i32_0 = arith.constant 0 : i32
    %c0_i32_1 = arith.constant 0 : i32
    return %c0_i32, %c0_i32_0 : i32, i32
  }
  func.func @transform_9(%arg0: i32) -> (i32, i32) {
    %c0_i32 = arith.constant 0 : i32
    %c0_i32_0 = arith.constant 0 : i32
    %c0_i32_1 = arith.constant 0 : i32
    return %c0_i32, %c0_i32_0 : i32, i32
  }
  func.func @transform_10(%arg0: i32) -> (i32, i32) {
    %c0_i32 = arith.constant 0 : i32
    %c0_i32_0 = arith.constant 0 : i32
    %c0_i32_1 = arith.constant 0 : i32
    return %c0_i32, %c0_i32_0 : i32, i32
  }
  func.func @transform_11(%arg0: i32) -> (i32, i32) {
    %c0_i32 = arith.constant 0 : i32
    %c0_i32_0 = arith.constant 0 : i32
    return %arg0, %c0_i32 : i32, i32
  }
}

</mosaic_0001>

<bundles_post_ra>
// kernel: tpu_custom_call.1
= control target key start
LH: loop header
LB: loop body
LE: loop exit
PB: predicated region body
PF: predicated region fallthrough
CT: control target
= control target key end

     0   :  { %vm114_vm0 = vcmask 261120   ;;  %s6272_s0 = inlined_call_operand.vmem [shape: f32[512,32], index: 0, kind: input, shape index: {}]   ;;  %s6273_s1 = inlined_call_operand.vmem [shape: f32[32,64], index: 1, kind: input, shape index: {}]   ;;  %s6274_s2 = inlined_call_operand.vmem [shape: f32[1,64], index: 2, kind: input, shape index: {}]   ;;  %s6275_s3 = inlined_call_operand.vmem [shape: f32[64,64], index: 3, kind: input, shape index: {}]   ;;  %s6276_s4 = inlined_call_operand.vmem [shape: f32[1,64], index: 4, kind: input, shape index: {}]   ;;  %s6277_s5 = inlined_call_operand.vmem [shape: f32[64,64], index: 5, kind: input, shape index: {}]   ;;  %s6278_s6 = inlined_call_operand.vmem [shape: f32[1,64], index: 6, kind: input, shape index: {}]   ;;  %s6279_s7 = inlined_call_operand.vmem [shape: f32[64,64], index: 7, kind: input, shape index: {}]   ;;  %s6280_s8 = inlined_call_operand.vmem [shape: f32[1,64], index: 8, kind: input, shape index: {}]   ;;  %s6281_s9 = inlined_call_operand.vmem [shape: f32[64,128], index: 9, kind: input, shape index: {}]   ;;  %s6282_s10 = inlined_call_operand.vmem [shape: f32[1,128], index: 10, kind: input, shape index: {}]   ;;  %s6283_s11 = inlined_call_operand.hbm [shape: f32[512,128], index: 11, kind: output, shape index: {}]  }
   0x1   :  { %v106_v0 = vld [vmem:[%s6273_s1 + $0x18] sm:$0xff]  ;;  %v105_v1 = vld [vmem:[%s6273_s1 + $0x10] sm:$0xff]  ;;  %v39_v2 = vld [vmem:[%s6272_s0] sm:$0xff] }
   0x2   :  { %4078 = vmatprep.subr.mxu0 %v106_v0  ;;  %4630 = vmatprep.subr.mxu1 %v106_v0  ;;  %v104_v3 = vld [vmem:[%s6273_s1 + $0x8] sm:$0xff]  ;;  %v103_v4 = vld [vmem:[%s6273_s1] sm:$0xff]  ;;  %v41_v6 = vld [vmem:[%s6272_s0 + $0x10] sm:$0xff] }
   0x3   :  { %4079 = vmatpush3.msra.mxu0 %v106_v0  ;;  %4086 = vmatprep.mubr.msk.f32.mxu0 %vm114_vm0, %v39_v2  ;;  %v40_v5 = vld [vmem:[%s6272_s0 + $0x8] sm:$0xff]  ;;  %v42_v7 = vld [vmem:[%s6272_s0 + $0x18] sm:$0xff]  ;;  %v43_v8 = vld [vmem:[%s6272_s0 + $0x20] sm:$0xff] }
   0x4   :  { %4080 = vmatprep.subr.mxu0 %v105_v1  ;;  %4634 = vmatpush3.msra.mxu1 %v106_v0  ;;  %v71_v9 = vld [vmem:[%s6272_s0 + $0x100] sm:$0xff]  ;;  %v72_v10 = vld [vmem:[%s6272_s0 + $0x108] sm:$0xff]  ;;  %v73_v11 = vld [vmem:[%s6272_s0 + $0x110] sm:$0xff] }
   0x5   :  { %4081 = vmatpush3.msra.mxu0 %v105_v1  ;;  %4631 = vmatprep.subr.mxu1 %v105_v1  ;;  %v44_v12 = vld [vmem:[%s6272_s0 + $0x28] sm:$0xff]  ;;  %v45_v13 = vld [vmem:[%s6272_s0 + $0x30] sm:$0xff]  ;;  %v74_v14 = vld [vmem:[%s6272_s0 + $0x118] sm:$0xff] }
   0x6   :  { %4082 = vmatprep.subr.mxu0 %v104_v3  ;;  %4635 = vmatpush3.msra.mxu1 %v105_v1  ;;  %v75_v15 = vld [vmem:[%s6272_s0 + $0x120] sm:$0xff]  ;;  %v46_v16 = vld [vmem:[%s6272_s0 + $0x38] sm:$0xff]  ;;  %v76_v18 = vld [vmem:[%s6272_s0 + $0x128] sm:$0xff] }
   0x7   :  { %4083 = vmatpush3.msra.mxu0 %v104_v3  ;;  %4632 = vmatprep.subr.mxu1 %v104_v3  ;;  %v47_v17 = vld [vmem:[%s6272_s0 + $0x40] sm:$0xff]  ;;  %v77_v19 = vld [vmem:[%s6272_s0 + $0x130] sm:$0xff]  ;;  %v48_v20 = vld [vmem:[%s6272_s0 + $0x48] sm:$0xff] }
   0x8   :  { %4084 = vmatprep.subr.mxu0 %v103_v4  ;;  %4636 = vmatpush3.msra.mxu1 %v104_v3  ;;  %v763_v21 = vld [vmem:[%s6275_s3 + $0x38] sm:$0xff]  ;;  %v49_v22 = vld [vmem:[%s6272_s0 + $0x50] sm:$0xff]  ;;  %v79_v25 = vld [vmem:[%s6272_s0 + $0x140] sm:$0xff] }
   0x9   :  { %4085 = vmatpush3.msra.mxu0 %v103_v4  ;;  %4633 = vmatprep.subr.mxu1 %v103_v4  ;;  %v78_v23 = vld [vmem:[%s6272_s0 + $0x138] sm:$0xff]  ;;  %v762_v24 = vld [vmem:[%s6275_s3 + $0x30] sm:$0xff] }
   0xa   :  { %4087 = vmatmul.mubr.msk.f32.vlgmr.msra.gmra.mxu0 %vm114_vm0, %v40_v5  ;;  %4637 = vmatpush3.msra.mxu1 %v103_v4 }
   0xb   :  { %4089 = vmatprep.mubr.msk.f32.mxu0 %vm114_vm0, %v41_v6  ;;  %4134 = vmatprep.mubr.msk.f32.mxu1 %vm114_vm0, %v71_v9 }
   0xc   :  { %4135 = vmatmul.mubr.msk.f32.vlgmr.msra.gmra.mxu1 %vm114_vm0, %v72_v10  ;;  %4182 = vmatprep.subr.mxu1 %v763_v21 }
   0xd   :  { %4137 = vmatprep.mubr.msk.f32.mxu1 %vm114_vm0, %v73_v11  ;;  %4183 = vmatpush3.msra.mxu1 %v763_v21 }
   0xe   :  { %4090 = vmatmul.mubr.msk.f32.gmra.mxu0 %vm114_vm0, %v42_v7 }
   0xf   :  { %4092 = vmatprep.mubr.msk.f32.mxu0 %vm114_vm0, %v43_v8 }
  0x10   :  { %4138 = vmatmul.mubr.msk.f32.gmra.mxu1 %vm114_vm0, %v74_v14 }
  0x11   :  { %4140 = vmatprep.mubr.msk.f32.mxu1 %vm114_vm0, %v75_v15 }
  0x12   :  { %4093 = vmatmul.mubr.msk.f32.gmra.mxu0 %vm114_vm0, %v44_v12 }
  0x13   :  { %4095 = vmatprep.mubr.msk.f32.mxu0 %vm114_vm0, %v45_v13 }
  0x14   :  { %4141 = vmatmul.mubr.msk.f32.gmra.mxu1 %vm114_vm0, %v76_v18 }
  0x15   :  { %4143 = vmatprep.mubr.msk.f32.mxu1 %vm114_vm0, %v77_v19 }
  0x16   :  { %4096 = vmatmul.mubr.msk.f32.gmra.mxu0 %vm114_vm0, %v46_v16 }
  0x17   :  { %4098 = vmatprep.mubr.msk.f32.mxu0 %vm114_vm0, %v47_v17 }
  0x18   :  { %16 = vsyncpa [#allocation3], 0  ;;  %4184 = vmatprep.subr.mxu1 %v762_v24  ;;  %v761_v26 = vld [vmem:[%s6275_s3 + $0x28] sm:$0xff]  ;;  %v50_v27 = vld [vmem:[%s6272_s0 + $0x58] sm:$0xff]  ;;  %4144 = vmatmul.mubr.msk.f32.gmra.mxu1 %vm114_vm0, %v78_v23  ;;  %vm771_vm1 = vcmask 523264  }
  0x19   :  { %v51_v28 = vld [vmem:[%s6272_s0 + $0x60] sm:$0xff]  ;;  %4146 = vmatprep.mubr.msk.f32.mxu1 %vm114_vm0, %v79_v25  ;;  %v80_v29 = vld [vmem:[%s6272_s0 + $0x148] sm:$0xff]  ;;  %4185 = vmatpush3.msra.mxu1 %v762_v24  ;;  %v81_v30 = vld [vmem:[%s6272_s0 + $0x150] sm:$0xff] }
  0x1a   :  { %4099 = vmatmul.mubr.msk.f32.gmra.mxu0 %vm114_vm0, %v48_v20  ;;  %4186 = vmatprep.subr.mxu1 %v761_v26  ;;  %v760_v31 = vld [vmem:[%s6275_s3 + $0x20] sm:$0xff]  ;;  %v52_v32 = vld [vmem:[%s6272_s0 + $0x68] sm:$0xff]  ;;  %v759_v33 = vld [vmem:[%s6275_s3 + $0x18] sm:$0xff] }
  0x1b   :  { %4101 = vmatprep.mubr.msk.f32.mxu0 %vm114_vm0, %v49_v22  ;;  %4187 = vmatpush3.msra.mxu1 %v761_v26  ;;  %v53_v34 = vld [vmem:[%s6272_s0 + $0x70] sm:$0xff]  ;;  %v82_v35 = vld [vmem:[%s6272_s0 + $0x158] sm:$0xff]  ;;  %v83_v36 = vld [vmem:[%s6272_s0 + $0x160] sm:$0xff] }
  0x1c   :  { %4147 = vmatmul.mubr.msk.f32.gmra.mxu1 %vm114_vm0, %v80_v29  ;;  %4188 = vmatprep.subr.mxu1 %v760_v31  ;;  %v758_v37 = vld [vmem:[%s6275_s3 + $0x10] sm:$0xff]  ;;  %v54_v38 = vld [vmem:[%s6272_s0 + $0x78] sm:$0xff]  ;;  %v55_v39 = vld [vmem:[%s6272_s0 + $0x80] sm:$0xff] }
  0x1d   :  { %4149 = vmatprep.mubr.msk.f32.mxu1 %vm114_vm0, %v81_v30  ;;  %4189 = vmatpush3.msra.mxu1 %v760_v31  ;;  %v84_v40 = vld [vmem:[%s6272_s0 + $0x168] sm:$0xff]  ;;  %v85_v41 = vld [vmem:[%s6272_s0 + $0x170] sm:$0xff]  ;;  %v86_v44 = vld [vmem:[%s6272_s0 + $0x178] sm:$0xff] }
  0x1e   :  { %4102 = vmatmul.mubr.msk.f32.gmra.mxu0 %vm114_vm0, %v50_v27  ;;  %4190 = vmatprep.subr.mxu1 %v759_v33  ;;  %v56_v42 = vld [vmem:[%s6272_s0 + $0x88] sm:$0xff]  ;;  %v57_v43 = vld [vmem:[%s6272_s0 + $0x90] sm:$0xff]  ;;  %v87_v45 = vld [vmem:[%s6272_s0 + $0x180] sm:$0xff] }
  0x1f   :  { %4104 = vmatprep.mubr.msk.f32.mxu0 %vm114_vm0, %v51_v28  ;;  %4191 = vmatpush3.msra.mxu1 %v759_v33  ;;  %v58_v46 = vld [vmem:[%s6272_s0 + $0x98] sm:$0xff]  ;;  %v59_v47 = vld [vmem:[%s6272_s0 + $0xa0] sm:$0xff]  ;;  %v88_v48 = vld [vmem:[%s6272_s0 + $0x188] sm:$0xff] }
  0x20   :  { %4150 = vmatmul.mubr.msk.f32.gmra.mxu1 %vm114_vm0, %v82_v35  ;;  %4192 = vmatprep.subr.mxu1 %v758_v37  ;;  %v89_v49 = vld [vmem:[%s6272_s0 + $0x190] sm:$0xff]  ;;  %v60_v50 = vld [vmem:[%s6272_s0 + $0xa8] sm:$0xff]  ;;  %v90_v52 = vld [vmem:[%s6272_s0 + $0x198] sm:$0xff] }
  0x21   :  { %4152 = vmatprep.mubr.msk.f32.mxu1 %vm114_vm0, %v83_v36  ;;  %4193 = vmatpush3.msra.mxu1 %v758_v37  ;;  %v61_v51 = vld [vmem:[%s6272_s0 + $0xb0] sm:$0xff]  ;;  %v91_v53 = vld [vmem:[%s6272_s0 + $0x1a0] sm:$0xff]  ;;  %v62_v54 = vld [vmem:[%s6272_s0 + $0xb8] sm:$0xff] }
  0x22   :  { %4105 = vmatmul.mubr.msk.f32.gmra.mxu0 %vm114_vm0, %v52_v32  ;;  %v63_v55 = vld [vmem:[%s6272_s0 + $0xc0] sm:$0xff]  ;;  %v92_v56 = vld [vmem:[%s6272_s0 + $0x1a8] sm:$0xff]  ;;  %v93_v57 = vld [vmem:[%s6272_s0 + $0x1b0] sm:$0xff] }
  0x23   :  { %4107 = vmatprep.mubr.msk.f32.mxu0 %vm114_vm0, %v53_v34  ;;  %v64_v58 = vld [vmem:[%s6272_s0 + $0xc8] sm:$0xff]  ;;  %v65_v59 = vld [vmem:[%s6272_s0 + $0xd0] sm:$0xff]  ;;  %v94_v60 = vld [vmem:[%s6272_s0 + $0x1b8] sm:$0xff] }
  0x24   :  { %4153 = vmatmul.mubr.msk.f32.gmra.mxu1 %vm114_vm0, %v84_v40  ;;  %v95_v61 = vld [vmem:[%s6272_s0 + $0x1c0] sm:$0xff]  ;;  %v66_v62 = vld [vmem:[%s6272_s0 + $0xd8] sm:$0xff]  ;;  %v96_v0 = vld [vmem:[%s6272_s0 + $0x1c8] sm:$0xff] }
  0x25   :  { %4155 = vmatprep.mubr.msk.f32.mxu1 %vm114_vm0, %v85_v41  ;;  %v67_v63 = vld [vmem:[%s6272_s0 + $0xe0] sm:$0xff]  ;;  %v97_v1 = vld [vmem:[%s6272_s0 + $0x1d0] sm:$0xff]  ;;  %v68_v2 = vld [vmem:[%s6272_s0 + $0xe8] sm:$0xff] }
  0x26   :  { %4108 = vmatmul.mubr.msk.f32.gmra.mxu0 %vm114_vm0, %v54_v38  ;;  %v69_v3 = vld [vmem:[%s6272_s0 + $0xf0] sm:$0xff]  ;;  %v98_v4 = vld [vmem:[%s6272_s0 + $0x1d8] sm:$0xff]  ;;  %v99_v5 = vld [vmem:[%s6272_s0 + $0x1e0] sm:$0xff] }
  0x27   :  { %4110 = vmatprep.mubr.msk.f32.mxu0 %vm114_vm0, %v55_v39  ;;  %v70_v6 = vld [vmem:[%s6272_s0 + $0xf8] sm:$0xff]  ;;  %v100_v7 = vld [vmem:[%s6272_s0 + $0x1e8] sm:$0xff]  ;;  %v101_v8 = vld [vmem:[%s6272_s0 + $0x1f0] sm:$0xff] }
  0x28   :  { %4156 = vmatmul.mubr.msk.f32.gmra.mxu1 %vm114_vm0, %v86_v44  ;;  %v102_v9 = vld [vmem:[%s6272_s0 + $0x1f8] sm:$0xff]  ;;  %v757_v10 = vld [vmem:[%s6275_s3 + $0x8] sm:$0xff]  ;;  %v756_v11 = vld [vmem:[%s6275_s3] sm:$0xff] }
  0x29   :  { %4158 = vmatprep.mubr.msk.f32.mxu1 %vm114_vm0, %v87_v45  ;;  %4194 = vmatprep.subr.mxu1 %v757_v10  ;;  %v5533_v12 = vld [vmem:[%s6274_s2] ss:$0 sm:$0xff]  ;;  %v1420_v36 = vld [vmem:[%s6277_s5 + $0x38] sm:$0xff]  ;;  %v1419_v37 = vld [vmem:[%s6277_s5 + $0x30] sm:$0xff] }
  0x2a   :  { %4111 = vmatmul.mubr.msk.f32.gmra.mxu0 %vm114_vm0, %v56_v42  ;;  %4195 = vmatpush3.msra.mxu1 %v757_v10  ;;  %v1418_v42 = vld [vmem:[%s6277_s5 + $0x28] sm:$0xff] }
  0x2b   :  { %4113 = vmatprep.mubr.msk.f32.mxu0 %vm114_vm0, %v57_v43  ;;  %4196 = vmatprep.subr.mxu1 %v756_v11 }
  0x2c   :  { %4159 = vmatmul.mubr.msk.f32.gmra.mxu1 %vm114_vm0, %v88_v48  ;;  %4294 = vmatprep.subr.mxu0 %v1420_v36 }
  0x2d   :  { %4161 = vmatprep.mubr.msk.f32.mxu1 %vm114_vm0, %v89_v49  ;;  %4197 = vmatpush3.msra.mxu1 %v756_v11 }
  0x2e   :  { %4114 = vmatmul.mubr.msk.f32.gmra.mxu0 %vm114_vm0, %v58_v46  ;;  %v1417_v46 = vld [vmem:[%s6277_s5 + $0x20] sm:$0xff] }
  0x2f   :  { %4116 = vmatprep.mubr.msk.f32.mxu0 %vm114_vm0, %v59_v47  ;;  %4295 = vmatpush3.msra.mxu0 %v1420_v36 }
  0x30   :  { %4162 = vmatmul.mubr.msk.f32.gmra.mxu1 %vm114_vm0, %v90_v52  ;;  %4296 = vmatprep.subr.mxu0 %v1419_v37 }
  0x31   :  { %4164 = vmatprep.mubr.msk.f32.mxu1 %vm114_vm0, %v91_v53  ;;  %4297 = vmatpush3.msra.mxu0 %v1419_v37 }
  0x32   :  { %4117 = vmatmul.mubr.msk.f32.gmra.mxu0 %vm114_vm0, %v60_v50  ;;  %4298 = vmatprep.subr.mxu0 %v1418_v42 }
  0x33   :  { %4119 = vmatprep.mubr.msk.f32.mxu0 %vm114_vm0, %v61_v51  ;;  %4299 = vmatpush3.msra.mxu0 %v1418_v42  ;;  %v1416_v51 = vld [vmem:[%s6277_s5 + $0x18] sm:$0xff] }
  0x34   :  { %4165 = vmatmul.mubr.msk.f32.gmra.mxu1 %vm114_vm0, %v92_v56  ;;  %4300 = vmatprep.subr.mxu0 %v1417_v46 }
  0x35   :  { %4167 = vmatprep.mubr.msk.f32.mxu1 %vm114_vm0, %v93_v57  ;;  %4301 = vmatpush3.msra.mxu0 %v1417_v46 }
  0x36   :  { %4120 = vmatmul.mubr.msk.f32.gmra.mxu0 %vm114_vm0, %v62_v54  ;;  %4302 = vmatprep.subr.mxu0 %v1416_v51 }
  0x37   :  { %4122 = vmatprep.mubr.msk.f32.mxu0 %vm114_vm0, %v63_v55  ;;  %v1415_v55 = vld [vmem:[%s6277_s5 + $0x10] sm:$0xff]  ;;  %4303 = vmatpush3.msra.mxu0 %v1416_v51 }
  0x38   :  { %4168 = vmatmul.mubr.msk.f32.gmra.mxu1 %vm114_vm0, %v94_v60  ;;  %4304 = vmatprep.subr.mxu0 %v1415_v55 }
  0x39   :  { %4170 = vmatprep.mubr.msk.f32.mxu1 %vm114_vm0, %v95_v61  ;;  %4305 = vmatpush3.msra.mxu0 %v1415_v55 }
  0x3a   :  { %4123 = vmatmul.mubr.msk.f32.gmra.mxu0 %vm114_vm0, %v64_v58 }
  0x3b   :  { %4125 = vmatprep.mubr.msk.f32.mxu0 %vm114_vm0, %v65_v59 }
  0x3c   :  { %4171 = vmatmul.mubr.msk.f32.gmra.mxu1 %vm114_vm0, %v96_v0 }
  0x3d   :  { %4173 = vmatprep.mubr.msk.f32.mxu1 %vm114_vm0, %v97_v1 }
  0x3e   :  { %4126 = vmatmul.mubr.msk.f32.gmra.mxu0 %vm114_vm0, %v66_v62 }
  0x3f   :  { %4128 = vmatprep.mubr.msk.f32.mxu0 %vm114_vm0, %v67_v63 }
  0x40   :  { %4174 = vmatmul.mubr.msk.f32.gmra.mxu1 %vm114_vm0, %v98_v4 }
  0x41   :  { %4176 = vmatprep.mubr.msk.f32.mxu1 %vm114_vm0, %v99_v5 }
  0x42   :  { %4129 = vmatmul.mubr.msk.f32.gmra.mxu0 %vm114_vm0, %v68_v2 }
  0x43   :  { %4131 = vmatprep.mubr.msk.f32.mxu0 %vm114_vm0, %v69_v3 }
  0x44   :  { %4177 = vmatmul.mubr.msk.f32.gmra.mxu1 %vm114_vm0, %v100_v7 }
  0x45   :  { %4179 = vmatprep.mubr.msk.f32.mxu1 %vm114_vm0, %v101_v8 }
  0x46   :  { %4132 = vmatmul.mubr.msk.f32.gmra.mxu0 %vm114_vm0, %v70_v6 }
  0x48   :  { %4180 = vmatmul.mubr.msk.f32.gmra.mxu1 %vm114_vm0, %v102_v9 }
  0xca   :  { %v4088_v13 = vpop.f32.mrf.mxu0 }
  0xcb   :  { %v379_v14 = vadd.f32 %v4088_v13, %v5533_v12 }
  0xcc   :  { %v373_v15 = vpop.f32.mrf.mxu0  ;;  %v5537_v18 = vpop.f32.mrf.mxu1 }
  0xcd   :  { %v374_v16 = vadd.f32 %v5533_v12, %v373_v15 }
  0xce   :  { %v4091_v17 = vpop.f32.mrf.mxu0  ;;  %v5541_v22 = vpop.f32.mrf.mxu1 }
  0xcf   :  { %4641 = vtanh.f32 %v374_v16  ;;  %v389_v19 = vadd.f32 %v4091_v17, %v5533_v12 }
  0xd0   :  { %4643 = vtanh.f32 %v379_v14  ;;  %v383_v20 = vpop.f32.mrf.mxu0  ;;  %v5543_v24 = vpop.f32.mrf.mxu1 }
  0xd1   :  { %v384_v21 = vadd.f32 %v5533_v12, %v383_v20 }
  0xd2   :  { %v4094_v23 = vpop.f32.mrf.mxu0  ;;  %v5547_v28 = vpop.f32.mrf.mxu1 }
  0xd3   :  { %4645 = vtanh.f32 %v384_v21  ;;  %v399_v25 = vadd.f32 %v4094_v23, %v5533_v12 }
  0xd4   :  { %4647 = vtanh.f32 %v389_v19  ;;  %v393_v26 = vpop.f32.mrf.mxu0  ;;  %v5549_v30 = vpop.f32.mrf.mxu1 }
  0xd5   :  { %v394_v27 = vadd.f32 %v5533_v12, %v393_v26 }
  0xd6   :  { %v4097_v29 = vpop.f32.mrf.mxu0  ;;  %v5553_v34 = vpop.f32.mrf.mxu1 }
  0xd7   :  { %4649 = vtanh.f32 %v394_v27  ;;  %v409_v31 = vadd.f32 %v4097_v29, %v5533_v12 }
  0xd8   :  { %4651 = vtanh.f32 %v399_v25  ;;  %v403_v32 = vpop.f32.mrf.mxu0  ;;  %v5562_v41 = vpop.f32.mrf.mxu1 }
  0xd9   :  { %v404_v33 = vadd.f32 %v5533_v12, %v403_v32 }
  0xda   :  { %v4100_v35 = vpop.f32.mrf.mxu0  ;;  %v5574_v50 = vpop.f32.mrf.mxu1 }
  0xdb   :  { %4653 = vtanh.f32 %v404_v33  ;;  %v419_v39 = vadd.f32 %v4100_v35, %v5533_v12 }
  0xdc   :  { %v4642_v38 = vpop.eup %4641  ;;  %4655 = vtanh.f32 %v409_v31  ;;  %v413_v40 = vpop.f32.mrf.mxu0 }
  0xdd   :  { %v4644_v43 = vpop.eup %4643  ;;  %v414_v44 = vadd.f32 %v5533_v12, %v413_v40  ;;  %4198 = vmatprep.mubr.msk.f32.mxu1 %vm771_vm1, %v4642_v38  ;;  %v5586_v59 = vpop.f32.mrf.mxu1 }
  0xde   :  { %v4103_v45 = vpop.f32.mrf.mxu0  ;;  %4199 = vmatmul.mubr.msk.f32.vlgmr.msra.gmra.mxu1 %vm771_vm1, %v4644_v43 }
  0xdf   :  { %4657 = vtanh.f32 %v414_v44  ;;  %v429_v48 = vadd.f32 %v4103_v45, %v5533_v12  ;;  %v5592_v2 = vpop.f32.mrf.mxu1 }
  0xe0   :  { %v4646_v47 = vpop.eup %4645  ;;  %4659 = vtanh.f32 %v419_v39  ;;  %v423_v49 = vpop.f32.mrf.mxu0 }
  0xe1   :  { %v4648_v52 = vpop.eup %4647  ;;  %v424_v53 = vadd.f32 %v5533_v12, %v423_v49  ;;  %4201 = vmatprep.mubr.msk.f32.mxu1 %vm771_vm1, %v4646_v47  ;;  %v5598_v9 = vpop.f32.mrf.mxu1 }
  0xe2   :  { %v4106_v54 = vpop.f32.mrf.mxu0  ;;  %4202 = vmatmul.mubr.msk.f32.gmra.mxu1 %vm771_vm1, %v4648_v52 }
  0xe3   :  { %4661 = vtanh.f32 %v424_v53  ;;  %v439_v57 = vadd.f32 %v4106_v54, %v5533_v12  ;;  %v5604_v17 = vpop.f32.mrf.mxu1 }
  0xe4   :  { %v4650_v56 = vpop.eup %4649  ;;  %4663 = vtanh.f32 %v429_v48  ;;  %v433_v58 = vpop.f32.mrf.mxu0 }
  0xe5   :  { %v4652_v60 = vpop.eup %4651  ;;  %v434_v61 = vadd.f32 %v5533_v12, %v433_v58  ;;  %4204 = vmatprep.mubr.msk.f32.mxu1 %vm771_vm1, %v4650_v56  ;;  %v5610_v27 = vpop.f32.mrf.mxu1 }
  0xe6   :  { %v4109_v62 = vpop.f32.mrf.mxu0  ;;  %4205 = vmatmul.mubr.msk.f32.gmra.mxu1 %vm771_vm1, %v4652_v60 }
  0xe7   :  { %4665 = vtanh.f32 %v434_v61  ;;  %v449_v0 = vadd.f32 %v4109_v62, %v5533_v12  ;;  %v5616_v37 = vpop.f32.mrf.mxu1 }
  0xe8   :  { %v4654_v63 = vpop.eup %4653  ;;  %4667 = vtanh.f32 %v439_v57  ;;  %v443_v1 = vpop.f32.mrf.mxu0 }
  0xe9   :  { %v4656_v3 = vpop.eup %4655  ;;  %v444_v4 = vadd.f32 %v5533_v12, %v443_v1  ;;  %4207 = vmatprep.mubr.msk.f32.mxu1 %vm771_vm1, %v4654_v63  ;;  %v5622_v45 = vpop.f32.mrf.mxu1  ;;  %v534_v1 = vadd.f32 %v5533_v12, %v5541_v22  ;;  %v544_v22 = vadd.f32 %v5533_v12, %v5547_v28  ;;  %v549_v28 = vadd.f32 %v5543_v24, %v5533_v12 }
  0xea   :  { %v4112_v5 = vpop.f32.mrf.mxu0  ;;  %4208 = vmatmul.mubr.msk.f32.gmra.mxu1 %vm771_vm1, %v4656_v3 }
  0xeb   :  { %4669 = vtanh.f32 %v444_v4  ;;  %v459_v7 = vadd.f32 %v4112_v5, %v5533_v12  ;;  %v5628_v53 = vpop.f32.mrf.mxu1 }
  0xec   :  { %v4658_v6 = vpop.eup %4657  ;;  %4671 = vtanh.f32 %v449_v0  ;;  %v453_v8 = vpop.f32.mrf.mxu0 }
  0xed   :  { %v4660_v10 = vpop.eup %4659  ;;  %v454_v11 = vadd.f32 %v5533_v12, %v453_v8  ;;  %4210 = vmatprep.mubr.msk.f32.mxu1 %vm771_vm1, %v4658_v6  ;;  %v5634_v61 = vpop.f32.mrf.mxu1 }
  0xee   :  { %v4115_v13 = vpop.f32.mrf.mxu0  ;;  %4211 = vmatmul.mubr.msk.f32.gmra.mxu1 %vm771_vm1, %v4660_v10 }
  0xef   :  { %4673 = vtanh.f32 %v454_v11  ;;  %v469_v15 = vadd.f32 %v4115_v13, %v5533_v12  ;;  %v5642_v6 = vpop.f32.mrf.mxu1  ;;  %v539_v11 = vadd.f32 %v5537_v18, %v5533_v12  ;;  %v564_v18 = vadd.f32 %v5533_v12, %v5574_v50 }
  0xf0   :  { %v4662_v14 = vpop.eup %4661  ;;  %4675 = vtanh.f32 %v459_v7  ;;  %v463_v16 = vpop.f32.mrf.mxu0  ;;  %v569_v50 = vadd.f32 %v5562_v41, %v5533_v12 }
  0xf1   :  { %v4664_v19 = vpop.eup %4663  ;;  %v464_v20 = vadd.f32 %v5533_v12, %v463_v16  ;;  %4213 = vmatprep.mubr.msk.f32.mxu1 %vm771_vm1, %v4662_v14  ;;  %v5651_v13 = vpop.f32.mrf.mxu1 }
  0xf2   :  { %v4118_v21 = vpop.f32.mrf.mxu0  ;;  %4214 = vmatmul.mubr.msk.f32.gmra.mxu1 %vm771_vm1, %v4664_v19 }
  0xf3   :  { %4677 = vtanh.f32 %v464_v20  ;;  %v479_v25 = vadd.f32 %v4118_v21, %v5533_v12  ;;  %v5659_v19 = vpop.f32.mrf.mxu1 }
  0xf4   :  { %v4666_v23 = vpop.eup %4665  ;;  %4679 = vtanh.f32 %v469_v15  ;;  %v473_v26 = vpop.f32.mrf.mxu0  ;;  %v554_v15 = vadd.f32 %v5533_v12, %v5553_v34  ;;  %v559_v34 = vadd.f32 %v5549_v30, %v5533_v12  ;;  %v584_v30 = vadd.f32 %v5533_v12, %v5604_v17 }
  0xf5   :  { %v4668_v29 = vpop.eup %4667  ;;  %v474_v31 = vadd.f32 %v5533_v12, %v473_v26  ;;  %4216 = vmatprep.mubr.msk.f32.mxu1 %vm771_vm1, %v4666_v23  ;;  %v5667_v23 = vpop.f32.mrf.mxu1  ;;  %v574_v26 = vadd.f32 %v5533_v12, %v5592_v2  ;;  %v579_v2 = vadd.f32 %v5586_v59, %v5533_v12  ;;  %v589_v17 = vadd.f32 %v5598_v9, %v5533_v12 }
  0xf6   :  { %v4121_v32 = vpop.f32.mrf.mxu0  ;;  %4217 = vmatmul.mubr.msk.f32.gmra.mxu1 %vm771_vm1, %v4668_v29  ;;  %v604_v59 = vadd.f32 %v5533_v12, %v5628_v53 }
  0xf7   :  { %4681 = vtanh.f32 %v474_v31  ;;  %v489_v35 = vadd.f32 %v4121_v32, %v5533_v12  ;;  %v633_v31 = vpop.f32.mrf.mxu1 }
  0xf8   :  { %v4670_v33 = vpop.eup %4669  ;;  %4683 = vtanh.f32 %v479_v25  ;;  %v483_v36 = vpop.f32.mrf.mxu0 }
  0xf9   :  { %v4672_v38 = vpop.eup %4671  ;;  %v484_v39 = vadd.f32 %v5533_v12, %v483_v36  ;;  %4219 = vmatprep.mubr.msk.f32.mxu1 %vm771_vm1, %v4670_v33  ;;  %v594_v36 = vadd.f32 %v5533_v12, %v5616_v37 }
  0xfa   :  { %v4124_v40 = vpop.f32.mrf.mxu0  ;;  %4220 = vmatmul.mubr.msk.f32.gmra.mxu1 %vm771_vm1, %v4672_v38 }
  0xfb   :  { %4685 = vtanh.f32 %v484_v39  ;;  %v499_v43 = vadd.f32 %v4124_v40, %v5533_v12 }
  0xfc   :  { %v4674_v42 = vpop.eup %4673  ;;  %4687 = vtanh.f32 %v489_v35  ;;  %v493_v44 = vpop.f32.mrf.mxu0 }
  0xfd   :  { %v4676_v46 = vpop.eup %4675  ;;  %v494_v47 = vadd.f32 %v5533_v12, %v493_v44  ;;  %4222 = vmatprep.mubr.msk.f32.mxu1 %vm771_vm1, %v4674_v42  ;;  %v5682_v35 = vpop.f32.mrf.mxu1  ;;  %v1414_v42 = vld [vmem:[%s6277_s5 + $0x8] sm:$0xff] }
  0xfe   :  { %v4127_v48 = vpop.f32.mrf.mxu0  ;;  %4223 = vmatmul.mubr.msk.f32.gmra.mxu1 %vm771_vm1, %v4676_v46  ;;  %4306 = vmatprep.subr.mxu0 %v1414_v42  ;;  %v614_v46 = vadd.f32 %v5533_v12, %v5642_v6  ;;  %v649_v6 = vadd.f32 %v5682_v35, %v5533_v12  ;;  %v2075_v35 = vld [vmem:[%s6279_s7 + $0x30] sm:$0xff] }
  0xff   :  { %4689 = vtanh.f32 %v494_v47  ;;  %v509_v51 = vadd.f32 %v4127_v48, %v5533_v12  ;;  %v643_v39 = vpop.f32.mrf.mxu1  ;;  %4307 = vmatpush3.msra.mxu0 %v1414_v42  ;;  %v609_v48 = vadd.f32 %v5622_v45, %v5533_v12 }
 0x100   :  { %v4678_v49 = vpop.eup %4677  ;;  %4691 = vtanh.f32 %v499_v43  ;;  %v503_v52 = vpop.f32.mrf.mxu0  ;;  %v599_v43 = vadd.f32 %v5610_v27, %v5533_v12  ;;  %v624_v27 = vadd.f32 %v5533_v12, %v5659_v19 }
 0x101   :  { %v4680_v54 = vpop.eup %4679  ;;  %v504_v55 = vadd.f32 %v5533_v12, %v503_v52  ;;  %4225 = vmatprep.mubr.msk.f32.mxu1 %vm771_vm1, %v4678_v49  ;;  %v4172_v9 = vpop.f32.mrf.mxu1  ;;  %v1413_v52 = vld [vmem:[%s6277_s5] sm:$0xff] }
 0x102   :  { %v4130_v56 = vpop.f32.mrf.mxu0  ;;  %4226 = vmatmul.mubr.msk.f32.gmra.mxu1 %vm771_vm1, %v4680_v54  ;;  %v619_v54 = vadd.f32 %v5634_v61, %v5533_v12  ;;  %4308 = vmatprep.subr.mxu0 %v1413_v52  ;;  %v644_v61 = vadd.f32 %v5533_v12, %v643_v39 }
 0x103   :  { %4693 = vtanh.f32 %v504_v55  ;;  %v519_v58 = vadd.f32 %v4130_v56, %v5533_v12  ;;  %v653_v49 = vpop.f32.mrf.mxu1  ;;  %4309 = vmatpush3.msra.mxu0 %v1413_v52  ;;  %v634_v56 = vadd.f32 %v5533_v12, %v633_v31 }
 0x104   :  { %v4682_v57 = vpop.eup %4681  ;;  %4695 = vtanh.f32 %v509_v51  ;;  %v513_v60 = vpop.f32.mrf.mxu0 }
 0x105   :  { %v4684_v62 = vpop.eup %4683  ;;  %v514_v63 = vadd.f32 %v5533_v12, %v513_v60  ;;  %4228 = vmatprep.mubr.msk.f32.mxu1 %vm771_vm1, %v4682_v57  ;;  %v4175_v45 = vpop.f32.mrf.mxu1 }
 0x106   :  { %v4133_v0 = vpop.f32.mrf.mxu0  ;;  %4229 = vmatmul.mubr.msk.f32.gmra.mxu1 %vm771_vm1, %v4684_v62 }
 0x107   :  { %4697 = vtanh.f32 %v514_v63  ;;  %v529_v4 = vadd.f32 %v4133_v0, %v5533_v12  ;;  %v663_v60 = vpop.f32.mrf.mxu1  ;;  %v639_v0 = vadd.f32 %v5667_v23, %v5533_v12 }
 0x108   :  { %v4686_v3 = vpop.eup %4685  ;;  %4699 = vtanh.f32 %v519_v58  ;;  %v523_v5 = vpop.f32.mrf.mxu0  ;;  %v629_v58 = vadd.f32 %v5651_v13, %v5533_v12 }
 0x109   :  { %v4688_v7 = vpop.eup %4687  ;;  %v524_v8 = vadd.f32 %v5533_v12, %v523_v5  ;;  %4231 = vmatprep.mubr.msk.f32.mxu1 %vm771_vm1, %v4686_v3  ;;  %4701 = vtanh.f32 %v534_v1  ;;  %v4178_v1 = vpop.f32.mrf.mxu1 }
 0x10a   :  { %4232 = vmatmul.mubr.msk.f32.gmra.mxu1 %vm771_vm1, %v4688_v7 }
 0x10b   :  { %4703 = vtanh.f32 %v524_v8  ;;  %v673_v7 = vpop.f32.mrf.mxu1 }
 0x10c   :  { %v4690_v10 = vpop.eup %4689  ;;  %4705 = vtanh.f32 %v529_v4  ;;  %v654_v4 = vadd.f32 %v5533_v12, %v653_v49 }
 0x10d   :  { %v4692_v14 = vpop.eup %4691  ;;  %4234 = vmatprep.mubr.msk.f32.mxu1 %vm771_vm1, %v4690_v10  ;;  %4707 = vtanh.f32 %v544_v22  ;;  %v664_v22 = vadd.f32 %v5533_v12, %v663_v60  ;;  %v4181_v13 = vpop.f32.mrf.mxu1 }
 0x10e   :  { %4235 = vmatmul.mubr.msk.f32.gmra.mxu1 %vm771_vm1, %v4692_v14  ;;  %4709 = vtanh.f32 %v539_v11  ;;  %v659_v11 = vadd.f32 %v4172_v9, %v5533_v12 }
 0x10f   :  { %4711 = vtanh.f32 %v554_v15  ;;  %v674_v15 = vadd.f32 %v5533_v12, %v673_v7  ;;  %v683_v19 = vpop.f32.mrf.mxu1 }
 0x110   :  { %v4694_v16 = vpop.eup %4693  ;;  %4713 = vtanh.f32 %v549_v28  ;;  %v669_v28 = vadd.f32 %v4175_v45, %v5533_v12 }
 0x111   :  { %v4696_v20 = vpop.eup %4695  ;;  %4237 = vmatprep.mubr.msk.f32.mxu1 %vm771_vm1, %v4694_v16  ;;  %4715 = vtanh.f32 %v564_v18  ;;  %v684_v18 = vadd.f32 %v5533_v12, %v683_v19 }
 0x112   :  { %4238 = vmatmul.mubr.msk.f32.gmra.mxu1 %vm771_vm1, %v4696_v20  ;;  %4717 = vtanh.f32 %v559_v34  ;;  %v679_v34 = vadd.f32 %v4178_v1, %v5533_v12 }
 0x113   :  { %4719 = vtanh.f32 %v574_v26 }
 0x114   :  { %v4698_v21 = vpop.eup %4697  ;;  %4721 = vtanh.f32 %v569_v50 }
 0x115   :  { %v4700_v25 = vpop.eup %4699  ;;  %4240 = vmatprep.mubr.msk.f32.mxu1 %vm771_vm1, %v4698_v21  ;;  %4723 = vtanh.f32 %v584_v30 }
 0x116   :  { %4241 = vmatmul.mubr.msk.f32.gmra.mxu1 %vm771_vm1, %v4700_v25  ;;  %v4702_v24 = vpop.eup %4701  ;;  %4725 = vtanh.f32 %v579_v2  ;;  %v2076_v2 = vld [vmem:[%s6279_s7 + $0x38] sm:$0xff] }
 0x117   :  { %4727 = vtanh.f32 %v594_v36  ;;  %4406 = vmatprep.subr.mxu1 %v2076_v2 }
 0x118   :  { %v4704_v29 = vpop.eup %4703  ;;  %4729 = vtanh.f32 %v589_v17  ;;  %4407 = vmatpush3.msra.mxu1 %v2076_v2 }
 0x119   :  { %v4706_v32 = vpop.eup %4705  ;;  %4243 = vmatprep.mubr.msk.f32.mxu1 %vm771_vm1, %v4704_v29  ;;  %4731 = vtanh.f32 %v604_v59  ;;  %4408 = vmatprep.subr.mxu1 %v2075_v35 }
 0x11a   :  { %4244 = vmatmul.mubr.msk.f32.gmra.mxu1 %vm771_vm1, %v4706_v32  ;;  %v4708_v33 = vpop.eup %4707  ;;  %4733 = vtanh.f32 %v599_v43  ;;  %v2074_v43 = vld [vmem:[%s6279_s7 + $0x28] sm:$0xff] }
 0x11b   :  { %4246 = vmatprep.mubr.msk.f32.mxu1 %vm771_vm1, %v4702_v24  ;;  %v4710_v41 = vpop.eup %4709  ;;  %4735 = vtanh.f32 %v614_v46  ;;  %v689_v24 = vadd.f32 %v4181_v13, %v5533_v12  ;;  %4409 = vmatpush3.msra.mxu1 %v2075_v35 }
 0x11c   :  { %v4712_v38 = vpop.eup %4711  ;;  %4737 = vtanh.f32 %v609_v48  ;;  %4410 = vmatprep.subr.mxu1 %v2074_v43 }
 0x11d   :  { %v4714_v40 = vpop.eup %4713  ;;  %4739 = vtanh.f32 %v624_v27  ;;  %4411 = vmatpush3.msra.mxu1 %v2074_v43 }
 0x11e   :  { %4247 = vmatmul.mubr.msk.f32.gmra.mxu1 %vm771_vm1, %v4710_v41  ;;  %v4716_v37 = vpop.eup %4715  ;;  %4741 = vtanh.f32 %v619_v54  ;;  %v5762_v41 = vld [vmem:[%s6276_s4] ss:$0 sm:$0xff]  ;;  %v2072_v54 = vld [vmem:[%s6279_s7 + $0x18] sm:$0xff] }
 0x11f   :  { %4249 = vmatprep.mubr.msk.f32.mxu1 %vm771_vm1, %v4708_v33  ;;  %v4718_v44 = vpop.eup %4717  ;;  %4743 = vtanh.f32 %v634_v56 }
 0x120   :  { %v4720_v47 = vpop.eup %4719  ;;  %4745 = vtanh.f32 %v629_v58 }
 0x121   :  { %v4722_v51 = vpop.eup %4721  ;;  %4747 = vtanh.f32 %v644_v61  ;;  %v2070_v61 = vld [vmem:[%s6279_s7 + $0x8] sm:$0xff] }
 0x122   :  { %4250 = vmatmul.mubr.msk.f32.gmra.mxu1 %vm771_vm1, %v4714_v40  ;;  %v4724_v53 = vpop.eup %4723  ;;  %4749 = vtanh.f32 %v639_v0 }
 0x123   :  { %4252 = vmatprep.mubr.msk.f32.mxu1 %vm771_vm1, %v4712_v38  ;;  %v4726_v55 = vpop.eup %4725  ;;  %4751 = vtanh.f32 %v654_v4 }
 0x124   :  { %v4728_v57 = vpop.eup %4727  ;;  %4753 = vtanh.f32 %v649_v6 }
 0x125   :  { %v4730_v62 = vpop.eup %4729  ;;  %4755 = vtanh.f32 %v664_v22 }
 0x126   :  { %4253 = vmatmul.mubr.msk.f32.gmra.mxu1 %vm771_vm1, %v4718_v44  ;;  %v4732_v63 = vpop.eup %4731  ;;  %4757 = vtanh.f32 %v659_v11 }
 0x127   :  { %4255 = vmatprep.mubr.msk.f32.mxu1 %vm771_vm1, %v4716_v37  ;;  %v4734_v3 = vpop.eup %4733  ;;  %4759 = vtanh.f32 %v674_v15 }
 0x128   :  { %v4736_v5 = vpop.eup %4735  ;;  %4761 = vtanh.f32 %v669_v28 }
 0x129   :  { %v4738_v8 = vpop.eup %4737  ;;  %4763 = vtanh.f32 %v684_v18 }
 0x12a   :  { %4256 = vmatmul.mubr.msk.f32.gmra.mxu1 %vm771_vm1, %v4722_v51  ;;  %v4740_v10 = vpop.eup %4739  ;;  %4765 = vtanh.f32 %v679_v34 }
 0x12b   :  { %4258 = vmatprep.mubr.msk.f32.mxu1 %vm771_vm1, %v4720_v47  ;;  %v4742_v14 = vpop.eup %4741  ;;  %4767 = vtanh.f32 %v689_v24 }
 0x12c   :  { %v4744_v16 = vpop.eup %4743 }
 0x12d   :  { %v4746_v20 = vpop.eup %4745 }
 0x12e   :  { %4259 = vmatmul.mubr.msk.f32.gmra.mxu1 %vm771_vm1, %v4726_v55  ;;  %v4748_v21 = vpop.eup %4747 }
 0x12f   :  { %4261 = vmatprep.mubr.msk.f32.mxu1 %vm771_vm1, %v4724_v53  ;;  %v4750_v23 = vpop.eup %4749  ;;  %v2073_v53 = vld [vmem:[%s6279_s7 + $0x20] sm:$0xff] }
 0x130   :  { %v4752_v25 = vpop.eup %4751  ;;  %4412 = vmatprep.subr.mxu1 %v2073_v53 }
 0x131   :  { %v4754_v26 = vpop.eup %4753  ;;  %4413 = vmatpush3.msra.mxu1 %v2073_v53 }
 0x132   :  { %4262 = vmatmul.mubr.msk.f32.gmra.mxu1 %vm771_vm1, %v4730_v62  ;;  %v4756_v29 = vpop.eup %4755  ;;  %4414 = vmatprep.subr.mxu1 %v2072_v54 }
 0x133   :  { %4264 = vmatprep.mubr.msk.f32.mxu1 %vm771_vm1, %v4728_v57  ;;  %v4758_v50 = vpop.eup %4757  ;;  %v2071_v57 = vld [vmem:[%s6279_s7 + $0x10] sm:$0xff]  ;;  %4415 = vmatpush3.msra.mxu1 %v2072_v54 }
 0x134   :  { %v4760_v31 = vpop.eup %4759  ;;  %4416 = vmatprep.subr.mxu1 %v2071_v57 }
 0x135   :  { %v4762_v32 = vpop.eup %4761  ;;  %4417 = vmatpush3.msra.mxu1 %v2071_v57 }
 0x136   :  { %4265 = vmatmul.mubr.msk.f32.gmra.mxu1 %vm771_vm1, %v4734_v3  ;;  %v4764_v30 = vpop.eup %4763  ;;  %4418 = vmatprep.subr.mxu1 %v2070_v61 }
 0x137   :  { %4267 = vmatprep.mubr.msk.f32.mxu1 %vm771_vm1, %v4732_v63  ;;  %v4766_v12 = vpop.eup %4765  ;;  %4419 = vmatpush3.msra.mxu1 %v2070_v61 }
 0x138   :  { %v4768_v33 = vpop.eup %4767 }
 0x13a   :  { %4268 = vmatmul.mubr.msk.f32.gmra.mxu1 %vm771_vm1, %v4738_v8 }
 0x13b   :  { %4270 = vmatprep.mubr.msk.f32.mxu1 %vm771_vm1, %v4736_v5 }
 0x13e   :  { %4271 = vmatmul.mubr.msk.f32.gmra.mxu1 %vm771_vm1, %v4742_v14 }
 0x13f   :  { %4273 = vmatprep.mubr.msk.f32.mxu1 %vm771_vm1, %v4740_v10 }
 0x142   :  { %4274 = vmatmul.mubr.msk.f32.gmra.mxu1 %vm771_vm1, %v4746_v20 }
 0x143   :  { %4276 = vmatprep.mubr.msk.f32.mxu1 %vm771_vm1, %v4744_v16 }
 0x146   :  { %4277 = vmatmul.mubr.msk.f32.gmra.mxu1 %vm771_vm1, %v4750_v23 }
 0x147   :  { %4279 = vmatprep.mubr.msk.f32.mxu1 %vm771_vm1, %v4748_v21 }
 0x14a   :  { %4280 = vmatmul.mubr.msk.f32.gmra.mxu1 %vm771_vm1, %v4754_v26 }
 0x14b   :  { %4282 = vmatprep.mubr.msk.f32.mxu1 %vm771_vm1, %v4752_v25 }
 0x14e   :  { %4283 = vmatmul.mubr.msk.f32.gmra.mxu1 %vm771_vm1, %v4758_v50 }
 0x14f   :  { %4285 = vmatprep.mubr.msk.f32.mxu1 %vm771_vm1, %v4756_v29 }
 0x152   :  { %4286 = vmatmul.mubr.msk.f32.gmra.mxu1 %vm771_vm1, %v4762_v32 }
 0x153   :  { %4288 = vmatprep.mubr.msk.f32.mxu1 %vm771_vm1, %v4760_v31 }
 0x156   :  { %4289 = vmatmul.mubr.msk.f32.gmra.mxu1 %vm771_vm1, %v4766_v12 }
 0x157   :  { %4291 = vmatprep.mubr.msk.f32.mxu1 %vm771_vm1, %v4764_v30 }
 0x15a   :  { %4292 = vmatmul.mubr.msk.f32.gmra.mxu1 %vm771_vm1, %v4768_v33 }
 0x19e   :  { %v4200_v36 = vpop.f32.mrf.mxu1 }
 0x19f   :  { %v1036_v38 = vadd.f32 %v4200_v36, %v5762_v41 }
 0x1a0   :  { %v1030_v17 = vpop.f32.mrf.mxu1 }
 0x1a1   :  { %v1031_v39 = vadd.f32 %v5762_v41, %v1030_v17 }
 0x1a2   :  { %v4203_v40 = vpop.f32.mrf.mxu1 }
 0x1a3   :  { %4769 = vtanh.f32 %v1031_v39  ;;  %v1046_v59 = vadd.f32 %v4203_v40, %v5762_v41 }
 0x1a4   :  { %4771 = vtanh.f32 %v1036_v38  ;;  %v1040_v42 = vpop.f32.mrf.mxu1 }
 0x1a5   :  { %v1041_v37 = vadd.f32 %v5762_v41, %v1040_v42 }
 0x1a6   :  { %v4206_v9 = vpop.f32.mrf.mxu1 }
 0x1a7   :  { %4773 = vtanh.f32 %v1041_v37  ;;  %v1056_v44 = vadd.f32 %v4206_v9, %v5762_v41 }
 0x1a8   :  { %4775 = vtanh.f32 %v1046_v59  ;;  %v1050_v46 = vpop.f32.mrf.mxu1 }
 0x1a9   :  { %v1051_v47 = vadd.f32 %v5762_v41, %v1050_v46 }
 0x1aa   :  { %v4209_v48 = vpop.f32.mrf.mxu1 }
 0x1ab   :  { %4777 = vtanh.f32 %v1051_v47  ;;  %v1066_v49 = vadd.f32 %v4209_v48, %v5762_v41 }
 0x1ac   :  { %4779 = vtanh.f32 %v1056_v44  ;;  %v1060_v51 = vpop.f32.mrf.mxu1 }
 0x1ad   :  { %v1061_v27 = vadd.f32 %v5762_v41, %v1060_v51 }
 0x1ae   :  { %v4212_v52 = vpop.f32.mrf.mxu1 }
 0x1af   :  { %4781 = vtanh.f32 %v1061_v27  ;;  %v1076_v55 = vadd.f32 %v4212_v52, %v5762_v41 }
 0x1b0   :  { %v4770_v45 = vpop.eup %4769  ;;  %4783 = vtanh.f32 %v1066_v49  ;;  %v1070_v56 = vpop.f32.mrf.mxu1 }
 0x1b1   :  { %v4772_v58 = vpop.eup %4771  ;;  %v1071_v60 = vadd.f32 %v5762_v41, %v1070_v56  ;;  %4310 = vmatprep.mubr.msk.f32.mxu0 %vm771_vm1, %v4770_v45 }
 0x1b2   :  { %v4215_v62 = vpop.f32.mrf.mxu1  ;;  %4311 = vmatmul.mubr.msk.f32.vlgmr.msra.gmra.mxu0 %vm771_vm1, %v4772_v58 }
 0x1b3   :  { %4785 = vtanh.f32 %v1071_v60  ;;  %v1086_v0 = vadd.f32 %v4215_v62, %v5762_v41 }
 0x1b4   :  { %v4774_v63 = vpop.eup %4773  ;;  %4787 = vtanh.f32 %v1076_v55  ;;  %v1080_v1 = vpop.f32.mrf.mxu1 }
 0x1b5   :  { %v4776_v3 = vpop.eup %4775  ;;  %v1081_v4 = vadd.f32 %v5762_v41, %v1080_v1  ;;  %4313 = vmatprep.mubr.msk.f32.mxu0 %vm771_vm1, %v4774_v63 }
 0x1b6   :  { %v4218_v5 = vpop.f32.mrf.mxu1  ;;  %4314 = vmatmul.mubr.msk.f32.gmra.mxu0 %vm771_vm1, %v4776_v3 }
 0x1b7   :  { %4789 = vtanh.f32 %v1081_v4  ;;  %v1096_v7 = vadd.f32 %v4218_v5, %v5762_v41 }
 0x1b8   :  { %v4778_v6 = vpop.eup %4777  ;;  %4791 = vtanh.f32 %v1086_v0  ;;  %v1090_v8 = vpop.f32.mrf.mxu1 }
 0x1b9   :  { %v4780_v22 = vpop.eup %4779  ;;  %v1091_v10 = vadd.f32 %v5762_v41, %v1090_v8  ;;  %4316 = vmatprep.mubr.msk.f32.mxu0 %vm771_vm1, %v4778_v6 }
 0x1ba   :  { %v4221_v11 = vpop.f32.mrf.mxu1  ;;  %4317 = vmatmul.mubr.msk.f32.gmra.mxu0 %vm771_vm1, %v4780_v22 }
 0x1bb   :  { %4793 = vtanh.f32 %v1091_v10  ;;  %v1106_v14 = vadd.f32 %v4221_v11, %v5762_v41 }
 0x1bc   :  { %v4782_v13 = vpop.eup %4781  ;;  %4795 = vtanh.f32 %v1096_v7  ;;  %v1100_v15 = vpop.f32.mrf.mxu1 }
 0x1bd   :  { %v4784_v16 = vpop.eup %4783  ;;  %v1101_v28 = vadd.f32 %v5762_v41, %v1100_v15  ;;  %4319 = vmatprep.mubr.msk.f32.mxu0 %vm771_vm1, %v4782_v13 }
 0x1be   :  { %v4224_v19 = vpop.f32.mrf.mxu1  ;;  %4320 = vmatmul.mubr.msk.f32.gmra.mxu0 %vm771_vm1, %v4784_v16 }
 0x1bf   :  { %4797 = vtanh.f32 %v1101_v28  ;;  %v1116_v18 = vadd.f32 %v4224_v19, %v5762_v41 }
 0x1c0   :  { %v4786_v20 = vpop.eup %4785  ;;  %4799 = vtanh.f32 %v1106_v14  ;;  %v1110_v21 = vpop.f32.mrf.mxu1 }
 0x1c1   :  { %v4788_v34 = vpop.eup %4787  ;;  %v1111_v23 = vadd.f32 %v5762_v41, %v1110_v21  ;;  %4322 = vmatprep.mubr.msk.f32.mxu0 %vm771_vm1, %v4786_v20 }
 0x1c2   :  { %v4227_v25 = vpop.f32.mrf.mxu1  ;;  %4323 = vmatmul.mubr.msk.f32.gmra.mxu0 %vm771_vm1, %v4788_v34 }
 0x1c3   :  { %4801 = vtanh.f32 %v1111_v23  ;;  %v1126_v26 = vadd.f32 %v4227_v25, %v5762_v41 }
 0x1c4   :  { %v4790_v24 = vpop.eup %4789  ;;  %4803 = vtanh.f32 %v1116_v18  ;;  %v1120_v29 = vpop.f32.mrf.mxu1 }
 0x1c5   :  { %v4792_v50 = vpop.eup %4791  ;;  %v1121_v31 = vadd.f32 %v5762_v41, %v1120_v29  ;;  %4325 = vmatprep.mubr.msk.f32.mxu0 %vm771_vm1, %v4790_v24 }
 0x1c6   :  { %v4230_v32 = vpop.f32.mrf.mxu1  ;;  %4326 = vmatmul.mubr.msk.f32.gmra.mxu0 %vm771_vm1, %v4792_v50 }
 0x1c7   :  { %4805 = vtanh.f32 %v1121_v31  ;;  %v1136_v12 = vadd.f32 %v4230_v32, %v5762_v41 }
 0x1c8   :  { %v4794_v30 = vpop.eup %4793  ;;  %4807 = vtanh.f32 %v1126_v26  ;;  %v1130_v33 = vpop.f32.mrf.mxu1 }
 0x1c9   :  { %v4796_v2 = vpop.eup %4795  ;;  %v1131_v35 = vadd.f32 %v5762_v41, %v1130_v33  ;;  %4328 = vmatprep.mubr.msk.f32.mxu0 %vm771_vm1, %v4794_v30 }
 0x1ca   :  { %v4233_v36 = vpop.f32.mrf.mxu1  ;;  %4329 = vmatmul.mubr.msk.f32.gmra.mxu0 %vm771_vm1, %v4796_v2 }
 0x1cb   :  { %4809 = vtanh.f32 %v1131_v35  ;;  %v1146_v17 = vadd.f32 %v4233_v36, %v5762_v41 }
 0x1cc   :  { %v4798_v38 = vpop.eup %4797  ;;  %4811 = vtanh.f32 %v1136_v12  ;;  %v1140_v39 = vpop.f32.mrf.mxu1 }
 0x1cd   :  { %v4800_v40 = vpop.eup %4799  ;;  %v1141_v59 = vadd.f32 %v5762_v41, %v1140_v39  ;;  %4331 = vmatprep.mubr.msk.f32.mxu0 %vm771_vm1, %v4798_v38 }
 0x1ce   :  { %v4236_v42 = vpop.f32.mrf.mxu1  ;;  %4332 = vmatmul.mubr.msk.f32.gmra.mxu0 %vm771_vm1, %v4800_v40  ;;  %v2069_v40 = vld [vmem:[%s6279_s7] sm:$0xff] }
 0x1cf   :  { %4813 = vtanh.f32 %v1141_v59  ;;  %v1156_v43 = vadd.f32 %v4236_v42, %v5762_v41  ;;  %4420 = vmatprep.subr.mxu1 %v2069_v40 }
 0x1d0   :  { %v4802_v37 = vpop.eup %4801  ;;  %4815 = vtanh.f32 %v1146_v17  ;;  %v1150_v9 = vpop.f32.mrf.mxu1  ;;  %4421 = vmatpush3.msra.mxu1 %v2069_v40 }
 0x1d1   :  { %v4804_v44 = vpop.eup %4803  ;;  %v1151_v46 = vadd.f32 %v5762_v41, %v1150_v9  ;;  %4334 = vmatprep.mubr.msk.f32.mxu0 %vm771_vm1, %v4802_v37 }
 0x1d2   :  { %v4239_v47 = vpop.f32.mrf.mxu1  ;;  %4335 = vmatmul.mubr.msk.f32.gmra.mxu0 %vm771_vm1, %v4804_v44 }
 0x1d3   :  { %4817 = vtanh.f32 %v1151_v46  ;;  %v1166_v49 = vadd.f32 %v4239_v47, %v5762_v41 }
 0x1d4   :  { %v4806_v48 = vpop.eup %4805  ;;  %4819 = vtanh.f32 %v1156_v43  ;;  %v1160_v51 = vpop.f32.mrf.mxu1 }
 0x1d5   :  { %v4808_v27 = vpop.eup %4807  ;;  %v1161_v52 = vadd.f32 %v5762_v41, %v1160_v51  ;;  %4337 = vmatprep.mubr.msk.f32.mxu0 %vm771_vm1, %v4806_v48 }
 0x1d6   :  { %v4242_v53 = vpop.f32.mrf.mxu1  ;;  %4338 = vmatmul.mubr.msk.f32.gmra.mxu0 %vm771_vm1, %v4808_v27 }
 0x1d7   :  { %4821 = vtanh.f32 %v1161_v52  ;;  %v1176_v45 = vadd.f32 %v4242_v53, %v5762_v41 }
 0x1d8   :  { %v4810_v54 = vpop.eup %4809  ;;  %4823 = vtanh.f32 %v1166_v49  ;;  %v1170_v55 = vpop.f32.mrf.mxu1 }
 0x1d9   :  { %v4812_v56 = vpop.eup %4811  ;;  %v1171_v57 = vadd.f32 %v5762_v41, %v1170_v55  ;;  %4340 = vmatprep.mubr.msk.f32.mxu0 %vm771_vm1, %v4810_v54 }
 0x1da   :  { %v4245_v58 = vpop.f32.mrf.mxu1  ;;  %4341 = vmatmul.mubr.msk.f32.gmra.mxu0 %vm771_vm1, %v4812_v56 }
 0x1db   :  { %4825 = vtanh.f32 %v1171_v57  ;;  %v1186_v62 = vadd.f32 %v4245_v58, %v5762_v41 }
 0x1dc   :  { %v4814_v60 = vpop.eup %4813  ;;  %4827 = vtanh.f32 %v1176_v45  ;;  %v1180_v61 = vpop.f32.mrf.mxu1 }
 0x1dd   :  { %v4816_v63 = vpop.eup %4815  ;;  %v1181_v0 = vadd.f32 %v5762_v41, %v1180_v61  ;;  %4343 = vmatprep.mubr.msk.f32.mxu0 %vm771_vm1, %v4814_v60 }
 0x1de   :  { %v4248_v1 = vpop.f32.mrf.mxu1  ;;  %4344 = vmatmul.mubr.msk.f32.gmra.mxu0 %vm771_vm1, %v4816_v63 }
 0x1df   :  { %4829 = vtanh.f32 %v1181_v0  ;;  %v1196_v4 = vadd.f32 %v4248_v1, %v5762_v41 }
 0x1e0   :  { %v4818_v3 = vpop.eup %4817  ;;  %4831 = vtanh.f32 %v1186_v62  ;;  %v1190_v5 = vpop.f32.mrf.mxu1 }
 0x1e1   :  { %v4820_v6 = vpop.eup %4819  ;;  %v1191_v7 = vadd.f32 %v5762_v41, %v1190_v5  ;;  %4346 = vmatprep.mubr.msk.f32.mxu0 %vm771_vm1, %v4818_v3 }
 0x1e2   :  { %v4251_v8 = vpop.f32.mrf.mxu1  ;;  %4347 = vmatmul.mubr.msk.f32.gmra.mxu0 %vm771_vm1, %v4820_v6 }
 0x1e3   :  { %4833 = vtanh.f32 %v1191_v7  ;;  %v1206_v10 = vadd.f32 %v4251_v8, %v5762_v41 }
 0x1e4   :  { %v4822_v22 = vpop.eup %4821  ;;  %4835 = vtanh.f32 %v1196_v4  ;;  %v1200_v11 = vpop.f32.mrf.mxu1 }
 0x1e5   :  { %v4824_v13 = vpop.eup %4823  ;;  %v1201_v14 = vadd.f32 %v5762_v41, %v1200_v11  ;;  %4349 = vmatprep.mubr.msk.f32.mxu0 %vm771_vm1, %v4822_v22 }
 0x1e6   :  { %v4254_v15 = vpop.f32.mrf.mxu1  ;;  %4350 = vmatmul.mubr.msk.f32.gmra.mxu0 %vm771_vm1, %v4824_v13 }
 0x1e7   :  { %4837 = vtanh.f32 %v1201_v14  ;;  %v1216_v28 = vadd.f32 %v4254_v15, %v5762_v41 }
 0x1e8   :  { %v4826_v16 = vpop.eup %4825  ;;  %4839 = vtanh.f32 %v1206_v10  ;;  %v1210_v19 = vpop.f32.mrf.mxu1 }
 0x1e9   :  { %v4828_v20 = vpop.eup %4827  ;;  %v1211_v18 = vadd.f32 %v5762_v41, %v1210_v19  ;;  %4352 = vmatprep.mubr.msk.f32.mxu0 %vm771_vm1, %v4826_v16 }
 0x1ea   :  { %v4257_v21 = vpop.f32.mrf.mxu1  ;;  %4353 = vmatmul.mubr.msk.f32.gmra.mxu0 %vm771_vm1, %v4828_v20 }
 0x1eb   :  { %4841 = vtanh.f32 %v1211_v18  ;;  %v1226_v23 = vadd.f32 %v4257_v21, %v5762_v41 }
 0x1ec   :  { %v4830_v34 = vpop.eup %4829  ;;  %4843 = vtanh.f32 %v1216_v28  ;;  %v1220_v25 = vpop.f32.mrf.mxu1 }
 0x1ed   :  { %v4832_v24 = vpop.eup %4831  ;;  %v1221_v26 = vadd.f32 %v5762_v41, %v1220_v25  ;;  %4355 = vmatprep.mubr.msk.f32.mxu0 %vm771_vm1, %v4830_v34 }
 0x1ee   :  { %v4260_v29 = vpop.f32.mrf.mxu1  ;;  %4356 = vmatmul.mubr.msk.f32.gmra.mxu0 %vm771_vm1, %v4832_v24 }
 0x1ef   :  { %4845 = vtanh.f32 %v1221_v26  ;;  %v1236_v31 = vadd.f32 %v4260_v29, %v5762_v41 }
 0x1f0   :  { %v4834_v50 = vpop.eup %4833  ;;  %4847 = vtanh.f32 %v1226_v23  ;;  %v1230_v32 = vpop.f32.mrf.mxu1 }
 0x1f1   :  { %v4836_v30 = vpop.eup %4835  ;;  %v1231_v12 = vadd.f32 %v5762_v41, %v1230_v32  ;;  %4358 = vmatprep.mubr.msk.f32.mxu0 %vm771_vm1, %v4834_v50 }
 0x1f2   :  { %v4263_v33 = vpop.f32.mrf.mxu1  ;;  %4359 = vmatmul.mubr.msk.f32.gmra.mxu0 %vm771_vm1, %v4836_v30 }
 0x1f3   :  { %4849 = vtanh.f32 %v1231_v12  ;;  %v1246_v35 = vadd.f32 %v4263_v33, %v5762_v41 }
 0x1f4   :  { %v4838_v2 = vpop.eup %4837  ;;  %4851 = vtanh.f32 %v1236_v31  ;;  %v1240_v36 = vpop.f32.mrf.mxu1 }
 0x1f5   :  { %v4840_v38 = vpop.eup %4839  ;;  %v1241_v17 = vadd.f32 %v5762_v41, %v1240_v36  ;;  %4361 = vmatprep.mubr.msk.f32.mxu0 %vm771_vm1, %v4838_v2 }
 0x1f6   :  { %v4266_v39 = vpop.f32.mrf.mxu1  ;;  %4362 = vmatmul.mubr.msk.f32.gmra.mxu0 %vm771_vm1, %v4840_v38 }
 0x1f7   :  { %4853 = vtanh.f32 %v1241_v17  ;;  %v1256_v42 = vadd.f32 %v4266_v39, %v5762_v41 }
 0x1f8   :  { %v4842_v59 = vpop.eup %4841  ;;  %4855 = vtanh.f32 %v1246_v35  ;;  %v1250_v37 = vpop.f32.mrf.mxu1 }
 0x1f9   :  { %v4844_v43 = vpop.eup %4843  ;;  %v1251_v9 = vadd.f32 %v5762_v41, %v1250_v37  ;;  %4364 = vmatprep.mubr.msk.f32.mxu0 %vm771_vm1, %v4842_v59 }
 0x1fa   :  { %v4269_v44 = vpop.f32.mrf.mxu1  ;;  %4365 = vmatmul.mubr.msk.f32.gmra.mxu0 %vm771_vm1, %v4844_v43  ;;  %v2732_v43 = vld [vmem:[%s6281_s9 + $0x38] sm:$0xff] }
 0x1fb   :  { %4857 = vtanh.f32 %v1251_v9  ;;  %v1266_v47 = vadd.f32 %v4269_v44, %v5762_v41  ;;  %4518 = vmatprep.subr.mxu0 %v2732_v43  ;;  %v2731_v9 = vld [vmem:[%s6281_s9 + $0x30] sm:$0xff]  ;;  %v5919_v44 = vld [vmem:[%s6278_s6] ss:$0 sm:$0xff] }
 0x1fc   :  { %v4846_v46 = vpop.eup %4845  ;;  %4859 = vtanh.f32 %v1256_v42  ;;  %v1260_v48 = vpop.f32.mrf.mxu1  ;;  %4519 = vmatpush3.msra.mxu0 %v2732_v43 }
 0x1fd   :  { %v4848_v49 = vpop.eup %4847  ;;  %v1261_v51 = vadd.f32 %v5762_v41, %v1260_v48  ;;  %4367 = vmatprep.mubr.msk.f32.mxu0 %vm771_vm1, %v4846_v46  ;;  %4520 = vmatprep.subr.mxu0 %v2731_v9 }
 0x1fe   :  { %v4272_v27 = vpop.f32.mrf.mxu1  ;;  %4368 = vmatmul.mubr.msk.f32.gmra.mxu0 %vm771_vm1, %v4848_v49 }
 0x1ff   :  { %4861 = vtanh.f32 %v1261_v51  ;;  %v1276_v53 = vadd.f32 %v4272_v27, %v5762_v41  ;;  %4521 = vmatpush3.msra.mxu0 %v2731_v9 }
 0x200   :  { %v4850_v52 = vpop.eup %4849  ;;  %4863 = vtanh.f32 %v1266_v47  ;;  %v1270_v54 = vpop.f32.mrf.mxu1 }
 0x201   :  { %v4852_v45 = vpop.eup %4851  ;;  %v1271_v55 = vadd.f32 %v5762_v41, %v1270_v54  ;;  %4370 = vmatprep.mubr.msk.f32.mxu0 %vm771_vm1, %v4850_v52  ;;  %v2730_v54 = vld [vmem:[%s6281_s9 + $0x28] sm:$0xff] }
 0x202   :  { %v4275_v56 = vpop.f32.mrf.mxu1  ;;  %4371 = vmatmul.mubr.msk.f32.gmra.mxu0 %vm771_vm1, %v4852_v45  ;;  %4522 = vmatprep.subr.mxu0 %v2730_v54 }
 0x203   :  { %4865 = vtanh.f32 %v1271_v55  ;;  %v1286_v58 = vadd.f32 %v4275_v56, %v5762_v41  ;;  %4523 = vmatpush3.msra.mxu0 %v2730_v54 }
 0x204   :  { %v4854_v57 = vpop.eup %4853  ;;  %4867 = vtanh.f32 %v1276_v53  ;;  %v1280_v60 = vpop.f32.mrf.mxu1 }
 0x205   :  { %v4856_v62 = vpop.eup %4855  ;;  %v1281_v61 = vadd.f32 %v5762_v41, %v1280_v60  ;;  %4373 = vmatprep.mubr.msk.f32.mxu0 %vm771_vm1, %v4854_v57 }
 0x206   :  { %v4278_v63 = vpop.f32.mrf.mxu1  ;;  %4374 = vmatmul.mubr.msk.f32.gmra.mxu0 %vm771_vm1, %v4856_v62 }
 0x207   :  { %4869 = vtanh.f32 %v1281_v61  ;;  %v1296_v1 = vadd.f32 %v4278_v63, %v5762_v41 }
 0x208   :  { %v4858_v0 = vpop.eup %4857  ;;  %4871 = vtanh.f32 %v1286_v58  ;;  %v1290_v3 = vpop.f32.mrf.mxu1 }
 0x209   :  { %v4860_v4 = vpop.eup %4859  ;;  %v1291_v5 = vadd.f32 %v5762_v41, %v1290_v3  ;;  %4376 = vmatprep.mubr.msk.f32.mxu0 %vm771_vm1, %v4858_v0  ;;  %v2729_v0 = vld [vmem:[%s6281_s9 + $0x20] sm:$0xff] }
 0x20a   :  { %v4281_v6 = vpop.f32.mrf.mxu1  ;;  %4377 = vmatmul.mubr.msk.f32.gmra.mxu0 %vm771_vm1, %v4860_v4  ;;  %4524 = vmatprep.subr.mxu0 %v2729_v0 }
 0x20b   :  { %4873 = vtanh.f32 %v1291_v5  ;;  %v1306_v8 = vadd.f32 %v4281_v6, %v5762_v41  ;;  %4525 = vmatpush3.msra.mxu0 %v2729_v0  ;;  %v2727_v6 = vld [vmem:[%s6281_s9 + $0x10] sm:$0xff] }
 0x20c   :  { %v4862_v7 = vpop.eup %4861  ;;  %4875 = vtanh.f32 %v1296_v1  ;;  %v1300_v22 = vpop.f32.mrf.mxu1  ;;  %v2728_v1 = vld [vmem:[%s6281_s9 + $0x18] sm:$0xff] }
 0x20d   :  { %v4864_v10 = vpop.eup %4863  ;;  %v1301_v11 = vadd.f32 %v5762_v41, %v1300_v22  ;;  %4379 = vmatprep.mubr.msk.f32.mxu0 %vm771_vm1, %v4862_v7  ;;  %4526 = vmatprep.subr.mxu0 %v2728_v1 }
 0x20e   :  { %v4284_v13 = vpop.f32.mrf.mxu1  ;;  %4380 = vmatmul.mubr.msk.f32.gmra.mxu0 %vm771_vm1, %v4864_v10  ;;  %v2726_v10 = vld [vmem:[%s6281_s9 + $0x8] sm:$0xff] }
 0x20f   :  { %4877 = vtanh.f32 %v1301_v11  ;;  %v1316_v15 = vadd.f32 %v4284_v13, %v5762_v41  ;;  %4527 = vmatpush3.msra.mxu0 %v2728_v1 }
 0x210   :  { %v4866_v14 = vpop.eup %4865  ;;  %4879 = vtanh.f32 %v1306_v8  ;;  %v1310_v16 = vpop.f32.mrf.mxu1  ;;  %4528 = vmatprep.subr.mxu0 %v2727_v6 }
 0x211   :  { %v4868_v28 = vpop.eup %4867  ;;  %v1311_v19 = vadd.f32 %v5762_v41, %v1310_v16  ;;  %4382 = vmatprep.mubr.msk.f32.mxu0 %vm771_vm1, %v4866_v14  ;;  %4529 = vmatpush3.msra.mxu0 %v2727_v6 }
 0x212   :  { %v4287_v20 = vpop.f32.mrf.mxu1  ;;  %4383 = vmatmul.mubr.msk.f32.gmra.mxu0 %vm771_vm1, %v4868_v28  ;;  %4530 = vmatprep.subr.mxu0 %v2726_v10 }
 0x213   :  { %4881 = vtanh.f32 %v1311_v19  ;;  %v1326_v21 = vadd.f32 %v4287_v20, %v5762_v41  ;;  %4531 = vmatpush3.msra.mxu0 %v2726_v10 }
 0x214   :  { %v4870_v18 = vpop.eup %4869  ;;  %4883 = vtanh.f32 %v1316_v15  ;;  %v1320_v34 = vpop.f32.mrf.mxu1 }
 0x215   :  { %v4872_v23 = vpop.eup %4871  ;;  %v1321_v25 = vadd.f32 %v5762_v41, %v1320_v34  ;;  %4385 = vmatprep.mubr.msk.f32.mxu0 %vm771_vm1, %v4870_v18 }
 0x216   :  { %v4290_v24 = vpop.f32.mrf.mxu1  ;;  %4386 = vmatmul.mubr.msk.f32.gmra.mxu0 %vm771_vm1, %v4872_v23 }
 0x217   :  { %4885 = vtanh.f32 %v1321_v25  ;;  %v1336_v29 = vadd.f32 %v4290_v24, %v5762_v41 }
 0x218   :  { %v4874_v26 = vpop.eup %4873  ;;  %4887 = vtanh.f32 %v1326_v21  ;;  %v1330_v50 = vpop.f32.mrf.mxu1 }
 0x219   :  { %v4876_v31 = vpop.eup %4875  ;;  %v1331_v32 = vadd.f32 %v5762_v41, %v1330_v50  ;;  %4388 = vmatprep.mubr.msk.f32.mxu0 %vm771_vm1, %v4874_v26 }
 0x21a   :  { %v4293_v30 = vpop.f32.mrf.mxu1  ;;  %4389 = vmatmul.mubr.msk.f32.gmra.mxu0 %vm771_vm1, %v4876_v31 }
 0x21b   :  { %4889 = vtanh.f32 %v1331_v32  ;;  %v1346_v33 = vadd.f32 %v4293_v30, %v5762_v41 }
 0x21c   :  { %v4878_v12 = vpop.eup %4877  ;;  %4891 = vtanh.f32 %v1336_v29  ;;  %v1340_v2 = vpop.f32.mrf.mxu1 }
 0x21d   :  { %v4880_v35 = vpop.eup %4879  ;;  %v1341_v36 = vadd.f32 %v5762_v41, %v1340_v2  ;;  %4391 = vmatprep.mubr.msk.f32.mxu0 %vm771_vm1, %v4878_v12 }
 0x21e   :  { %4392 = vmatmul.mubr.msk.f32.gmra.mxu0 %vm771_vm1, %v4880_v35 }
 0x21f   :  { %4893 = vtanh.f32 %v1341_v36 }
 0x220   :  { %v4882_v38 = vpop.eup %4881  ;;  %4895 = vtanh.f32 %v1346_v33 }
 0x221   :  { %v4884_v17 = vpop.eup %4883  ;;  %4394 = vmatprep.mubr.msk.f32.mxu0 %vm771_vm1, %v4882_v38 }
 0x222   :  { %4395 = vmatmul.mubr.msk.f32.gmra.mxu0 %vm771_vm1, %v4884_v17 }
 0x224   :  { %v4886_v39 = vpop.eup %4885 }
 0x225   :  { %v4888_v40 = vpop.eup %4887  ;;  %4397 = vmatprep.mubr.msk.f32.mxu0 %vm771_vm1, %v4886_v39 }
 0x226   :  { %4398 = vmatmul.mubr.msk.f32.gmra.mxu0 %vm771_vm1, %v4888_v40 }
 0x228   :  { %v4890_v59 = vpop.eup %4889 }
 0x229   :  { %v4892_v41 = vpop.eup %4891  ;;  %4400 = vmatprep.mubr.msk.f32.mxu0 %vm771_vm1, %v4890_v59 }
 0x22a   :  { %4401 = vmatmul.mubr.msk.f32.gmra.mxu0 %vm771_vm1, %v4892_v41 }
 0x22c   :  { %v4894_v42 = vpop.eup %4893 }
 0x22d   :  { %v4896_v37 = vpop.eup %4895  ;;  %4403 = vmatprep.mubr.msk.f32.mxu0 %vm771_vm1, %v4894_v42 }
 0x22e   :  { %4404 = vmatmul.mubr.msk.f32.gmra.mxu0 %vm771_vm1, %v4896_v37 }
 0x272   :  { %v4312_v46 = vpop.f32.mrf.mxu0 }
 0x273   :  { %v1692_v47 = vadd.f32 %v4312_v46, %v5919_v44 }
 0x274   :  { %v1686_v48 = vpop.f32.mrf.mxu0 }
 0x275   :  { %v1687_v49 = vadd.f32 %v5919_v44, %v1686_v48 }
 0x276   :  { %v4315_v51 = vpop.f32.mrf.mxu0 }
 0x277   :  { %4897 = vtanh.f32 %v1687_v49  ;;  %v1702_v27 = vadd.f32 %v4315_v51, %v5919_v44 }
 0x278   :  { %4899 = vtanh.f32 %v1692_v47  ;;  %v1696_v52 = vpop.f32.mrf.mxu0 }
 0x279   :  { %v1697_v53 = vadd.f32 %v5919_v44, %v1696_v52 }
 0x27a   :  { %v4318_v45 = vpop.f32.mrf.mxu0 }
 0x27b   :  { %4901 = vtanh.f32 %v1697_v53  ;;  %v1712_v55 = vadd.f32 %v4318_v45, %v5919_v44 }
 0x27c   :  { %4903 = vtanh.f32 %v1702_v27  ;;  %v1706_v56 = vpop.f32.mrf.mxu0 }
 0x27d   :  { %v1707_v57 = vadd.f32 %v5919_v44, %v1706_v56 }
 0x27e   :  { %v4321_v58 = vpop.f32.mrf.mxu0 }
 0x27f   :  { %4905 = vtanh.f32 %v1707_v57  ;;  %v1722_v60 = vadd.f32 %v4321_v58, %v5919_v44 }
 0x280   :  { %4907 = vtanh.f32 %v1712_v55  ;;  %v1716_v62 = vpop.f32.mrf.mxu0 }
 0x281   :  { %v1717_v61 = vadd.f32 %v5919_v44, %v1716_v62 }
 0x282   :  { %v4324_v63 = vpop.f32.mrf.mxu0 }
 0x283   :  { %4909 = vtanh.f32 %v1717_v61  ;;  %v1732_v4 = vadd.f32 %v4324_v63, %v5919_v44 }
 0x284   :  { %v4898_v3 = vpop.eup %4897  ;;  %4911 = vtanh.f32 %v1722_v60  ;;  %v1726_v5 = vpop.f32.mrf.mxu0 }
 0x285   :  { %v4900_v7 = vpop.eup %4899  ;;  %v1727_v8 = vadd.f32 %v5919_v44, %v1726_v5  ;;  %4422 = vmatprep.mubr.msk.f32.mxu1 %vm771_vm1, %v4898_v3 }
 0x286   :  { %v4327_v22 = vpop.f32.mrf.mxu0  ;;  %4423 = vmatmul.mubr.msk.f32.vlgmr.msra.gmra.mxu1 %vm771_vm1, %v4900_v7 }
 0x287   :  { %4913 = vtanh.f32 %v1727_v8  ;;  %v1742_v13 = vadd.f32 %v4327_v22, %v5919_v44 }
 0x288   :  { %v4902_v11 = vpop.eup %4901  ;;  %4915 = vtanh.f32 %v1732_v4  ;;  %v1736_v14 = vpop.f32.mrf.mxu0 }
 0x289   :  { %v4904_v15 = vpop.eup %4903  ;;  %v1737_v16 = vadd.f32 %v5919_v44, %v1736_v14  ;;  %4425 = vmatprep.mubr.msk.f32.mxu1 %vm771_vm1, %v4902_v11 }
 0x28a   :  { %v4330_v28 = vpop.f32.mrf.mxu0  ;;  %4426 = vmatmul.mubr.msk.f32.gmra.mxu1 %vm771_vm1, %v4904_v15 }
 0x28b   :  { %4917 = vtanh.f32 %v1737_v16  ;;  %v1752_v20 = vadd.f32 %v4330_v28, %v5919_v44 }
 0x28c   :  { %v4906_v19 = vpop.eup %4905  ;;  %4919 = vtanh.f32 %v1742_v13  ;;  %v1746_v18 = vpop.f32.mrf.mxu0 }
 0x28d   :  { %v4908_v21 = vpop.eup %4907  ;;  %v1747_v34 = vadd.f32 %v5919_v44, %v1746_v18  ;;  %4428 = vmatprep.mubr.msk.f32.mxu1 %vm771_vm1, %v4906_v19 }
 0x28e   :  { %v4333_v23 = vpop.f32.mrf.mxu0  ;;  %4429 = vmatmul.mubr.msk.f32.gmra.mxu1 %vm771_vm1, %v4908_v21 }
 0x28f   :  { %4921 = vtanh.f32 %v1747_v34  ;;  %v1762_v24 = vadd.f32 %v4333_v23, %v5919_v44 }
 0x290   :  { %v4910_v25 = vpop.eup %4909  ;;  %4923 = vtanh.f32 %v1752_v20  ;;  %v1756_v26 = vpop.f32.mrf.mxu0 }
 0x291   :  { %v4912_v29 = vpop.eup %4911  ;;  %v1757_v50 = vadd.f32 %v5919_v44, %v1756_v26  ;;  %4431 = vmatprep.mubr.msk.f32.mxu1 %vm771_vm1, %v4910_v25 }
 0x292   :  { %v4336_v31 = vpop.f32.mrf.mxu0  ;;  %4432 = vmatmul.mubr.msk.f32.gmra.mxu1 %vm771_vm1, %v4912_v29 }
 0x293   :  { %4925 = vtanh.f32 %v1757_v50  ;;  %v1772_v30 = vadd.f32 %v4336_v31, %v5919_v44 }
 0x294   :  { %v4914_v32 = vpop.eup %4913  ;;  %4927 = vtanh.f32 %v1762_v24  ;;  %v1766_v12 = vpop.f32.mrf.mxu0 }
 0x295   :  { %v4916_v33 = vpop.eup %4915  ;;  %v1767_v2 = vadd.f32 %v5919_v44, %v1766_v12  ;;  %4434 = vmatprep.mubr.msk.f32.mxu1 %vm771_vm1, %v4914_v32 }
 0x296   :  { %v4339_v35 = vpop.f32.mrf.mxu0  ;;  %4435 = vmatmul.mubr.msk.f32.gmra.mxu1 %vm771_vm1, %v4916_v33 }
 0x297   :  { %4929 = vtanh.f32 %v1767_v2  ;;  %v1782_v38 = vadd.f32 %v4339_v35, %v5919_v44 }
 0x298   :  { %v4918_v36 = vpop.eup %4917  ;;  %4931 = vtanh.f32 %v1772_v30  ;;  %v1776_v17 = vpop.f32.mrf.mxu0 }
 0x299   :  { %v4920_v39 = vpop.eup %4919  ;;  %v1777_v40 = vadd.f32 %v5919_v44, %v1776_v17  ;;  %4437 = vmatprep.mubr.msk.f32.mxu1 %vm771_vm1, %v4918_v36 }
 0x29a   :  { %v4342_v59 = vpop.f32.mrf.mxu0  ;;  %4438 = vmatmul.mubr.msk.f32.gmra.mxu1 %vm771_vm1, %v4920_v39 }
 0x29b   :  { %4933 = vtanh.f32 %v1777_v40  ;;  %v1792_v42 = vadd.f32 %v4342_v59, %v5919_v44 }
 0x29c   :  { %v4922_v41 = vpop.eup %4921  ;;  %4935 = vtanh.f32 %v1782_v38  ;;  %v1786_v37 = vpop.f32.mrf.mxu0 }
 0x29d   :  { %v4924_v43 = vpop.eup %4923  ;;  %v1787_v9 = vadd.f32 %v5919_v44, %v1786_v37  ;;  %4440 = vmatprep.mubr.msk.f32.mxu1 %vm771_vm1, %v4922_v41 }
 0x29e   :  { %v4345_v46 = vpop.f32.mrf.mxu0  ;;  %4441 = vmatmul.mubr.msk.f32.gmra.mxu1 %vm771_vm1, %v4924_v43 }
 0x29f   :  { %4937 = vtanh.f32 %v1787_v9  ;;  %v1802_v48 = vadd.f32 %v4345_v46, %v5919_v44 }
 0x2a0   :  { %v4926_v47 = vpop.eup %4925  ;;  %4939 = vtanh.f32 %v1792_v42  ;;  %v1796_v49 = vpop.f32.mrf.mxu0 }
 0x2a1   :  { %v4928_v51 = vpop.eup %4927  ;;  %v1797_v27 = vadd.f32 %v5919_v44, %v1796_v49  ;;  %4443 = vmatprep.mubr.msk.f32.mxu1 %vm771_vm1, %v4926_v47 }
 0x2a2   :  { %v4348_v52 = vpop.f32.mrf.mxu0  ;;  %4444 = vmatmul.mubr.msk.f32.gmra.mxu1 %vm771_vm1, %v4928_v51  ;;  %v2725_v51 = vld [vmem:[%s6281_s9] sm:$0xff] }
 0x2a3   :  { %4941 = vtanh.f32 %v1797_v27  ;;  %v1812_v54 = vadd.f32 %v4348_v52, %v5919_v44  ;;  %4532 = vmatprep.subr.mxu0 %v2725_v51 }
 0x2a4   :  { %v4930_v53 = vpop.eup %4929  ;;  %4943 = vtanh.f32 %v1802_v48  ;;  %v1806_v45 = vpop.f32.mrf.mxu0  ;;  %4533 = vmatpush3.msra.mxu0 %v2725_v51 }
 0x2a5   :  { %v4932_v55 = vpop.eup %4931  ;;  %v1807_v56 = vadd.f32 %v5919_v44, %v1806_v45  ;;  %4446 = vmatprep.mubr.msk.f32.mxu1 %vm771_vm1, %v4930_v53 }
 0x2a6   :  { %v4351_v57 = vpop.f32.mrf.mxu0  ;;  %4447 = vmatmul.mubr.msk.f32.gmra.mxu1 %vm771_vm1, %v4932_v55 }
 0x2a7   :  { %4945 = vtanh.f32 %v1807_v56  ;;  %v1822_v60 = vadd.f32 %v4351_v57, %v5919_v44 }
 0x2a8   :  { %v4934_v58 = vpop.eup %4933  ;;  %4947 = vtanh.f32 %v1812_v54  ;;  %v1816_v62 = vpop.f32.mrf.mxu0 }
 0x2a9   :  { %v4936_v61 = vpop.eup %4935  ;;  %v1817_v63 = vadd.f32 %v5919_v44, %v1816_v62  ;;  %4449 = vmatprep.mubr.msk.f32.mxu1 %vm771_vm1, %v4934_v58 }
 0x2aa   :  { %v4354_v0 = vpop.f32.mrf.mxu0  ;;  %4450 = vmatmul.mubr.msk.f32.gmra.mxu1 %vm771_vm1, %v4936_v61 }
 0x2ab   :  { %4949 = vtanh.f32 %v1817_v63  ;;  %v1832_v3 = vadd.f32 %v4354_v0, %v5919_v44 }
 0x2ac   :  { %v4938_v1 = vpop.eup %4937  ;;  %4951 = vtanh.f32 %v1822_v60  ;;  %v1826_v4 = vpop.f32.mrf.mxu0 }
 0x2ad   :  { %v4940_v5 = vpop.eup %4939  ;;  %v1827_v6 = vadd.f32 %v5919_v44, %v1826_v4  ;;  %4452 = vmatprep.mubr.msk.f32.mxu1 %vm771_vm1, %v4938_v1 }
 0x2ae   :  { %v4357_v7 = vpop.f32.mrf.mxu0  ;;  %4453 = vmatmul.mubr.msk.f32.gmra.mxu1 %vm771_vm1, %v4940_v5 }
 0x2af   :  { %4953 = vtanh.f32 %v1827_v6  ;;  %v1842_v22 = vadd.f32 %v4357_v7, %v5919_v44 }
 0x2b0   :  { %v4942_v8 = vpop.eup %4941  ;;  %4955 = vtanh.f32 %v1832_v3  ;;  %v1836_v10 = vpop.f32.mrf.mxu0 }
 0x2b1   :  { %v4944_v11 = vpop.eup %4943  ;;  %v1837_v13 = vadd.f32 %v5919_v44, %v1836_v10  ;;  %4455 = vmatprep.mubr.msk.f32.mxu1 %vm771_vm1, %v4942_v8 }
 0x2b2   :  { %v4360_v14 = vpop.f32.mrf.mxu0  ;;  %4456 = vmatmul.mubr.msk.f32.gmra.mxu1 %vm771_vm1, %v4944_v11 }
 0x2b3   :  { %4957 = vtanh.f32 %v1837_v13  ;;  %v1852_v16 = vadd.f32 %v4360_v14, %v5919_v44 }
 0x2b4   :  { %v4946_v15 = vpop.eup %4945  ;;  %4959 = vtanh.f32 %v1842_v22  ;;  %v1846_v28 = vpop.f32.mrf.mxu0 }
 0x2b5   :  { %v4948_v19 = vpop.eup %4947  ;;  %v1847_v20 = vadd.f32 %v5919_v44, %v1846_v28  ;;  %4458 = vmatprep.mubr.msk.f32.mxu1 %vm771_vm1, %v4946_v15 }
 0x2b6   :  { %v4363_v18 = vpop.f32.mrf.mxu0  ;;  %4459 = vmatmul.mubr.msk.f32.gmra.mxu1 %vm771_vm1, %v4948_v19 }
 0x2b7   :  { %4961 = vtanh.f32 %v1847_v20  ;;  %v1862_v34 = vadd.f32 %v4363_v18, %v5919_v44 }
 0x2b8   :  { %v4950_v21 = vpop.eup %4949  ;;  %4963 = vtanh.f32 %v1852_v16  ;;  %v1856_v23 = vpop.f32.mrf.mxu0 }
 0x2b9   :  { %v4952_v25 = vpop.eup %4951  ;;  %v1857_v24 = vadd.f32 %v5919_v44, %v1856_v23  ;;  %4461 = vmatprep.mubr.msk.f32.mxu1 %vm771_vm1, %v4950_v21 }
 0x2ba   :  { %v4366_v26 = vpop.f32.mrf.mxu0  ;;  %4462 = vmatmul.mubr.msk.f32.gmra.mxu1 %vm771_vm1, %v4952_v25 }
 0x2bb   :  { %4965 = vtanh.f32 %v1857_v24  ;;  %v1872_v50 = vadd.f32 %v4366_v26, %v5919_v44 }
 0x2bc   :  { %v4954_v29 = vpop.eup %4953  ;;  %4967 = vtanh.f32 %v1862_v34  ;;  %v1866_v31 = vpop.f32.mrf.mxu0 }
 0x2bd   :  { %v4956_v32 = vpop.eup %4955  ;;  %v1867_v30 = vadd.f32 %v5919_v44, %v1866_v31  ;;  %4464 = vmatprep.mubr.msk.f32.mxu1 %vm771_vm1, %v4954_v29 }
 0x2be   :  { %v4369_v12 = vpop.f32.mrf.mxu0  ;;  %4465 = vmatmul.mubr.msk.f32.gmra.mxu1 %vm771_vm1, %v4956_v32 }
 0x2bf   :  { %4969 = vtanh.f32 %v1867_v30  ;;  %v1882_v2 = vadd.f32 %v4369_v12, %v5919_v44 }
 0x2c0   :  { %v4958_v33 = vpop.eup %4957  ;;  %4971 = vtanh.f32 %v1872_v50  ;;  %v1876_v35 = vpop.f32.mrf.mxu0 }
 0x2c1   :  { %v4960_v36 = vpop.eup %4959  ;;  %v1877_v38 = vadd.f32 %v5919_v44, %v1876_v35  ;;  %4467 = vmatprep.mubr.msk.f32.mxu1 %vm771_vm1, %v4958_v33 }
 0x2c2   :  { %v4372_v17 = vpop.f32.mrf.mxu0  ;;  %4468 = vmatmul.mubr.msk.f32.gmra.mxu1 %vm771_vm1, %v4960_v36 }
 0x2c3   :  { %4973 = vtanh.f32 %v1877_v38  ;;  %v1892_v40 = vadd.f32 %v4372_v17, %v5919_v44 }
 0x2c4   :  { %v4962_v39 = vpop.eup %4961  ;;  %4975 = vtanh.f32 %v1882_v2  ;;  %v1886_v59 = vpop.f32.mrf.mxu0 }
 0x2c5   :  { %v4964_v41 = vpop.eup %4963  ;;  %v1887_v42 = vadd.f32 %v5919_v44, %v1886_v59  ;;  %4470 = vmatprep.mubr.msk.f32.mxu1 %vm771_vm1, %v4962_v39 }
 0x2c6   :  { %v4375_v37 = vpop.f32.mrf.mxu0  ;;  %4471 = vmatmul.mubr.msk.f32.gmra.mxu1 %vm771_vm1, %v4964_v41 }
 0x2c7   :  { %4977 = vtanh.f32 %v1887_v42  ;;  %v1902_v9 = vadd.f32 %v4375_v37, %v5919_v44 }
 0x2c8   :  { %v4966_v43 = vpop.eup %4965  ;;  %4979 = vtanh.f32 %v1892_v40  ;;  %v1896_v46 = vpop.f32.mrf.mxu0 }
 0x2c9   :  { %v4968_v47 = vpop.eup %4967  ;;  %v1897_v48 = vadd.f32 %v5919_v44, %v1896_v46  ;;  %4473 = vmatprep.mubr.msk.f32.mxu1 %vm771_vm1, %v4966_v43 }
 0x2ca   :  { %v4378_v49 = vpop.f32.mrf.mxu0  ;;  %4474 = vmatmul.mubr.msk.f32.gmra.mxu1 %vm771_vm1, %v4968_v47 }
 0x2cb   :  { %4981 = vtanh.f32 %v1897_v48  ;;  %v1912_v52 = vadd.f32 %v4378_v49, %v5919_v44 }
 0x2cc   :  { %v4970_v27 = vpop.eup %4969  ;;  %4983 = vtanh.f32 %v1902_v9  ;;  %v1906_v53 = vpop.f32.mrf.mxu0 }
 0x2cd   :  { %v4972_v54 = vpop.eup %4971  ;;  %v1907_v45 = vadd.f32 %v5919_v44, %v1906_v53  ;;  %4476 = vmatprep.mubr.msk.f32.mxu1 %vm771_vm1, %v4970_v27 }
 0x2ce   :  { %v4381_v55 = vpop.f32.mrf.mxu0  ;;  %4477 = vmatmul.mubr.msk.f32.gmra.mxu1 %vm771_vm1, %v4972_v54  ;;  %v6070_v54 = vld [vmem:[%s6280_s8] ss:$0 sm:$0xff] }
 0x2cf   :  { %4985 = vtanh.f32 %v1907_v45  ;;  %v1922_v57 = vadd.f32 %v4381_v55, %v5919_v44 }
 0x2d0   :  { %v4974_v56 = vpop.eup %4973  ;;  %4987 = vtanh.f32 %v1912_v52  ;;  %v1916_v58 = vpop.f32.mrf.mxu0 }
 0x2d1   :  { %v4976_v60 = vpop.eup %4975  ;;  %v1917_v62 = vadd.f32 %v5919_v44, %v1916_v58  ;;  %4479 = vmatprep.mubr.msk.f32.mxu1 %vm771_vm1, %v4974_v56 }
 0x2d2   :  { %v4384_v61 = vpop.f32.mrf.mxu0  ;;  %4480 = vmatmul.mubr.msk.f32.gmra.mxu1 %vm771_vm1, %v4976_v60 }
 0x2d3   :  { %4989 = vtanh.f32 %v1917_v62  ;;  %v1932_v0 = vadd.f32 %v4384_v61, %v5919_v44 }
 0x2d4   :  { %v4978_v63 = vpop.eup %4977  ;;  %4991 = vtanh.f32 %v1922_v57  ;;  %v1926_v1 = vpop.f32.mrf.mxu0 }
 0x2d5   :  { %v4980_v3 = vpop.eup %4979  ;;  %v1927_v4 = vadd.f32 %v5919_v44, %v1926_v1  ;;  %4482 = vmatprep.mubr.msk.f32.mxu1 %vm771_vm1, %v4978_v63 }
 0x2d6   :  { %v4387_v5 = vpop.f32.mrf.mxu0  ;;  %4483 = vmatmul.mubr.msk.f32.gmra.mxu1 %vm771_vm1, %v4980_v3 }
 0x2d7   :  { %4993 = vtanh.f32 %v1927_v4  ;;  %v1942_v7 = vadd.f32 %v4387_v5, %v5919_v44 }
 0x2d8   :  { %v4982_v6 = vpop.eup %4981  ;;  %4995 = vtanh.f32 %v1932_v0  ;;  %v1936_v8 = vpop.f32.mrf.mxu0 }
 0x2d9   :  { %v4984_v22 = vpop.eup %4983  ;;  %v1937_v10 = vadd.f32 %v5919_v44, %v1936_v8  ;;  %4485 = vmatprep.mubr.msk.f32.mxu1 %vm771_vm1, %v4982_v6 }
 0x2da   :  { %v4390_v11 = vpop.f32.mrf.mxu0  ;;  %4486 = vmatmul.mubr.msk.f32.gmra.mxu1 %vm771_vm1, %v4984_v22 }
 0x2db   :  { %4997 = vtanh.f32 %v1937_v10  ;;  %v1952_v14 = vadd.f32 %v4390_v11, %v5919_v44 }
 0x2dc   :  { %v4986_v13 = vpop.eup %4985  ;;  %4999 = vtanh.f32 %v1942_v7  ;;  %v1946_v15 = vpop.f32.mrf.mxu0 }
 0x2dd   :  { %v4988_v16 = vpop.eup %4987  ;;  %v1947_v28 = vadd.f32 %v5919_v44, %v1946_v15  ;;  %4488 = vmatprep.mubr.msk.f32.mxu1 %vm771_vm1, %v4986_v13 }
 0x2de   :  { %v4393_v19 = vpop.f32.mrf.mxu0  ;;  %4489 = vmatmul.mubr.msk.f32.gmra.mxu1 %vm771_vm1, %v4988_v16 }
 0x2df   :  { %5001 = vtanh.f32 %v1947_v28  ;;  %v1962_v18 = vadd.f32 %v4393_v19, %v5919_v44 }
 0x2e0   :  { %v4990_v20 = vpop.eup %4989  ;;  %5003 = vtanh.f32 %v1952_v14  ;;  %v1956_v21 = vpop.f32.mrf.mxu0 }
 0x2e1   :  { %v4992_v34 = vpop.eup %4991  ;;  %v1957_v23 = vadd.f32 %v5919_v44, %v1956_v21  ;;  %4491 = vmatprep.mubr.msk.f32.mxu1 %vm771_vm1, %v4990_v20 }
 0x2e2   :  { %v4396_v25 = vpop.f32.mrf.mxu0  ;;  %4492 = vmatmul.mubr.msk.f32.gmra.mxu1 %vm771_vm1, %v4992_v34 }
 0x2e3   :  { %5005 = vtanh.f32 %v1957_v23  ;;  %v1972_v26 = vadd.f32 %v4396_v25, %v5919_v44 }
 0x2e4   :  { %v4994_v24 = vpop.eup %4993  ;;  %5007 = vtanh.f32 %v1962_v18  ;;  %v1966_v29 = vpop.f32.mrf.mxu0 }
 0x2e5   :  { %v4996_v50 = vpop.eup %4995  ;;  %v1967_v31 = vadd.f32 %v5919_v44, %v1966_v29  ;;  %4494 = vmatprep.mubr.msk.f32.mxu1 %vm771_vm1, %v4994_v24 }
 0x2e6   :  { %v4399_v32 = vpop.f32.mrf.mxu0  ;;  %4495 = vmatmul.mubr.msk.f32.gmra.mxu1 %vm771_vm1, %v4996_v50 }
 0x2e7   :  { %5009 = vtanh.f32 %v1967_v31  ;;  %v1982_v12 = vadd.f32 %v4399_v32, %v5919_v44 }
 0x2e8   :  { %v4998_v30 = vpop.eup %4997  ;;  %5011 = vtanh.f32 %v1972_v26  ;;  %v1976_v33 = vpop.f32.mrf.mxu0 }
 0x2e9   :  { %v5000_v2 = vpop.eup %4999  ;;  %v1977_v35 = vadd.f32 %v5919_v44, %v1976_v33  ;;  %4497 = vmatprep.mubr.msk.f32.mxu1 %vm771_vm1, %v4998_v30 }
 0x2ea   :  { %v4402_v36 = vpop.f32.mrf.mxu0  ;;  %4498 = vmatmul.mubr.msk.f32.gmra.mxu1 %vm771_vm1, %v5000_v2 }
 0x2eb   :  { %5013 = vtanh.f32 %v1977_v35  ;;  %v1992_v17 = vadd.f32 %v4402_v36, %v5919_v44 }
 0x2ec   :  { %v5002_v38 = vpop.eup %5001  ;;  %5015 = vtanh.f32 %v1982_v12  ;;  %v1986_v39 = vpop.f32.mrf.mxu0 }
 0x2ed   :  { %v5004_v40 = vpop.eup %5003  ;;  %v1987_v59 = vadd.f32 %v5919_v44, %v1986_v39  ;;  %4500 = vmatprep.mubr.msk.f32.mxu1 %vm771_vm1, %v5002_v38 }
 0x2ee   :  { %v4405_v41 = vpop.f32.mrf.mxu0  ;;  %4501 = vmatmul.mubr.msk.f32.gmra.mxu1 %vm771_vm1, %v5004_v40 }
 0x2ef   :  { %5017 = vtanh.f32 %v1987_v59  ;;  %v2002_v37 = vadd.f32 %v4405_v41, %v5919_v44 }
 0x2f0   :  { %v5006_v42 = vpop.eup %5005  ;;  %5019 = vtanh.f32 %v1992_v17  ;;  %v1996_v43 = vpop.f32.mrf.mxu0 }
 0x2f1   :  { %v5008_v9 = vpop.eup %5007  ;;  %v1997_v46 = vadd.f32 %v5919_v44, %v1996_v43  ;;  %4503 = vmatprep.mubr.msk.f32.mxu1 %vm771_vm1, %v5006_v42 }
 0x2f2   :  { %4504 = vmatmul.mubr.msk.f32.gmra.mxu1 %vm771_vm1, %v5008_v9 }
 0x2f3   :  { %5021 = vtanh.f32 %v1997_v46 }
 0x2f4   :  { %v5010_v47 = vpop.eup %5009  ;;  %5023 = vtanh.f32 %v2002_v37 }
 0x2f5   :  { %v5012_v48 = vpop.eup %5011  ;;  %4506 = vmatprep.mubr.msk.f32.mxu1 %vm771_vm1, %v5010_v47 }
 0x2f6   :  { %4507 = vmatmul.mubr.msk.f32.gmra.mxu1 %vm771_vm1, %v5012_v48 }
 0x2f8   :  { %v5014_v49 = vpop.eup %5013 }
 0x2f9   :  { %v5016_v51 = vpop.eup %5015  ;;  %4509 = vmatprep.mubr.msk.f32.mxu1 %vm771_vm1, %v5014_v49 }
 0x2fa   :  { %4510 = vmatmul.mubr.msk.f32.gmra.mxu1 %vm771_vm1, %v5016_v51 }
 0x2fc   :  { %v5018_v27 = vpop.eup %5017 }
 0x2fd   :  { %v5020_v44 = vpop.eup %5019  ;;  %4512 = vmatprep.mubr.msk.f32.mxu1 %vm771_vm1, %v5018_v27 }
 0x2fe   :  { %4513 = vmatmul.mubr.msk.f32.gmra.mxu1 %vm771_vm1, %v5020_v44 }
 0x300   :  { %v5022_v52 = vpop.eup %5021 }
 0x301   :  { %v5024_v53 = vpop.eup %5023  ;;  %4515 = vmatprep.mubr.msk.f32.mxu1 %vm771_vm1, %v5022_v52 }
 0x302   :  { %4516 = vmatmul.mubr.msk.f32.gmra.mxu1 %vm771_vm1, %v5024_v53 }
 0x346   :  { %v4424_v45 = vpop.f32.mrf.mxu1 }
 0x347   :  { %v2348_v55 = vadd.f32 %v4424_v45, %v6070_v54 }
 0x348   :  { %v2342_v56 = vpop.f32.mrf.mxu1 }
 0x349   :  { %v2343_v57 = vadd.f32 %v6070_v54, %v2342_v56 }
 0x34a   :  { %v4427_v58 = vpop.f32.mrf.mxu1 }
 0x34b   :  { %5025 = vtanh.f32 %v2343_v57  ;;  %v2358_v60 = vadd.f32 %v4427_v58, %v6070_v54 }
 0x34c   :  { %5027 = vtanh.f32 %v2348_v55  ;;  %v2352_v62 = vpop.f32.mrf.mxu1 }
 0x34d   :  { %v2353_v61 = vadd.f32 %v6070_v54, %v2352_v62 }
 0x34e   :  { %v4430_v63 = vpop.f32.mrf.mxu1 }
 0x34f   :  { %5029 = vtanh.f32 %v2353_v61  ;;  %v2368_v0 = vadd.f32 %v4430_v63, %v6070_v54 }
 0x350   :  { %5031 = vtanh.f32 %v2358_v60  ;;  %v2362_v1 = vpop.f32.mrf.mxu1 }
 0x351   :  { %v2363_v3 = vadd.f32 %v6070_v54, %v2362_v1 }
 0x352   :  { %v4433_v4 = vpop.f32.mrf.mxu1 }
 0x353   :  { %5033 = vtanh.f32 %v2363_v3  ;;  %v2378_v5 = vadd.f32 %v4433_v4, %v6070_v54 }
 0x354   :  { %5035 = vtanh.f32 %v2368_v0  ;;  %v2372_v6 = vpop.f32.mrf.mxu1 }
 0x355   :  { %v2373_v7 = vadd.f32 %v6070_v54, %v2372_v6 }
 0x356   :  { %v4436_v8 = vpop.f32.mrf.mxu1 }
 0x357   :  { %5037 = vtanh.f32 %v2373_v7  ;;  %v2388_v10 = vadd.f32 %v4436_v8, %v6070_v54 }
 0x358   :  { %v5026_v22 = vpop.eup %5025  ;;  %5039 = vtanh.f32 %v2378_v5  ;;  %v2382_v11 = vpop.f32.mrf.mxu1 }
 0x359   :  { %v5028_v13 = vpop.eup %5027  ;;  %v2383_v14 = vadd.f32 %v6070_v54, %v2382_v11  ;;  %4534 = vmatprep.mubr.msk.f32.mxu0 %vm771_vm1, %v5026_v22 }
 0x35a   :  { %v4439_v15 = vpop.f32.mrf.mxu1  ;;  %4535 = vmatmul.mubr.msk.f32.vlgmr.msra.gmra.mxu0 %vm771_vm1, %v5028_v13 }
 0x35b   :  { %5041 = vtanh.f32 %v2383_v14  ;;  %v2398_v28 = vadd.f32 %v4439_v15, %v6070_v54 }
 0x35c   :  { %v5030_v16 = vpop.eup %5029  ;;  %5043 = vtanh.f32 %v2388_v10  ;;  %v2392_v19 = vpop.f32.mrf.mxu1 }
 0x35d   :  { %v5032_v20 = vpop.eup %5031  ;;  %v2393_v18 = vadd.f32 %v6070_v54, %v2392_v19  ;;  %4537 = vmatprep.mubr.msk.f32.mxu0 %vm771_vm1, %v5030_v16 }
 0x35e   :  { %v4442_v21 = vpop.f32.mrf.mxu1  ;;  %4538 = vmatmul.mubr.msk.f32.gmra.mxu0 %vm771_vm1, %v5032_v20 }
 0x35f   :  { %5045 = vtanh.f32 %v2393_v18  ;;  %v2408_v23 = vadd.f32 %v4442_v21, %v6070_v54 }
 0x360   :  { %v5034_v34 = vpop.eup %5033  ;;  %5047 = vtanh.f32 %v2398_v28  ;;  %v2402_v25 = vpop.f32.mrf.mxu1 }
 0x361   :  { %v5036_v24 = vpop.eup %5035  ;;  %v2403_v26 = vadd.f32 %v6070_v54, %v2402_v25  ;;  %4540 = vmatprep.mubr.msk.f32.mxu0 %vm771_vm1, %v5034_v34 }
 0x362   :  { %v4445_v29 = vpop.f32.mrf.mxu1  ;;  %4541 = vmatmul.mubr.msk.f32.gmra.mxu0 %vm771_vm1, %v5036_v24 }
 0x363   :  { %5049 = vtanh.f32 %v2403_v26  ;;  %v2418_v31 = vadd.f32 %v4445_v29, %v6070_v54 }
 0x364   :  { %v5038_v50 = vpop.eup %5037  ;;  %5051 = vtanh.f32 %v2408_v23  ;;  %v2412_v32 = vpop.f32.mrf.mxu1 }
 0x365   :  { %v5040_v30 = vpop.eup %5039  ;;  %v2413_v12 = vadd.f32 %v6070_v54, %v2412_v32  ;;  %4543 = vmatprep.mubr.msk.f32.mxu0 %vm771_vm1, %v5038_v50 }
 0x366   :  { %v4448_v33 = vpop.f32.mrf.mxu1  ;;  %4544 = vmatmul.mubr.msk.f32.gmra.mxu0 %vm771_vm1, %v5040_v30 }
 0x367   :  { %5053 = vtanh.f32 %v2413_v12  ;;  %v2428_v35 = vadd.f32 %v4448_v33, %v6070_v54 }
 0x368   :  { %v5042_v2 = vpop.eup %5041  ;;  %5055 = vtanh.f32 %v2418_v31  ;;  %v2422_v36 = vpop.f32.mrf.mxu1 }
 0x369   :  { %v5044_v38 = vpop.eup %5043  ;;  %v2423_v17 = vadd.f32 %v6070_v54, %v2422_v36  ;;  %4546 = vmatprep.mubr.msk.f32.mxu0 %vm771_vm1, %v5042_v2 }
 0x36a   :  { %v4451_v39 = vpop.f32.mrf.mxu1  ;;  %4547 = vmatmul.mubr.msk.f32.gmra.mxu0 %vm771_vm1, %v5044_v38 }
 0x36b   :  { %5057 = vtanh.f32 %v2423_v17  ;;  %v2438_v59 = vadd.f32 %v4451_v39, %v6070_v54 }
 0x36c   :  { %v5046_v40 = vpop.eup %5045  ;;  %5059 = vtanh.f32 %v2428_v35  ;;  %v2432_v41 = vpop.f32.mrf.mxu1 }
 0x36d   :  { %v5048_v42 = vpop.eup %5047  ;;  %v2433_v37 = vadd.f32 %v6070_v54, %v2432_v41  ;;  %4549 = vmatprep.mubr.msk.f32.mxu0 %vm771_vm1, %v5046_v40 }
 0x36e   :  { %v4454_v43 = vpop.f32.mrf.mxu1  ;;  %4550 = vmatmul.mubr.msk.f32.gmra.mxu0 %vm771_vm1, %v5048_v42 }
 0x36f   :  { %5061 = vtanh.f32 %v2433_v37  ;;  %v2448_v46 = vadd.f32 %v4454_v43, %v6070_v54 }
 0x370   :  { %v5050_v9 = vpop.eup %5049  ;;  %5063 = vtanh.f32 %v2438_v59  ;;  %v2442_v47 = vpop.f32.mrf.mxu1 }
 0x371   :  { %v5052_v48 = vpop.eup %5051  ;;  %v2443_v49 = vadd.f32 %v6070_v54, %v2442_v47  ;;  %4552 = vmatprep.mubr.msk.f32.mxu0 %vm771_vm1, %v5050_v9 }
 0x372   :  { %v4457_v51 = vpop.f32.mrf.mxu1  ;;  %4553 = vmatmul.mubr.msk.f32.gmra.mxu0 %vm771_vm1, %v5052_v48 }
 0x373   :  { %5065 = vtanh.f32 %v2443_v49  ;;  %v2458_v44 = vadd.f32 %v4457_v51, %v6070_v54 }
 0x374   :  { %v5054_v27 = vpop.eup %5053  ;;  %5067 = vtanh.f32 %v2448_v46  ;;  %v2452_v52 = vpop.f32.mrf.mxu1 }
 0x375   :  { %v5056_v53 = vpop.eup %5055  ;;  %v2453_v45 = vadd.f32 %v6070_v54, %v2452_v52  ;;  %4555 = vmatprep.mubr.msk.f32.mxu0 %vm771_vm1, %v5054_v27 }
 0x376   :  { %v4460_v55 = vpop.f32.mrf.mxu1  ;;  %4556 = vmatmul.mubr.msk.f32.gmra.mxu0 %vm771_vm1, %v5056_v53 }
 0x377   :  { %5069 = vtanh.f32 %v2453_v45  ;;  %v2468_v57 = vadd.f32 %v4460_v55, %v6070_v54 }
 0x378   :  { %v5058_v56 = vpop.eup %5057  ;;  %5071 = vtanh.f32 %v2458_v44  ;;  %v2462_v58 = vpop.f32.mrf.mxu1 }
 0x379   :  { %v5060_v60 = vpop.eup %5059  ;;  %v2463_v62 = vadd.f32 %v6070_v54, %v2462_v58  ;;  %4558 = vmatprep.mubr.msk.f32.mxu0 %vm771_vm1, %v5058_v56 }
 0x37a   :  { %v4463_v61 = vpop.f32.mrf.mxu1  ;;  %4559 = vmatmul.mubr.msk.f32.gmra.mxu0 %vm771_vm1, %v5060_v60 }
 0x37b   :  { %5073 = vtanh.f32 %v2463_v62  ;;  %v2478_v0 = vadd.f32 %v4463_v61, %v6070_v54 }
 0x37c   :  { %v5062_v63 = vpop.eup %5061  ;;  %5075 = vtanh.f32 %v2468_v57  ;;  %v2472_v1 = vpop.f32.mrf.mxu1 }
 0x37d   :  { %v5064_v3 = vpop.eup %5063  ;;  %v2473_v4 = vadd.f32 %v6070_v54, %v2472_v1  ;;  %4561 = vmatprep.mubr.msk.f32.mxu0 %vm771_vm1, %v5062_v63 }
 0x37e   :  { %v4466_v5 = vpop.f32.mrf.mxu1  ;;  %4562 = vmatmul.mubr.msk.f32.gmra.mxu0 %vm771_vm1, %v5064_v3 }
 0x37f   :  { %5077 = vtanh.f32 %v2473_v4  ;;  %v2488_v7 = vadd.f32 %v4466_v5, %v6070_v54 }
 0x380   :  { %v5066_v6 = vpop.eup %5065  ;;  %5079 = vtanh.f32 %v2478_v0  ;;  %v2482_v8 = vpop.f32.mrf.mxu1 }
 0x381   :  { %v5068_v22 = vpop.eup %5067  ;;  %v2483_v10 = vadd.f32 %v6070_v54, %v2482_v8  ;;  %4564 = vmatprep.mubr.msk.f32.mxu0 %vm771_vm1, %v5066_v6 }
 0x382   :  { %v4469_v11 = vpop.f32.mrf.mxu1  ;;  %4565 = vmatmul.mubr.msk.f32.gmra.mxu0 %vm771_vm1, %v5068_v22 }
 0x383   :  { %5081 = vtanh.f32 %v2483_v10  ;;  %v2498_v14 = vadd.f32 %v4469_v11, %v6070_v54 }
 0x384   :  { %v5070_v13 = vpop.eup %5069  ;;  %5083 = vtanh.f32 %v2488_v7  ;;  %v2492_v15 = vpop.f32.mrf.mxu1 }
 0x385   :  { %v5072_v16 = vpop.eup %5071  ;;  %v2493_v28 = vadd.f32 %v6070_v54, %v2492_v15  ;;  %4567 = vmatprep.mubr.msk.f32.mxu0 %vm771_vm1, %v5070_v13 }
 0x386   :  { %v4472_v19 = vpop.f32.mrf.mxu1  ;;  %4568 = vmatmul.mubr.msk.f32.gmra.mxu0 %vm771_vm1, %v5072_v16 }
 0x387   :  { %5085 = vtanh.f32 %v2493_v28  ;;  %v2508_v18 = vadd.f32 %v4472_v19, %v6070_v54 }
 0x388   :  { %v5074_v20 = vpop.eup %5073  ;;  %5087 = vtanh.f32 %v2498_v14  ;;  %v2502_v21 = vpop.f32.mrf.mxu1 }
 0x389   :  { %v5076_v34 = vpop.eup %5075  ;;  %v2503_v23 = vadd.f32 %v6070_v54, %v2502_v21  ;;  %4570 = vmatprep.mubr.msk.f32.mxu0 %vm771_vm1, %v5074_v20 }
 0x38a   :  { %v4475_v25 = vpop.f32.mrf.mxu1  ;;  %4571 = vmatmul.mubr.msk.f32.gmra.mxu0 %vm771_vm1, %v5076_v34 }
 0x38b   :  { %5089 = vtanh.f32 %v2503_v23  ;;  %v2518_v26 = vadd.f32 %v4475_v25, %v6070_v54 }
 0x38c   :  { %v5078_v24 = vpop.eup %5077  ;;  %5091 = vtanh.f32 %v2508_v18  ;;  %v2512_v29 = vpop.f32.mrf.mxu1 }
 0x38d   :  { %v5080_v50 = vpop.eup %5079  ;;  %v2513_v31 = vadd.f32 %v6070_v54, %v2512_v29  ;;  %4573 = vmatprep.mubr.msk.f32.mxu0 %vm771_vm1, %v5078_v24 }
 0x38e   :  { %v4478_v32 = vpop.f32.mrf.mxu1  ;;  %4574 = vmatmul.mubr.msk.f32.gmra.mxu0 %vm771_vm1, %v5080_v50 }
 0x38f   :  { %5093 = vtanh.f32 %v2513_v31  ;;  %v2528_v12 = vadd.f32 %v4478_v32, %v6070_v54 }
 0x390   :  { %v5082_v30 = vpop.eup %5081  ;;  %5095 = vtanh.f32 %v2518_v26  ;;  %v2522_v33 = vpop.f32.mrf.mxu1 }
 0x391   :  { %v5084_v2 = vpop.eup %5083  ;;  %v2523_v35 = vadd.f32 %v6070_v54, %v2522_v33  ;;  %4576 = vmatprep.mubr.msk.f32.mxu0 %vm771_vm1, %v5082_v30 }
 0x392   :  { %v4481_v36 = vpop.f32.mrf.mxu1  ;;  %4577 = vmatmul.mubr.msk.f32.gmra.mxu0 %vm771_vm1, %v5084_v2 }
 0x393   :  { %5097 = vtanh.f32 %v2523_v35  ;;  %v2538_v17 = vadd.f32 %v4481_v36, %v6070_v54 }
 0x394   :  { %v5086_v38 = vpop.eup %5085  ;;  %5099 = vtanh.f32 %v2528_v12  ;;  %v2532_v39 = vpop.f32.mrf.mxu1 }
 0x395   :  { %v5088_v40 = vpop.eup %5087  ;;  %v2533_v59 = vadd.f32 %v6070_v54, %v2532_v39  ;;  %4579 = vmatprep.mubr.msk.f32.mxu0 %vm771_vm1, %v5086_v38 }
 0x396   :  { %v4484_v41 = vpop.f32.mrf.mxu1  ;;  %4580 = vmatmul.mubr.msk.f32.gmra.mxu0 %vm771_vm1, %v5088_v40 }
 0x397   :  { %5101 = vtanh.f32 %v2533_v59  ;;  %v2548_v37 = vadd.f32 %v4484_v41, %v6070_v54 }
 0x398   :  { %v5090_v42 = vpop.eup %5089  ;;  %5103 = vtanh.f32 %v2538_v17  ;;  %v2542_v43 = vpop.f32.mrf.mxu1 }
 0x399   :  { %v5092_v9 = vpop.eup %5091  ;;  %v2543_v46 = vadd.f32 %v6070_v54, %v2542_v43  ;;  %4582 = vmatprep.mubr.msk.f32.mxu0 %vm771_vm1, %v5090_v42 }
 0x39a   :  { %v4487_v47 = vpop.f32.mrf.mxu1  ;;  %4583 = vmatmul.mubr.msk.f32.gmra.mxu0 %vm771_vm1, %v5092_v9 }
 0x39b   :  { %5105 = vtanh.f32 %v2543_v46  ;;  %v2558_v49 = vadd.f32 %v4487_v47, %v6070_v54 }
 0x39c   :  { %v5094_v48 = vpop.eup %5093  ;;  %5107 = vtanh.f32 %v2548_v37  ;;  %v2552_v51 = vpop.f32.mrf.mxu1 }
 0x39d   :  { %v5096_v27 = vpop.eup %5095  ;;  %v2553_v44 = vadd.f32 %v6070_v54, %v2552_v51  ;;  %4585 = vmatprep.mubr.msk.f32.mxu0 %vm771_vm1, %v5094_v48 }
 0x39e   :  { %v4490_v52 = vpop.f32.mrf.mxu1  ;;  %4586 = vmatmul.mubr.msk.f32.gmra.mxu0 %vm771_vm1, %v5096_v27 }
 0x39f   :  { %5109 = vtanh.f32 %v2553_v44  ;;  %v2568_v45 = vadd.f32 %v4490_v52, %v6070_v54 }
 0x3a0   :  { %v5098_v53 = vpop.eup %5097  ;;  %5111 = vtanh.f32 %v2558_v49  ;;  %v2562_v55 = vpop.f32.mrf.mxu1 }
 0x3a1   :  { %v5100_v56 = vpop.eup %5099  ;;  %v2563_v57 = vadd.f32 %v6070_v54, %v2562_v55  ;;  %4588 = vmatprep.mubr.msk.f32.mxu0 %vm771_vm1, %v5098_v53 }
 0x3a2   :  { %v4493_v58 = vpop.f32.mrf.mxu1  ;;  %4589 = vmatmul.mubr.msk.f32.gmra.mxu0 %vm771_vm1, %v5100_v56  ;;  %v6203_v56 = vld [vmem:[%s6282_s10] ss:$0 sm:$0xff]  ;;  %s5175_s10 = smov [#allocation2]  }
 0x3a3   :  { %5113 = vtanh.f32 %v2563_v57  ;;  %v2578_v62 = vadd.f32 %v4493_v58, %v6070_v54  ;;  %s3386_s3 = sshll.u32 %s5175_s10, 4  ;;  %s3387_s3 = int_to_ptr.vmem [resolvable:$true] %s3386_s3 }
 0x3a4   :  { %v5102_v60 = vpop.eup %5101  ;;  %5115 = vtanh.f32 %v2568_v45  ;;  %v2572_v61 = vpop.f32.mrf.mxu1  ;;  %s5153_s1 = scalar_lea.vmem %s3387_s3, 8192  ;;  %p5158_p1 = scmp.lt.s32.totalorder %s3387_s3, %s3387_s3 }
 0x3a5   :  { %v5104_v63 = vpop.eup %5103  ;;  %v2573_v0 = vadd.f32 %v6070_v54, %v2572_v61  ;;  %4591 = vmatprep.mubr.msk.f32.mxu0 %vm771_vm1, %v5102_v60  ;;  %p5154_p0 = scmp.ne.s32.totalorder %s3387_s3, %s5153_s1  ;;  %p5159_p2 = scmp.lt.s32.totalorder %s5153_s1, %s5153_s1 }
 0x3a6   :  { %v4496_v1 = vpop.f32.mrf.mxu1  ;;  %4592 = vmatmul.mubr.msk.f32.gmra.mxu0 %vm771_vm1, %v5104_v63 }
 0x3a7   :  { %5117 = vtanh.f32 %v2573_v0  ;;  %v2588_v4 = vadd.f32 %v4496_v1, %v6070_v54  ;;  %p5160_p3 = por %p5159_p2, %p5158_p1 }
 0x3a8   :  { %v5106_v3 = vpop.eup %5105  ;;  %5119 = vtanh.f32 %v2578_v62  ;;  %v2582_v5 = vpop.f32.mrf.mxu1 }
 0x3a9   :  { %v5108_v6 = vpop.eup %5107  ;;  %v2583_v7 = vadd.f32 %v6070_v54, %v2582_v5  ;;  %4594 = vmatprep.mubr.msk.f32.mxu0 %vm771_vm1, %v5106_v3  ;;  %p5161_p4 = pnand %p5160_p3, %p5154_p0 }
 0x3aa   :  { %v4499_v8 = vpop.f32.mrf.mxu1  ;;  %4595 = vmatmul.mubr.msk.f32.gmra.mxu0 %vm771_vm1, %v5108_v6 }
 0x3ab   :  { %5121 = vtanh.f32 %v2583_v7  ;;  %v2598_v10 = vadd.f32 %v4499_v8, %v6070_v54 }
 0x3ac   :  { %v5110_v22 = vpop.eup %5109  ;;  %5123 = vtanh.f32 %v2588_v4  ;;  %v2592_v11 = vpop.f32.mrf.mxu1 }
 0x3ad   :  { %v5112_v13 = vpop.eup %5111  ;;  %v2593_v14 = vadd.f32 %v6070_v54, %v2592_v11  ;;  %4597 = vmatprep.mubr.msk.f32.mxu0 %vm771_vm1, %v5110_v22 }
 0x3ae   :  { %v4502_v15 = vpop.f32.mrf.mxu1  ;;  %4598 = vmatmul.mubr.msk.f32.gmra.mxu0 %vm771_vm1, %v5112_v13 }
 0x3af   :  { %5125 = vtanh.f32 %v2593_v14  ;;  %v2608_v28 = vadd.f32 %v4502_v15, %v6070_v54 }
 0x3b0   :  { %v5114_v16 = vpop.eup %5113  ;;  %5127 = vtanh.f32 %v2598_v10  ;;  %v2602_v19 = vpop.f32.mrf.mxu1 }
 0x3b1   :  { %v5116_v20 = vpop.eup %5115  ;;  %v2603_v18 = vadd.f32 %v6070_v54, %v2602_v19  ;;  %4600 = vmatprep.mubr.msk.f32.mxu0 %vm771_vm1, %v5114_v16 }
 0x3b2   :  { %v4505_v21 = vpop.f32.mrf.mxu1  ;;  %4601 = vmatmul.mubr.msk.f32.gmra.mxu0 %vm771_vm1, %v5116_v20 }
 0x3b3   :  { %5129 = vtanh.f32 %v2603_v18  ;;  %v2618_v23 = vadd.f32 %v4505_v21, %v6070_v54 }
 0x3b4   :  { %v5118_v34 = vpop.eup %5117  ;;  %5131 = vtanh.f32 %v2608_v28  ;;  %v2612_v25 = vpop.f32.mrf.mxu1 }
 0x3b5   :  { %v5120_v24 = vpop.eup %5119  ;;  %v2613_v26 = vadd.f32 %v6070_v54, %v2612_v25  ;;  %4603 = vmatprep.mubr.msk.f32.mxu0 %vm771_vm1, %v5118_v34 }
 0x3b6   :  { %v4508_v29 = vpop.f32.mrf.mxu1  ;;  %4604 = vmatmul.mubr.msk.f32.gmra.mxu0 %vm771_vm1, %v5120_v24 }
 0x3b7   :  { %5133 = vtanh.f32 %v2613_v26  ;;  %v2628_v31 = vadd.f32 %v4508_v29, %v6070_v54 }
 0x3b8   :  { %v5122_v50 = vpop.eup %5121  ;;  %5135 = vtanh.f32 %v2618_v23  ;;  %v2622_v32 = vpop.f32.mrf.mxu1 }
 0x3b9   :  { %v5124_v30 = vpop.eup %5123  ;;  %v2623_v12 = vadd.f32 %v6070_v54, %v2622_v32  ;;  %4606 = vmatprep.mubr.msk.f32.mxu0 %vm771_vm1, %v5122_v50 }
 0x3ba   :  { %v4511_v33 = vpop.f32.mrf.mxu1  ;;  %4607 = vmatmul.mubr.msk.f32.gmra.mxu0 %vm771_vm1, %v5124_v30 }
 0x3bb   :  { %5137 = vtanh.f32 %v2623_v12  ;;  %v2638_v35 = vadd.f32 %v4511_v33, %v6070_v54 }
 0x3bc   :  { %v5126_v2 = vpop.eup %5125  ;;  %5139 = vtanh.f32 %v2628_v31  ;;  %v2632_v36 = vpop.f32.mrf.mxu1 }
 0x3bd   :  { %v5128_v38 = vpop.eup %5127  ;;  %v2633_v17 = vadd.f32 %v6070_v54, %v2632_v36  ;;  %4609 = vmatprep.mubr.msk.f32.mxu0 %vm771_vm1, %v5126_v2 }
 0x3be   :  { %v4514_v39 = vpop.f32.mrf.mxu1  ;;  %4610 = vmatmul.mubr.msk.f32.gmra.mxu0 %vm771_vm1, %v5128_v38 }
 0x3bf   :  { %5141 = vtanh.f32 %v2633_v17  ;;  %v2648_v59 = vadd.f32 %v4514_v39, %v6070_v54 }
 0x3c0   :  { %v5130_v40 = vpop.eup %5129  ;;  %5143 = vtanh.f32 %v2638_v35  ;;  %v2642_v41 = vpop.f32.mrf.mxu1 }
 0x3c1   :  { %v5132_v42 = vpop.eup %5131  ;;  %v2643_v37 = vadd.f32 %v6070_v54, %v2642_v41  ;;  %4612 = vmatprep.mubr.msk.f32.mxu0 %vm771_vm1, %v5130_v40 }
 0x3c2   :  { %v4517_v43 = vpop.f32.mrf.mxu1  ;;  %4613 = vmatmul.mubr.msk.f32.gmra.mxu0 %vm771_vm1, %v5132_v42 }
 0x3c3   :  { %5145 = vtanh.f32 %v2643_v37  ;;  %v2658_v46 = vadd.f32 %v4517_v43, %v6070_v54 }
 0x3c4   :  { %v5134_v9 = vpop.eup %5133  ;;  %5147 = vtanh.f32 %v2648_v59  ;;  %v2652_v47 = vpop.f32.mrf.mxu1 }
 0x3c5   :  { %v5136_v48 = vpop.eup %5135  ;;  %v2653_v49 = vadd.f32 %v6070_v54, %v2652_v47  ;;  %4615 = vmatprep.mubr.msk.f32.mxu0 %vm771_vm1, %v5134_v9 }
 0x3c6   :  { %4616 = vmatmul.mubr.msk.f32.gmra.mxu0 %vm771_vm1, %v5136_v48 }
 0x3c7   :  { %5149 = vtanh.f32 %v2653_v49 }
 0x3c8   :  { %v5138_v51 = vpop.eup %5137  ;;  %5151 = vtanh.f32 %v2658_v46 }
 0x3c9   :  { %v5140_v27 = vpop.eup %5139  ;;  %4618 = vmatprep.mubr.msk.f32.mxu0 %vm771_vm1, %v5138_v51 }
 0x3ca   :  { %4619 = vmatmul.mubr.msk.f32.gmra.mxu0 %vm771_vm1, %v5140_v27 }
 0x3cc   :  { %v5142_v44 = vpop.eup %5141 }
 0x3cd   :  { %v5144_v52 = vpop.eup %5143  ;;  %4621 = vmatprep.mubr.msk.f32.mxu0 %vm771_vm1, %v5142_v44 }
 0x3ce   :  { %4622 = vmatmul.mubr.msk.f32.gmra.mxu0 %vm771_vm1, %v5144_v52 }
 0x3d0   :  { %v5146_v53 = vpop.eup %5145 }
 0x3d1   :  { %v5148_v54 = vpop.eup %5147  ;;  %4624 = vmatprep.mubr.msk.f32.mxu0 %vm771_vm1, %v5146_v53 }
 0x3d2   :  { %4625 = vmatmul.mubr.msk.f32.gmra.mxu0 %vm771_vm1, %v5148_v54 }
 0x3d4   :  { %v5150_v45 = vpop.eup %5149 }
 0x3d5   :  { %v5152_v55 = vpop.eup %5151  ;;  %4627 = vmatprep.mubr.msk.f32.mxu0 %vm771_vm1, %v5150_v45 }
 0x3d6   :  { %4628 = vmatmul.mubr.msk.f32.gmra.mxu0 %vm771_vm1, %v5152_v55 }
 0x41a   :  { %v4536_v57 = vpop.f32.mrf.mxu0 }
 0x41b   :  { %v3004_v58 = vadd.f32 %v4536_v57, %v6203_v56 }
 0x41c   :  { %v2998_v60 = vpop.f32.mrf.mxu0 }
 0x41d   :  { %3318 = vst [vmem:[#allocation2 + $0x8] sm:$0xff] %v3004_v58  ;;  %v2999_v62 = vadd.f32 %v6203_v56, %v2998_v60 }
 0x41e   :  { %v4539_v61 = vpop.f32.mrf.mxu0 }
 0x41f   :  { %3317 = vst [vmem:[#allocation2] sm:$0xff] %v2999_v62  ;;  %v3014_v63 = vadd.f32 %v4539_v61, %v6203_v56 }
 0x420   :  { %v3008_v0 = vpop.f32.mrf.mxu0 }
 0x421   :  { %3320 = vst [vmem:[#allocation2 + $0x18] sm:$0xff] %v3014_v63  ;;  %v3009_v1 = vadd.f32 %v6203_v56, %v3008_v0 }
 0x422   :  { %v4542_v3 = vpop.f32.mrf.mxu0 }
 0x423   :  { %3319 = vst [vmem:[#allocation2 + $0x10] sm:$0xff] %v3009_v1  ;;  %v3024_v4 = vadd.f32 %v4542_v3, %v6203_v56 }
 0x424   :  { %v3018_v5 = vpop.f32.mrf.mxu0 }
 0x425   :  { %3322 = vst [vmem:[#allocation2 + $0x28] sm:$0xff] %v3024_v4  ;;  %v3019_v6 = vadd.f32 %v6203_v56, %v3018_v5 }
 0x426   :  { %v4545_v7 = vpop.f32.mrf.mxu0 }
 0x427   :  { %3321 = vst [vmem:[#allocation2 + $0x20] sm:$0xff] %v3019_v6  ;;  %v3034_v8 = vadd.f32 %v4545_v7, %v6203_v56 }
 0x428   :  { %v3028_v22 = vpop.f32.mrf.mxu0 }
 0x429   :  { %3324 = vst [vmem:[#allocation2 + $0x38] sm:$0xff] %v3034_v8  ;;  %v3029_v10 = vadd.f32 %v6203_v56, %v3028_v22 }
 0x42a   :  { %v4548_v11 = vpop.f32.mrf.mxu0 }
 0x42b   :  { %3323 = vst [vmem:[#allocation2 + $0x30] sm:$0xff] %v3029_v10  ;;  %v3044_v13 = vadd.f32 %v4548_v11, %v6203_v56 }
 0x42c   :  { %v3038_v14 = vpop.f32.mrf.mxu0 }
 0x42d   :  { %3326 = vst [vmem:[#allocation2 + $0x48] sm:$0xff] %v3044_v13  ;;  %v3039_v15 = vadd.f32 %v6203_v56, %v3038_v14 }
 0x42e   :  { %v4551_v16 = vpop.f32.mrf.mxu0 }
 0x42f   :  { %3325 = vst [vmem:[#allocation2 + $0x40] sm:$0xff] %v3039_v15  ;;  %v3054_v28 = vadd.f32 %v4551_v16, %v6203_v56 }
 0x430   :  { %v3048_v19 = vpop.f32.mrf.mxu0 }
 0x431   :  { %3328 = vst [vmem:[#allocation2 + $0x58] sm:$0xff] %v3054_v28  ;;  %v3049_v20 = vadd.f32 %v6203_v56, %v3048_v19 }
 0x432   :  { %v4554_v18 = vpop.f32.mrf.mxu0 }
 0x433   :  { %3327 = vst [vmem:[#allocation2 + $0x50] sm:$0xff] %v3049_v20  ;;  %v3064_v21 = vadd.f32 %v4554_v18, %v6203_v56 }
 0x434   :  { %v3058_v34 = vpop.f32.mrf.mxu0 }
 0x435   :  { %3330 = vst [vmem:[#allocation2 + $0x68] sm:$0xff] %v3064_v21  ;;  %v3059_v23 = vadd.f32 %v6203_v56, %v3058_v34 }
 0x436   :  { %v4557_v25 = vpop.f32.mrf.mxu0 }
 0x437   :  { %3329 = vst [vmem:[#allocation2 + $0x60] sm:$0xff] %v3059_v23  ;;  %v3074_v24 = vadd.f32 %v4557_v25, %v6203_v56 }
 0x438   :  { %v3068_v26 = vpop.f32.mrf.mxu0 }
 0x439   :  { %3332 = vst [vmem:[#allocation2 + $0x78] sm:$0xff] %v3074_v24  ;;  %v3069_v29 = vadd.f32 %v6203_v56, %v3068_v26 }
 0x43a   :  { %v4560_v50 = vpop.f32.mrf.mxu0 }
 0x43b   :  { %3331 = vst [vmem:[#allocation2 + $0x70] sm:$0xff] %v3069_v29  ;;  %v3084_v31 = vadd.f32 %v4560_v50, %v6203_v56 }
 0x43c   :  { %v3078_v32 = vpop.f32.mrf.mxu0 }
 0x43d   :  { %3334 = vst [vmem:[#allocation2 + $0x88] sm:$0xff] %v3084_v31  ;;  %v3079_v30 = vadd.f32 %v6203_v56, %v3078_v32 }
 0x43e   :  { %v4563_v12 = vpop.f32.mrf.mxu0 }
 0x43f   :  { %3333 = vst [vmem:[#allocation2 + $0x80] sm:$0xff] %v3079_v30  ;;  %v3094_v33 = vadd.f32 %v4563_v12, %v6203_v56 }
 0x440   :  { %v3088_v2 = vpop.f32.mrf.mxu0 }
 0x441   :  { %3336 = vst [vmem:[#allocation2 + $0x98] sm:$0xff] %v3094_v33  ;;  %v3089_v35 = vadd.f32 %v6203_v56, %v3088_v2 }
 0x442   :  { %v4566_v36 = vpop.f32.mrf.mxu0 }
 0x443   :  { %3335 = vst [vmem:[#allocation2 + $0x90] sm:$0xff] %v3089_v35  ;;  %v3104_v38 = vadd.f32 %v4566_v36, %v6203_v56 }
 0x444   :  { %v3098_v17 = vpop.f32.mrf.mxu0 }
 0x445   :  { %3338 = vst [vmem:[#allocation2 + $0xa8] sm:$0xff] %v3104_v38  ;;  %v3099_v39 = vadd.f32 %v6203_v56, %v3098_v17 }
 0x446   :  { %v4569_v40 = vpop.f32.mrf.mxu0 }
 0x447   :  { %3337 = vst [vmem:[#allocation2 + $0xa0] sm:$0xff] %v3099_v39  ;;  %v3114_v59 = vadd.f32 %v4569_v40, %v6203_v56 }
 0x448   :  { %v3108_v41 = vpop.f32.mrf.mxu0 }
 0x449   :  { %3340 = vst [vmem:[#allocation2 + $0xb8] sm:$0xff] %v3114_v59  ;;  %v3109_v42 = vadd.f32 %v6203_v56, %v3108_v41 }
 0x44a   :  { %v4572_v37 = vpop.f32.mrf.mxu0 }
 0x44b   :  { %3339 = vst [vmem:[#allocation2 + $0xb0] sm:$0xff] %v3109_v42  ;;  %v3124_v43 = vadd.f32 %v4572_v37, %v6203_v56 }
 0x44c   :  { %v3118_v9 = vpop.f32.mrf.mxu0 }
 0x44d   :  { %3342 = vst [vmem:[#allocation2 + $0xc8] sm:$0xff] %v3124_v43  ;;  %v3119_v46 = vadd.f32 %v6203_v56, %v3118_v9 }
 0x44e   :  { %v4575_v47 = vpop.f32.mrf.mxu0 }
 0x44f   :  { %3341 = vst [vmem:[#allocation2 + $0xc0] sm:$0xff] %v3119_v46  ;;  %v3134_v48 = vadd.f32 %v4575_v47, %v6203_v56 }
 0x450   :  { %v3128_v49 = vpop.f32.mrf.mxu0 }
 0x451   :  { %3344 = vst [vmem:[#allocation2 + $0xd8] sm:$0xff] %v3134_v48  ;;  %v3129_v51 = vadd.f32 %v6203_v56, %v3128_v49 }
 0x452   :  { %v4578_v27 = vpop.f32.mrf.mxu0 }
 0x453   :  { %3343 = vst [vmem:[#allocation2 + $0xd0] sm:$0xff] %v3129_v51  ;;  %v3144_v44 = vadd.f32 %v4578_v27, %v6203_v56 }
 0x454   :  { %v3138_v52 = vpop.f32.mrf.mxu0 }
 0x455   :  { %3346 = vst [vmem:[#allocation2 + $0xe8] sm:$0xff] %v3144_v44  ;;  %v3139_v53 = vadd.f32 %v6203_v56, %v3138_v52 }
 0x456   :  { %v4581_v54 = vpop.f32.mrf.mxu0 }
 0x457   :  { %3345 = vst [vmem:[#allocation2 + $0xe0] sm:$0xff] %v3139_v53  ;;  %v3154_v45 = vadd.f32 %v4581_v54, %v6203_v56 }
 0x458   :  { %v3148_v55 = vpop.f32.mrf.mxu0 }
 0x459   :  { %3348 = vst [vmem:[#allocation2 + $0xf8] sm:$0xff] %v3154_v45  ;;  %v3149_v57 = vadd.f32 %v6203_v56, %v3148_v55 }
 0x45a   :  { %v4584_v58 = vpop.f32.mrf.mxu0 }
 0x45b   :  { %3347 = vst [vmem:[#allocation2 + $0xf0] sm:$0xff] %v3149_v57  ;;  %v3164_v60 = vadd.f32 %v4584_v58, %v6203_v56 }
 0x45c   :  { %v3158_v62 = vpop.f32.mrf.mxu0 }
 0x45d   :  { %3350 = vst [vmem:[#allocation2 + $0x108] sm:$0xff] %v3164_v60  ;;  %v3159_v61 = vadd.f32 %v6203_v56, %v3158_v62 }
 0x45e   :  { %v4587_v63 = vpop.f32.mrf.mxu0 }
 0x45f   :  { %3349 = vst [vmem:[#allocation2 + $0x100] sm:$0xff] %v3159_v61  ;;  %v3174_v0 = vadd.f32 %v4587_v63, %v6203_v56 }
 0x460   :  { %v3168_v1 = vpop.f32.mrf.mxu0 }
 0x461   :  { %3352 = vst [vmem:[#allocation2 + $0x118] sm:$0xff] %v3174_v0  ;;  %v3169_v3 = vadd.f32 %v6203_v56, %v3168_v1 }
 0x462   :  { %v4590_v4 = vpop.f32.mrf.mxu0 }
 0x463   :  { %3351 = vst [vmem:[#allocation2 + $0x110] sm:$0xff] %v3169_v3  ;;  %v3184_v5 = vadd.f32 %v4590_v4, %v6203_v56 }
 0x464   :  { %v3178_v6 = vpop.f32.mrf.mxu0 }
 0x465   :  { %3354 = vst [vmem:[#allocation2 + $0x128] sm:$0xff] %v3184_v5  ;;  %v3179_v7 = vadd.f32 %v6203_v56, %v3178_v6 }
 0x466   :  { %v4593_v8 = vpop.f32.mrf.mxu0 }
 0x467   :  { %3353 = vst [vmem:[#allocation2 + $0x120] sm:$0xff] %v3179_v7  ;;  %v3194_v22 = vadd.f32 %v4593_v8, %v6203_v56 }
 0x468   :  { %v3188_v10 = vpop.f32.mrf.mxu0 }
 0x469   :  { %3356 = vst [vmem:[#allocation2 + $0x138] sm:$0xff] %v3194_v22  ;;  %v3189_v11 = vadd.f32 %v6203_v56, %v3188_v10 }
 0x46a   :  { %v4596_v13 = vpop.f32.mrf.mxu0 }
 0x46b   :  { %3355 = vst [vmem:[#allocation2 + $0x130] sm:$0xff] %v3189_v11  ;;  %v3204_v14 = vadd.f32 %v4596_v13, %v6203_v56 }
 0x46c   :  { %v3198_v15 = vpop.f32.mrf.mxu0 }
 0x46d   :  { %3358 = vst [vmem:[#allocation2 + $0x148] sm:$0xff] %v3204_v14  ;;  %v3199_v16 = vadd.f32 %v6203_v56, %v3198_v15 }
 0x46e   :  { %v4599_v28 = vpop.f32.mrf.mxu0 }
 0x46f   :  { %3357 = vst [vmem:[#allocation2 + $0x140] sm:$0xff] %v3199_v16  ;;  %v3214_v19 = vadd.f32 %v4599_v28, %v6203_v56 }
 0x470   :  { %v3208_v20 = vpop.f32.mrf.mxu0 }
 0x471   :  { %3360 = vst [vmem:[#allocation2 + $0x158] sm:$0xff] %v3214_v19  ;;  %v3209_v18 = vadd.f32 %v6203_v56, %v3208_v20 }
 0x472   :  { %v4602_v21 = vpop.f32.mrf.mxu0 }
 0x473   :  { %3359 = vst [vmem:[#allocation2 + $0x150] sm:$0xff] %v3209_v18  ;;  %v3224_v34 = vadd.f32 %v4602_v21, %v6203_v56 }
 0x474   :  { %v3218_v23 = vpop.f32.mrf.mxu0 }
 0x475   :  { %3362 = vst [vmem:[#allocation2 + $0x168] sm:$0xff] %v3224_v34  ;;  %v3219_v25 = vadd.f32 %v6203_v56, %v3218_v23 }
 0x476   :  { %v4605_v24 = vpop.f32.mrf.mxu0 }
 0x477   :  { %3361 = vst [vmem:[#allocation2 + $0x160] sm:$0xff] %v3219_v25  ;;  %v3234_v26 = vadd.f32 %v4605_v24, %v6203_v56 }
 0x478   :  { %v3228_v29 = vpop.f32.mrf.mxu0 }
 0x479   :  { %3364 = vst [vmem:[#allocation2 + $0x178] sm:$0xff] %v3234_v26  ;;  %v3229_v50 = vadd.f32 %v6203_v56, %v3228_v29 }
 0x47a   :  { %v4608_v31 = vpop.f32.mrf.mxu0 }
 0x47b   :  { %3363 = vst [vmem:[#allocation2 + $0x170] sm:$0xff] %v3229_v50  ;;  %v3244_v32 = vadd.f32 %v4608_v31, %v6203_v56 }
 0x47c   :  { %v3238_v30 = vpop.f32.mrf.mxu0 }
 0x47d   :  { %3366 = vst [vmem:[#allocation2 + $0x188] sm:$0xff] %v3244_v32  ;;  %v3239_v12 = vadd.f32 %v6203_v56, %v3238_v30 }
 0x47e   :  { %v4611_v33 = vpop.f32.mrf.mxu0 }
 0x47f   :  { %3365 = vst [vmem:[#allocation2 + $0x180] sm:$0xff] %v3239_v12  ;;  %v3254_v2 = vadd.f32 %v4611_v33, %v6203_v56 }
 0x480   :  { %v3248_v35 = vpop.f32.mrf.mxu0 }
 0x481   :  { %3368 = vst [vmem:[#allocation2 + $0x198] sm:$0xff] %v3254_v2  ;;  %v3249_v36 = vadd.f32 %v6203_v56, %v3248_v35 }
 0x482   :  { %v4614_v38 = vpop.f32.mrf.mxu0 }
 0x483   :  { %3367 = vst [vmem:[#allocation2 + $0x190] sm:$0xff] %v3249_v36  ;;  %v3264_v17 = vadd.f32 %v4614_v38, %v6203_v56 }
 0x484   :  { %v3258_v39 = vpop.f32.mrf.mxu0 }
 0x485   :  { %3370 = vst [vmem:[#allocation2 + $0x1a8] sm:$0xff] %v3264_v17  ;;  %v3259_v40 = vadd.f32 %v6203_v56, %v3258_v39 }
 0x486   :  { %v4617_v59 = vpop.f32.mrf.mxu0 }
 0x487   :  { %3369 = vst [vmem:[#allocation2 + $0x1a0] sm:$0xff] %v3259_v40  ;;  %v3274_v41 = vadd.f32 %v4617_v59, %v6203_v56 }
 0x488   :  { %v3268_v42 = vpop.f32.mrf.mxu0 }
 0x489   :  { %3372 = vst [vmem:[#allocation2 + $0x1b8] sm:$0xff] %v3274_v41  ;;  %v3269_v37 = vadd.f32 %v6203_v56, %v3268_v42 }
 0x48a   :  { %v4620_v43 = vpop.f32.mrf.mxu0 }
 0x48b   :  { %3371 = vst [vmem:[#allocation2 + $0x1b0] sm:$0xff] %v3269_v37  ;;  %v3284_v9 = vadd.f32 %v4620_v43, %v6203_v56 }
 0x48c   :  { %v3278_v46 = vpop.f32.mrf.mxu0 }
 0x48d   :  { %3374 = vst [vmem:[#allocation2 + $0x1c8] sm:$0xff] %v3284_v9  ;;  %v3279_v47 = vadd.f32 %v6203_v56, %v3278_v46 }
 0x48e   :  { %v4623_v48 = vpop.f32.mrf.mxu0 }
 0x48f   :  { %3373 = vst [vmem:[#allocation2 + $0x1c0] sm:$0xff] %v3279_v47  ;;  %v3294_v49 = vadd.f32 %v4623_v48, %v6203_v56 }
 0x490   :  { %v3288_v51 = vpop.f32.mrf.mxu0 }
 0x491   :  { %3376 = vst [vmem:[#allocation2 + $0x1d8] sm:$0xff] %v3294_v49  ;;  %v3289_v27 = vadd.f32 %v6203_v56, %v3288_v51 }
 0x492   :  { %v4626_v44 = vpop.f32.mrf.mxu0 }
 0x493   :  { %3375 = vst [vmem:[#allocation2 + $0x1d0] sm:$0xff] %v3289_v27  ;;  %v3304_v52 = vadd.f32 %v4626_v44, %v6203_v56 }
 0x494   :  { %v3298_v53 = vpop.f32.mrf.mxu0 }
 0x495   :  { %3378 = vst [vmem:[#allocation2 + $0x1e8] sm:$0xff] %v3304_v52  ;;  %v3299_v54 = vadd.f32 %v6203_v56, %v3298_v53 }
 0x496   :  { %v4629_v45 = vpop.f32.mrf.mxu0 }
 0x497   :  { %3377 = vst [vmem:[#allocation2 + $0x1e0] sm:$0xff] %v3299_v54  ;;  %v3314_v55 = vadd.f32 %v4629_v45, %v6203_v56 }
 0x498   :  { %v3308_v57 = vpop.f32.mrf.mxu0 }
 0x499   :  { %3380 = vst [vmem:[#allocation2 + $0x1f8] sm:$0xff] %v3314_v55  ;;  %v3309_v58 = vadd.f32 %v6203_v56, %v3308_v57 }
 0x49b   :  { %3379 = vst [vmem:[#allocation2 + $0x1f0] sm:$0xff] %v3309_v58 }
 0x49c   :  { %5164 = shalt.err (!%p5161_p4)
}
 0x49d   :  { %s5176_s12 = smov 128   ;;  %s5177_s13 = smov 8  }
 0x49e   :  { %3392 = dma.vmem_to_hbm [thread:$0]  %s3387_s3, 8192, %s6283_s11, [#allocation3], %s5176_s12, %s5176_s12, %s5177_s13  }
 0x49f   :  { %5173 = dma.done.wait [#allocation3], 8192  }
 0x4a0   :  { %5174 = vsyncadd [#allocation3], 4294959104 }
 0x4a1   :  { %3396 = vsyncpa [#allocation3], 1 }

// kernel: tpu_custom_call.1
= control target key start
LH: loop header
LB: loop body
LE: loop exit
PB: predicated region body
PF: predicated region fallthrough
CT: control target
= control target key end

     0   :  { %vm114_vm0 = vcmask 261120   ;;  %s6272_s0 = inlined_call_operand.vmem [shape: f32[512,32], index: 0, kind: input, shape index: {}]   ;;  %s6273_s1 = inlined_call_operand.vmem [shape: f32[32,64], index: 1, kind: input, shape index: {}]   ;;  %s6274_s2 = inlined_call_operand.vmem [shape: f32[1,64], index: 2, kind: input, shape index: {}]   ;;  %s6275_s3 = inlined_call_operand.vmem [shape: f32[64,64], index: 3, kind: input, shape index: {}]   ;;  %s6276_s4 = inlined_call_operand.vmem [shape: f32[1,64], index: 4, kind: input, shape index: {}]   ;;  %s6277_s5 = inlined_call_operand.vmem [shape: f32[64,64], index: 5, kind: input, shape index: {}]   ;;  %s6278_s6 = inlined_call_operand.vmem [shape: f32[1,64], index: 6, kind: input, shape index: {}]   ;;  %s6279_s7 = inlined_call_operand.vmem [shape: f32[64,64], index: 7, kind: input, shape index: {}]   ;;  %s6280_s8 = inlined_call_operand.vmem [shape: f32[1,64], index: 8, kind: input, shape index: {}]   ;;  %s6281_s9 = inlined_call_operand.vmem [shape: f32[64,128], index: 9, kind: input, shape index: {}]   ;;  %s6282_s10 = inlined_call_operand.vmem [shape: f32[1,128], index: 10, kind: input, shape index: {}]   ;;  %s6283_s11 = inlined_call_operand.hbm [shape: f32[512,128], index: 11, kind: output, shape index: {}]  }
   0x1   :  { %v106_v0 = vld [vmem:[%s6273_s1 + $0x18] sm:$0xff]  ;;  %v105_v1 = vld [vmem:[%s6273_s1 + $0x10] sm:$0xff]  ;;  %v39_v2 = vld [vmem:[%s6272_s0] sm:$0xff] }
   0x2   :  { %4078 = vmatprep.subr.mxu0 %v106_v0  ;;  %4630 = vmatprep.subr.mxu1 %v106_v0  ;;  %v104_v3 = vld [vmem:[%s6273_s1 + $0x8] sm:$0xff]  ;;  %v103_v4 = vld [vmem:[%s6273_s1] sm:$0xff]  ;;  %v41_v6 = vld [vmem:[%s6272_s0 + $0x10] sm:$0xff] }
   0x3   :  { %4079 = vmatpush3.msra.mxu0 %v106_v0  ;;  %4086 = vmatprep.mubr.msk.f32.mxu0 %vm114_vm0, %v39_v2  ;;  %v40_v5 = vld [vmem:[%s6272_s0 + $0x8] sm:$0xff]  ;;  %v42_v7 = vld [vmem:[%s6272_s0 + $0x18] sm:$0xff]  ;;  %v43_v8 = vld [vmem:[%s6272_s0 + $0x20] sm:$0xff] }
   0x4   :  { %4080 = vmatprep.subr.mxu0 %v105_v1  ;;  %4634 = vmatpush3.msra.mxu1 %v106_v0  ;;  %v71_v9 = vld [vmem:[%s6272_s0 + $0x100] sm:$0xff]  ;;  %v72_v10 = vld [vmem:[%s6272_s0 + $0x108] sm:$0xff]  ;;  %v73_v11 = vld [vmem:[%s6272_s0 + $0x110] sm:$0xff] }
   0x5   :  { %4081 = vmatpush3.msra.mxu0 %v105_v1  ;;  %4631 = vmatprep.subr.mxu1 %v105_v1  ;;  %v44_v12 = vld [vmem:[%s6272_s0 + $0x28] sm:$0xff]  ;;  %v45_v13 = vld [vmem:[%s6272_s0 + $0x30] sm:$0xff]  ;;  %v74_v14 = vld [vmem:[%s6272_s0 + $0x118] sm:$0xff] }
   0x6   :  { %4082 = vmatprep.subr.mxu0 %v104_v3  ;;  %4635 = vmatpush3.msra.mxu1 %v105_v1  ;;  %v75_v15 = vld [vmem:[%s6272_s0 + $0x120] sm:$0xff]  ;;  %v46_v16 = vld [vmem:[%s6272_s0 + $0x38] sm:$0xff]  ;;  %v76_v18 = vld [vmem:[%s6272_s0 + $0x128] sm:$0xff] }
   0x7   :  { %4083 = vmatpush3.msra.mxu0 %v104_v3  ;;  %4632 = vmatprep.subr.mxu1 %v104_v3  ;;  %v47_v17 = vld [vmem:[%s6272_s0 + $0x40] sm:$0xff]  ;;  %v77_v19 = vld [vmem:[%s6272_s0 + $0x130] sm:$0xff]  ;;  %v48_v20 = vld [vmem:[%s6272_s0 + $0x48] sm:$0xff] }
   0x8   :  { %4084 = vmatprep.subr.mxu0 %v103_v4  ;;  %4636 = vmatpush3.msra.mxu1 %v104_v3  ;;  %v763_v21 = vld [vmem:[%s6275_s3 + $0x38] sm:$0xff]  ;;  %v49_v22 = vld [vmem:[%s6272_s0 + $0x50] sm:$0xff]  ;;  %v79_v25 = vld [vmem:[%s6272_s0 + $0x140] sm:$0xff] }
   0x9   :  { %4085 = vmatpush3.msra.mxu0 %v103_v4  ;;  %4633 = vmatprep.subr.mxu1 %v103_v4  ;;  %v78_v23 = vld [vmem:[%s6272_s0 + $0x138] sm:$0xff]  ;;  %v762_v24 = vld [vmem:[%s6275_s3 + $0x30] sm:$0xff] }
   0xa   :  { %4087 = vmatmul.mubr.msk.f32.vlgmr.msra.gmra.mxu0 %vm114_vm0, %v40_v5  ;;  %4637 = vmatpush3.msra.mxu1 %v103_v4 }
   0xb   :  { %4089 = vmatprep.mubr.msk.f32.mxu0 %vm114_vm0, %v41_v6  ;;  %4134 = vmatprep.mubr.msk.f32.mxu1 %vm114_vm0, %v71_v9 }
   0xc   :  { %4135 = vmatmul.mubr.msk.f32.vlgmr.msra.gmra.mxu1 %vm114_vm0, %v72_v10  ;;  %4182 = vmatprep.subr.mxu1 %v763_v21 }
   0xd   :  { %4137 = vmatprep.mubr.msk.f32.mxu1 %vm114_vm0, %v73_v11  ;;  %4183 = vmatpush3.msra.mxu1 %v763_v21 }
   0xe   :  { %4090 = vmatmul.mubr.msk.f32.gmra.mxu0 %vm114_vm0, %v42_v7 }
   0xf   :  { %4092 = vmatprep.mubr.msk.f32.mxu0 %vm114_vm0, %v43_v8 }
  0x10   :  { %4138 = vmatmul.mubr.msk.f32.gmra.mxu1 %vm114_vm0, %v74_v14 }
  0x11   :  { %4140 = vmatprep.mubr.msk.f32.mxu1 %vm114_vm0, %v75_v15 }
  0x12   :  { %4093 = vmatmul.mubr.msk.f32.gmra.mxu0 %vm114_vm0, %v44_v12 }
  0x13   :  { %4095 = vmatprep.mubr.msk.f32.mxu0 %vm114_vm0, %v45_v13 }
  0x14   :  { %4141 = vmatmul.mubr.msk.f32.gmra.mxu1 %vm114_vm0, %v76_v18 }
  0x15   :  { %4143 = vmatprep.mubr.msk.f32.mxu1 %vm114_vm0, %v77_v19 }
  0x16   :  { %4096 = vmatmul.mubr.msk.f32.gmra.mxu0 %vm114_vm0, %v46_v16 }
  0x17   :  { %4098 = vmatprep.mubr.msk.f32.mxu0 %vm114_vm0, %v47_v17 }
  0x18   :  { %16 = vsyncpa [#allocation3], 0  ;;  %4184 = vmatprep.subr.mxu1 %v762_v24  ;;  %v761_v26 = vld [vmem:[%s6275_s3 + $0x28] sm:$0xff]  ;;  %v50_v27 = vld [vmem:[%s6272_s0 + $0x58] sm:$0xff]  ;;  %4144 = vmatmul.mubr.msk.f32.gmra.mxu1 %vm114_vm0, %v78_v23  ;;  %vm771_vm1 = vcmask 523264  }
  0x19   :  { %v51_v28 = vld [vmem:[%s6272_s0 + $0x60] sm:$0xff]  ;;  %4146 = vmatprep.mubr.msk.f32.mxu1 %vm114_vm0, %v79_v25  ;;  %v80_v29 = vld [vmem:[%s6272_s0 + $0x148] sm:$0xff]  ;;  %4185 = vmatpush3.msra.mxu1 %v762_v24  ;;  %v81_v30 = vld [vmem:[%s6272_s0 + $0x150] sm:$0xff] }
  0x1a   :  { %4099 = vmatmul.mubr.msk.f32.gmra.mxu0 %vm114_vm0, %v48_v20  ;;  %4186 = vmatprep.subr.mxu1 %v761_v26  ;;  %v760_v31 = vld [vmem:[%s6275_s3 + $0x20] sm:$0xff]  ;;  %v52_v32 = vld [vmem:[%s6272_s0 + $0x68] sm:$0xff]  ;;  %v759_v33 = vld [vmem:[%s6275_s3 + $0x18] sm:$0xff] }
  0x1b   :  { %4101 = vmatprep.mubr.msk.f32.mxu0 %vm114_vm0, %v49_v22  ;;  %4187 = vmatpush3.msra.mxu1 %v761_v26  ;;  %v53_v34 = vld [vmem:[%s6272_s0 + $0x70] sm:$0xff]  ;;  %v82_v35 = vld [vmem:[%s6272_s0 + $0x158] sm:$0xff]  ;;  %v83_v36 = vld [vmem:[%s6272_s0 + $0x160] sm:$0xff] }
  0x1c   :  { %4147 = vmatmul.mubr.msk.f32.gmra.mxu1 %vm114_vm0, %v80_v29  ;;  %4188 = vmatprep.subr.mxu1 %v760_v31  ;;  %v758_v37 = vld [vmem:[%s6275_s3 + $0x10] sm:$0xff]  ;;  %v54_v38 = vld [vmem:[%s6272_s0 + $0x78] sm:$0xff]  ;;  %v55_v39 = vld [vmem:[%s6272_s0 + $0x80] sm:$0xff] }
  0x1d   :  { %4149 = vmatprep.mubr.msk.f32.mxu1 %vm114_vm0, %v81_v30  ;;  %4189 = vmatpush3.msra.mxu1 %v760_v31  ;;  %v84_v40 = vld [vmem:[%s6272_s0 + $0x168] sm:$0xff]  ;;  %v85_v41 = vld [vmem:[%s6272_s0 + $0x170] sm:$0xff]  ;;  %v86_v44 = vld [vmem:[%s6272_s0 + $0x178] sm:$0xff] }
  0x1e   :  { %4102 = vmatmul.mubr.msk.f32.gmra.mxu0 %vm114_vm0, %v50_v27  ;;  %4190 = vmatprep.subr.mxu1 %v759_v33  ;;  %v56_v42 = vld [vmem:[%s6272_s0 + $0x88] sm:$0xff]  ;;  %v57_v43 = vld [vmem:[%s6272_s0 + $0x90] sm:$0xff]  ;;  %v87_v45 = vld [vmem:[%s6272_s0 + $0x180] sm:$0xff] }
  0x1f   :  { %4104 = vmatprep.mubr.msk.f32.mxu0 %vm114_vm0, %v51_v28  ;;  %4191 = vmatpush3.msra.mxu1 %v759_v33  ;;  %v58_v46 = vld [vmem:[%s6272_s0 + $0x98] sm:$0xff]  ;;  %v59_v47 = vld [vmem:[%s6272_s0 + $0xa0] sm:$0xff]  ;;  %v88_v48 = vld [vmem:[%s6272_s0 + $0x188] sm:$0xff] }
  0x20   :  { %4150 = vmatmul.mubr.msk.f32.gmra.mxu1 %vm114_vm0, %v82_v35  ;;  %4192 = vmatprep.subr.mxu1 %v758_v37  ;;  %v89_v49 = vld [vmem:[%s6272_s0 + $0x190] sm:$0xff]  ;;  %v60_v50 = vld [vmem:[%s6272_s0 + $0xa8] sm:$0xff]  ;;  %v90_v52 = vld [vmem:[%s6272_s0 + $0x198] sm:$0xff] }
  0x21   :  { %4152 = vmatprep.mubr.msk.f32.mxu1 %vm114_vm0, %v83_v36  ;;  %4193 = vmatpush3.msra.mxu1 %v758_v37  ;;  %v61_v51 = vld [vmem:[%s6272_s0 + $0xb0] sm:$0xff]  ;;  %v91_v53 = vld [vmem:[%s6272_s0 + $0x1a0] sm:$0xff]  ;;  %v62_v54 = vld [vmem:[%s6272_s0 + $0xb8] sm:$0xff] }
  0x22   :  { %4105 = vmatmul.mubr.msk.f32.gmra.mxu0 %vm114_vm0, %v52_v32  ;;  %v63_v55 = vld [vmem:[%s6272_s0 + $0xc0] sm:$0xff]  ;;  %v92_v56 = vld [vmem:[%s6272_s0 + $0x1a8] sm:$0xff]  ;;  %v93_v57 = vld [vmem:[%s6272_s0 + $0x1b0] sm:$0xff] }
  0x23   :  { %4107 = vmatprep.mubr.msk.f32.mxu0 %vm114_vm0, %v53_v34  ;;  %v64_v58 = vld [vmem:[%s6272_s0 + $0xc8] sm:$0xff]  ;;  %v65_v59 = vld [vmem:[%s6272_s0 + $0xd0] sm:$0xff]  ;;  %v94_v60 = vld [vmem:[%s6272_s0 + $0x1b8] sm:$0xff] }
  0x24   :  { %4153 = vmatmul.mubr.msk.f32.gmra.mxu1 %vm114_vm0, %v84_v40  ;;  %v95_v61 = vld [vmem:[%s6272_s0 + $0x1c0] sm:$0xff]  ;;  %v66_v62 = vld [vmem:[%s6272_s0 + $0xd8] sm:$0xff]  ;;  %v96_v0 = vld [vmem:[%s6272_s0 + $0x1c8] sm:$0xff] }
  0x25   :  { %4155 = vmatprep.mubr.msk.f32.mxu1 %vm114_vm0, %v85_v41  ;;  %v67_v63 = vld [vmem:[%s6272_s0 + $0xe0] sm:$0xff]  ;;  %v97_v1 = vld [vmem:[%s6272_s0 + $0x1d0] sm:$0xff]  ;;  %v68_v2 = vld [vmem:[%s6272_s0 + $0xe8] sm:$0xff] }
  0x26   :  { %4108 = vmatmul.mubr.msk.f32.gmra.mxu0 %vm114_vm0, %v54_v38  ;;  %v69_v3 = vld [vmem:[%s6272_s0 + $0xf0] sm:$0xff]  ;;  %v98_v4 = vld [vmem:[%s6272_s0 + $0x1d8] sm:$0xff]  ;;  %v99_v5 = vld [vmem:[%s6272_s0 + $0x1e0] sm:$0xff] }
  0x27   :  { %4110 = vmatprep.mubr.msk.f32.mxu0 %vm114_vm0, %v55_v39  ;;  %v70_v6 = vld [vmem:[%s6272_s0 + $0xf8] sm:$0xff]  ;;  %v100_v7 = vld [vmem:[%s6272_s0 + $0x1e8] sm:$0xff]  ;;  %v101_v8 = vld [vmem:[%s6272_s0 + $0x1f0] sm:$0xff] }
  0x28   :  { %4156 = vmatmul.mubr.msk.f32.gmra.mxu1 %vm114_vm0, %v86_v44  ;;  %v102_v9 = vld [vmem:[%s6272_s0 + $0x1f8] sm:$0xff]  ;;  %v757_v10 = vld [vmem:[%s6275_s3 + $0x8] sm:$0xff]  ;;  %v756_v11 = vld [vmem:[%s6275_s3] sm:$0xff] }
  0x29   :  { %4158 = vmatprep.mubr.msk.f32.mxu1 %vm114_vm0, %v87_v45  ;;  %4194 = vmatprep.subr.mxu1 %v757_v10  ;;  %v5533_v12 = vld [vmem:[%s6274_s2] ss:$0 sm:$0xff]  ;;  %v1420_v36 = vld [vmem:[%s6277_s5 + $0x38] sm:$0xff]  ;;  %v1419_v37 = vld [vmem:[%s6277_s5 + $0x30] sm:$0xff] }
  0x2a   :  { %4111 = vmatmul.mubr.msk.f32.gmra.mxu0 %vm114_vm0, %v56_v42  ;;  %4195 = vmatpush3.msra.mxu1 %v757_v10  ;;  %v1418_v42 = vld [vmem:[%s6277_s5 + $0x28] sm:$0xff] }
  0x2b   :  { %4113 = vmatprep.mubr.msk.f32.mxu0 %vm114_vm0, %v57_v43  ;;  %4196 = vmatprep.subr.mxu1 %v756_v11 }
  0x2c   :  { %4159 = vmatmul.mubr.msk.f32.gmra.mxu1 %vm114_vm0, %v88_v48  ;;  %4294 = vmatprep.subr.mxu0 %v1420_v36 }
  0x2d   :  { %4161 = vmatprep.mubr.msk.f32.mxu1 %vm114_vm0, %v89_v49  ;;  %4197 = vmatpush3.msra.mxu1 %v756_v11 }
  0x2e   :  { %4114 = vmatmul.mubr.msk.f32.gmra.mxu0 %vm114_vm0, %v58_v46  ;;  %v1417_v46 = vld [vmem:[%s6277_s5 + $0x20] sm:$0xff] }
  0x2f   :  { %4116 = vmatprep.mubr.msk.f32.mxu0 %vm114_vm0, %v59_v47  ;;  %4295 = vmatpush3.msra.mxu0 %v1420_v36 }
  0x30   :  { %4162 = vmatmul.mubr.msk.f32.gmra.mxu1 %vm114_vm0, %v90_v52  ;;  %4296 = vmatprep.subr.mxu0 %v1419_v37 }
  0x31   :  { %4164 = vmatprep.mubr.msk.f32.mxu1 %vm114_vm0, %v91_v53  ;;  %4297 = vmatpush3.msra.mxu0 %v1419_v37 }
  0x32   :  { %4117 = vmatmul.mubr.msk.f32.gmra.mxu0 %vm114_vm0, %v60_v50  ;;  %4298 = vmatprep.subr.mxu0 %v1418_v42 }
  0x33   :  { %4119 = vmatprep.mubr.msk.f32.mxu0 %vm114_vm0, %v61_v51  ;;  %4299 = vmatpush3.msra.mxu0 %v1418_v42  ;;  %v1416_v51 = vld [vmem:[%s6277_s5 + $0x18] sm:$0xff] }
  0x34   :  { %4165 = vmatmul.mubr.msk.f32.gmra.mxu1 %vm114_vm0, %v92_v56  ;;  %4300 = vmatprep.subr.mxu0 %v1417_v46 }
  0x35   :  { %4167 = vmatprep.mubr.msk.f32.mxu1 %vm114_vm0, %v93_v57  ;;  %4301 = vmatpush3.msra.mxu0 %v1417_v46 }
  0x36   :  { %4120 = vmatmul.mubr.msk.f32.gmra.mxu0 %vm114_vm0, %v62_v54  ;;  %4302 = vmatprep.subr.mxu0 %v1416_v51 }
  0x37   :  { %4122 = vmatprep.mubr.msk.f32.mxu0 %vm114_vm0, %v63_v55  ;;  %v1415_v55 = vld [vmem:[%s6277_s5 + $0x10] sm:$0xff]  ;;  %4303 = vmatpush3.msra.mxu0 %v1416_v51 }
  0x38   :  { %4168 = vmatmul.mubr.msk.f32.gmra.mxu1 %vm114_vm0, %v94_v60  ;;  %4304 = vmatprep.subr.mxu0 %v1415_v55 }
  0x39   :  { %4170 = vmatprep.mubr.msk.f32.mxu1 %vm114_vm0, %v95_v61  ;;  %4305 = vmatpush3.msra.mxu0 %v1415_v55 }
  0x3a   :  { %4123 = vmatmul.mubr.msk.f32.gmra.mxu0 %vm114_vm0, %v64_v58 }
  0x3b   :  { %4125 = vmatprep.mubr.msk.f32.mxu0 %vm114_vm0, %v65_v59 }
  0x3c   :  { %4171 = vmatmul.mubr.msk.f32.gmra.mxu1 %vm114_vm0, %v96_v0 }
  0x3d   :  { %4173 = vmatprep.mubr.msk.f32.mxu1 %vm114_vm0, %v97_v1 }
  0x3e   :  { %4126 = vmatmul.mubr.msk.f32.gmra.mxu0 %vm114_vm0, %v66_v62 }
  0x3f   :  { %4128 = vmatprep.mubr.msk.f32.mxu0 %vm114_vm0, %v67_v63 }
  0x40   :  { %4174 = vmatmul.mubr.msk.f32.gmra.mxu1 %vm114_vm0, %v98_v4 }
  0x41   :  { %4176 = vmatprep.mubr.msk.f32.mxu1 %vm114_vm0, %v99_v5 }
  0x42   :  { %4129 = vmatmul.mubr.msk.f32.gmra.mxu0 %vm114_vm0, %v68_v2 }
  0x43   :  { %4131 = vmatprep.mubr.msk.f32.mxu0 %vm114_vm0, %v69_v3 }
  0x44   :  { %4177 = vmatmul.mubr.msk.f32.gmra.mxu1 %vm114_vm0, %v100_v7 }
  0x45   :  { %4179 = vmatprep.mubr.msk.f32.mxu1 %vm114_vm0, %v101_v8 }
  0x46   :  { %4132 = vmatmul.mubr.msk.f32.gmra.mxu0 %vm114_vm0, %v70_v6 }
  0x48   :  { %4180 = vmatmul.mubr.msk.f32.gmra.mxu1 %vm114_vm0, %v102_v9 }
  0xca   :  { %v4088_v13 = vpop.f32.mrf.mxu0 }
  0xcb   :  { %v379_v14 = vadd.f32 %v4088_v13, %v5533_v12 }
  0xcc   :  { %v373_v15 = vpop.f32.mrf.mxu0  ;;  %v5537_v18 = vpop.f32.mrf.mxu1 }
  0xcd   :  { %v374_v16 = vadd.f32 %v5533_v12, %v373_v15 }
  0xce   :  { %v4091_v17 = vpop.f32.mrf.mxu0  ;;  %v5541_v22 = vpop.f32.mrf.mxu1 }
  0xcf   :  { %4641 = vtanh.f32 %v374_v16  ;;  %v389_v19 = vadd.f32 %v4091_v17, %v5533_v12 }
  0xd0   :  { %4643 = vtanh.f32 %v379_v14  ;;  %v383_v20 = vpop.f32.mrf.mxu0  ;;  %v5543_v24 = vpop.f32.mrf.mxu1 }
  0xd1   :  { %v384_v21 = vadd.f32 %v5533_v12, %v383_v20 }
  0xd2   :  { %v4094_v23 = vpop.f32.mrf.mxu0  ;;  %v5547_v28 = vpop.f32.mrf.mxu1 }
  0xd3   :  { %4645 = vtanh.f32 %v384_v21  ;;  %v399_v25 = vadd.f32 %v4094_v23, %v5533_v12 }
  0xd4   :  { %4647 = vtanh.f32 %v389_v19  ;;  %v393_v26 = vpop.f32.mrf.mxu0  ;;  %v5549_v30 = vpop.f32.mrf.mxu1 }
  0xd5   :  { %v394_v27 = vadd.f32 %v5533_v12, %v393_v26 }
  0xd6   :  { %v4097_v29 = vpop.f32.mrf.mxu0  ;;  %v5553_v34 = vpop.f32.mrf.mxu1 }
  0xd7   :  { %4649 = vtanh.f32 %v394_v27  ;;  %v409_v31 = vadd.f32 %v4097_v29, %v5533_v12 }
  0xd8   :  { %4651 = vtanh.f32 %v399_v25  ;;  %v403_v32 = vpop.f32.mrf.mxu0  ;;  %v5562_v41 = vpop.f32.mrf.mxu1 }
  0xd9   :  { %v404_v33 = vadd.f32 %v5533_v12, %v403_v32 }
  0xda   :  { %v4100_v35 = vpop.f32.mrf.mxu0  ;;  %v5574_v50 = vpop.f32.mrf.mxu1 }
  0xdb   :  { %4653 = vtanh.f32 %v404_v33  ;;  %v419_v39 = vadd.f32 %v4100_v35, %v5533_v12 }
  0xdc   :  { %v4642_v38 = vpop.eup %4641  ;;  %4655 = vtanh.f32 %v409_v31  ;;  %v413_v40 = vpop.f32.mrf.mxu0 }
  0xdd   :  { %v4644_v43 = vpop.eup %4643  ;;  %v414_v44 = vadd.f32 %v5533_v12, %v413_v40  ;;  %4198 = vmatprep.mubr.msk.f32.mxu1 %vm771_vm1, %v4642_v38  ;;  %v5586_v59 = vpop.f32.mrf.mxu1 }
  0xde   :  { %v4103_v45 = vpop.f32.mrf.mxu0  ;;  %4199 = vmatmul.mubr.msk.f32.vlgmr.msra.gmra.mxu1 %vm771_vm1, %v4644_v43 }
  0xdf   :  { %4657 = vtanh.f32 %v414_v44  ;;  %v429_v48 = vadd.f32 %v4103_v45, %v5533_v12  ;;  %v5592_v2 = vpop.f32.mrf.mxu1 }
  0xe0   :  { %v4646_v47 = vpop.eup %4645  ;;  %4659 = vtanh.f32 %v419_v39  ;;  %v423_v49 = vpop.f32.mrf.mxu0 }
  0xe1   :  { %v4648_v52 = vpop.eup %4647  ;;  %v424_v53 = vadd.f32 %v5533_v12, %v423_v49  ;;  %4201 = vmatprep.mubr.msk.f32.mxu1 %vm771_vm1, %v4646_v47  ;;  %v5598_v9 = vpop.f32.mrf.mxu1 }
  0xe2   :  { %v4106_v54 = vpop.f32.mrf.mxu0  ;;  %4202 = vmatmul.mubr.msk.f32.gmra.mxu1 %vm771_vm1, %v4648_v52 }
  0xe3   :  { %4661 = vtanh.f32 %v424_v53  ;;  %v439_v57 = vadd.f32 %v4106_v54, %v5533_v12  ;;  %v5604_v17 = vpop.f32.mrf.mxu1 }
  0xe4   :  { %v4650_v56 = vpop.eup %4649  ;;  %4663 = vtanh.f32 %v429_v48  ;;  %v433_v58 = vpop.f32.mrf.mxu0 }
  0xe5   :  { %v4652_v60 = vpop.eup %4651  ;;  %v434_v61 = vadd.f32 %v5533_v12, %v433_v58  ;;  %4204 = vmatprep.mubr.msk.f32.mxu1 %vm771_vm1, %v4650_v56  ;;  %v5610_v27 = vpop.f32.mrf.mxu1 }
  0xe6   :  { %v4109_v62 = vpop.f32.mrf.mxu0  ;;  %4205 = vmatmul.mubr.msk.f32.gmra.mxu1 %vm771_vm1, %v4652_v60 }
  0xe7   :  { %4665 = vtanh.f32 %v434_v61  ;;  %v449_v0 = vadd.f32 %v4109_v62, %v5533_v12  ;;  %v5616_v37 = vpop.f32.mrf.mxu1 }
  0xe8   :  { %v4654_v63 = vpop.eup %4653  ;;  %4667 = vtanh.f32 %v439_v57  ;;  %v443_v1 = vpop.f32.mrf.mxu0 }
  0xe9   :  { %v4656_v3 = vpop.eup %4655  ;;  %v444_v4 = vadd.f32 %v5533_v12, %v443_v1  ;;  %4207 = vmatprep.mubr.msk.f32.mxu1 %vm771_vm1, %v4654_v63  ;;  %v5622_v45 = vpop.f32.mrf.mxu1  ;;  %v534_v1 = vadd.f32 %v5533_v12, %v5541_v22  ;;  %v544_v22 = vadd.f32 %v5533_v12, %v5547_v28  ;;  %v549_v28 = vadd.f32 %v5543_v24, %v5533_v12 }
  0xea   :  { %v4112_v5 = vpop.f32.mrf.mxu0  ;;  %4208 = vmatmul.mubr.msk.f32.gmra.mxu1 %vm771_vm1, %v4656_v3 }
  0xeb   :  { %4669 = vtanh.f32 %v444_v4  ;;  %v459_v7 = vadd.f32 %v4112_v5, %v5533_v12  ;;  %v5628_v53 = vpop.f32.mrf.mxu1 }
  0xec   :  { %v4658_v6 = vpop.eup %4657  ;;  %4671 = vtanh.f32 %v449_v0  ;;  %v453_v8 = vpop.f32.mrf.mxu0 }
  0xed   :  { %v4660_v10 = vpop.eup %4659  ;;  %v454_v11 = vadd.f32 %v5533_v12, %v453_v8  ;;  %4210 = vmatprep.mubr.msk.f32.mxu1 %vm771_vm1, %v4658_v6  ;;  %v5634_v61 = vpop.f32.mrf.mxu1 }
  0xee   :  { %v4115_v13 = vpop.f32.mrf.mxu0  ;;  %4211 = vmatmul.mubr.msk.f32.gmra.mxu1 %vm771_vm1, %v4660_v10 }
  0xef   :  { %4673 = vtanh.f32 %v454_v11  ;;  %v469_v15 = vadd.f32 %v4115_v13, %v5533_v12  ;;  %v5642_v6 = vpop.f32.mrf.mxu1  ;;  %v539_v11 = vadd.f32 %v5537_v18, %v5533_v12  ;;  %v564_v18 = vadd.f32 %v5533_v12, %v5574_v50 }
  0xf0   :  { %v4662_v14 = vpop.eup %4661  ;;  %4675 = vtanh.f32 %v459_v7  ;;  %v463_v16 = vpop.f32.mrf.mxu0  ;;  %v569_v50 = vadd.f32 %v5562_v41, %v5533_v12 }
  0xf1   :  { %v4664_v19 = vpop.eup %4663  ;;  %v464_v20 = vadd.f32 %v5533_v12, %v463_v16  ;;  %4213 = vmatprep.mubr.msk.f32.mxu1 %vm771_vm1, %v4662_v14  ;;  %v5651_v13 = vpop.f32.mrf.mxu1 }
  0xf2   :  { %v4118_v21 = vpop.f32.mrf.mxu0  ;;  %4214 = vmatmul.mubr.msk.f32.gmra.mxu1 %vm771_vm1, %v4664_v19 }
  0xf3   :  { %4677 = vtanh.f32 %v464_v20  ;;  %v479_v25 = vadd.f32 %v4118_v21, %v5533_v12  ;;  %v5659_v19 = vpop.f32.mrf.mxu1 }
  0xf4   :  { %v4666_v23 = vpop.eup %4665  ;;  %4679 = vtanh.f32 %v469_v15  ;;  %v473_v26 = vpop.f32.mrf.mxu0  ;;  %v554_v15 = vadd.f32 %v5533_v12, %v5553_v34  ;;  %v559_v34 = vadd.f32 %v5549_v30, %v5533_v12  ;;  %v584_v30 = vadd.f32 %v5533_v12, %v5604_v17 }
  0xf5   :  { %v4668_v29 = vpop.eup %4667  ;;  %v474_v31 = vadd.f32 %v5533_v12, %v473_v26  ;;  %4216 = vmatprep.mubr.msk.f32.mxu1 %vm771_vm1, %v4666_v23  ;;  %v5667_v23 = vpop.f32.mrf.mxu1  ;;  %v574_v26 = vadd.f32 %v5533_v12, %v5592_v2  ;;  %v579_v2 = vadd.f32 %v5586_v59, %v5533_v12  ;;  %v589_v17 = vadd.f32 %v5598_v9, %v5533_v12 }
  0xf6   :  { %v4121_v32 = vpop.f32.mrf.mxu0  ;;  %4217 = vmatmul.mubr.msk.f32.gmra.mxu1 %vm771_vm1, %v4668_v29  ;;  %v604_v59 = vadd.f32 %v5533_v12, %v5628_v53 }
  0xf7   :  { %4681 = vtanh.f32 %v474_v31  ;;  %v489_v35 = vadd.f32 %v4121_v32, %v5533_v12  ;;  %v633_v31 = vpop.f32.mrf.mxu1 }
  0xf8   :  { %v4670_v33 = vpop.eup %4669  ;;  %4683 = vtanh.f32 %v479_v25  ;;  %v483_v36 = vpop.f32.mrf.mxu0 }
  0xf9   :  { %v4672_v38 = vpop.eup %4671  ;;  %v484_v39 = vadd.f32 %v5533_v12, %v483_v36  ;;  %4219 = vmatprep.mubr.msk.f32.mxu1 %vm771_vm1, %v4670_v33  ;;  %v594_v36 = vadd.f32 %v5533_v12, %v5616_v37 }
  0xfa   :  { %v4124_v40 = vpop.f32.mrf.mxu0  ;;  %4220 = vmatmul.mubr.msk.f32.gmra.mxu1 %vm771_vm1, %v4672_v38 }
  0xfb   :  { %4685 = vtanh.f32 %v484_v39  ;;  %v499_v43 = vadd.f32 %v4124_v40, %v5533_v12 }
  0xfc   :  { %v4674_v42 = vpop.eup %4673  ;;  %4687 = vtanh.f32 %v489_v35  ;;  %v493_v44 = vpop.f32.mrf.mxu0 }
  0xfd   :  { %v4676_v46 = vpop.eup %4675  ;;  %v494_v47 = vadd.f32 %v5533_v12, %v493_v44  ;;  %4222 = vmatprep.mubr.msk.f32.mxu1 %vm771_vm1, %v4674_v42  ;;  %v5682_v35 = vpop.f32.mrf.mxu1  ;;  %v1414_v42 = vld [vmem:[%s6277_s5 + $0x8] sm:$0xff] }
  0xfe   :  { %v4127_v48 = vpop.f32.mrf.mxu0  ;;  %4223 = vmatmul.mubr.msk.f32.gmra.mxu1 %vm771_vm1, %v4676_v46  ;;  %4306 = vmatprep.subr.mxu0 %v1414_v42  ;;  %v614_v46 = vadd.f32 %v5533_v12, %v5642_v6  ;;  %v649_v6 = vadd.f32 %v5682_v35, %v5533_v12  ;;  %v2075_v35 = vld [vmem:[%s6279_s7 + $0x30] sm:$0xff] }
  0xff   :  { %4689 = vtanh.f32 %v494_v47  ;;  %v509_v51 = vadd.f32 %v4127_v48, %v5533_v12  ;;  %v643_v39 = vpop.f32.mrf.mxu1  ;;  %4307 = vmatpush3.msra.mxu0 %v1414_v42  ;;  %v609_v48 = vadd.f32 %v5622_v45, %v5533_v12 }
 0x100   :  { %v4678_v49 = vpop.eup %4677  ;;  %4691 = vtanh.f32 %v499_v43  ;;  %v503_v52 = vpop.f32.mrf.mxu0  ;;  %v599_v43 = vadd.f32 %v5610_v27, %v5533_v12  ;;  %v624_v27 = vadd.f32 %v5533_v12, %v5659_v19 }
 0x101   :  { %v4680_v54 = vpop.eup %4679  ;;  %v504_v55 = vadd.f32 %v5533_v12, %v503_v52  ;;  %4225 = vmatprep.mubr.msk.f32.mxu1 %vm771_vm1, %v4678_v49  ;;  %v4172_v9 = vpop.f32.mrf.mxu1  ;;  %v1413_v52 = vld [vmem:[%s6277_s5] sm:$0xff] }
 0x102   :  { %v4130_v56 = vpop.f32.mrf.mxu0  ;;  %4226 = vmatmul.mubr.msk.f32.gmra.mxu1 %vm771_vm1, %v4680_v54  ;;  %v619_v54 = vadd.f32 %v5634_v61, %v5533_v12  ;;  %4308 = vmatprep.subr.mxu0 %v1413_v52  ;;  %v644_v61 = vadd.f32 %v5533_v12, %v643_v39 }
 0x103   :  { %4693 = vtanh.f32 %v504_v55  ;;  %v519_v58 = vadd.f32 %v4130_v56, %v5533_v12  ;;  %v653_v49 = vpop.f32.mrf.mxu1  ;;  %4309 = vmatpush3.msra.mxu0 %v1413_v52  ;;  %v634_v56 = vadd.f32 %v5533_v12, %v633_v31 }
 0x104   :  { %v4682_v57 = vpop.eup %4681  ;;  %4695 = vtanh.f32 %v509_v51  ;;  %v513_v60 = vpop.f32.mrf.mxu0 }
 0x105   :  { %v4684_v62 = vpop.eup %4683  ;;  %v514_v63 = vadd.f32 %v5533_v12, %v513_v60  ;;  %4228 = vmatprep.mubr.msk.f32.mxu1 %vm771_vm1, %v4682_v57  ;;  %v4175_v45 = vpop.f32.mrf.mxu1 }
 0x106   :  { %v4133_v0 = vpop.f32.mrf.mxu0  ;;  %4229 = vmatmul.mubr.msk.f32.gmra.mxu1 %vm771_vm1, %v4684_v62 }
 0x107   :  { %4697 = vtanh.f32 %v514_v63  ;;  %v529_v4 = vadd.f32 %v4133_v0, %v5533_v12  ;;  %v663_v60 = vpop.f32.mrf.mxu1  ;;  %v639_v0 = vadd.f32 %v5667_v23, %v5533_v12 }
 0x108   :  { %v4686_v3 = vpop.eup %4685  ;;  %4699 = vtanh.f32 %v519_v58  ;;  %v523_v5 = vpop.f32.mrf.mxu0  ;;  %v629_v58 = vadd.f32 %v5651_v13, %v5533_v12 }
 0x109   :  { %v4688_v7 = vpop.eup %4687  ;;  %v524_v8 = vadd.f32 %v5533_v12, %v523_v5  ;;  %4231 = vmatprep.mubr.msk.f32.mxu1 %vm771_vm1, %v4686_v3  ;;  %4701 = vtanh.f32 %v534_v1  ;;  %v4178_v1 = vpop.f32.mrf.mxu1 }
 0x10a   :  { %4232 = vmatmul.mubr.msk.f32.gmra.mxu1 %vm771_vm1, %v4688_v7 }
 0x10b   :  { %4703 = vtanh.f32 %v524_v8  ;;  %v673_v7 = vpop.f32.mrf.mxu1 }
 0x10c   :  { %v4690_v10 = vpop.eup %4689  ;;  %4705 = vtanh.f32 %v529_v4  ;;  %v654_v4 = vadd.f32 %v5533_v12, %v653_v49 }
 0x10d   :  { %v4692_v14 = vpop.eup %4691  ;;  %4234 = vmatprep.mubr.msk.f32.mxu1 %vm771_vm1, %v4690_v10  ;;  %4707 = vtanh.f32 %v544_v22  ;;  %v664_v22 = vadd.f32 %v5533_v12, %v663_v60  ;;  %v4181_v13 = vpop.f32.mrf.mxu1 }
 0x10e   :  { %4235 = vmatmul.mubr.msk.f32.gmra.mxu1 %vm771_vm1, %v4692_v14  ;;  %4709 = vtanh.f32 %v539_v11  ;;  %v659_v11 = vadd.f32 %v4172_v9, %v5533_v12 }
 0x10f   :  { %4711 = vtanh.f32 %v554_v15  ;;  %v674_v15 = vadd.f32 %v5533_v12, %v673_v7  ;;  %v683_v19 = vpop.f32.mrf.mxu1 }
 0x110   :  { %v4694_v16 = vpop.eup %4693  ;;  %4713 = vtanh.f32 %v549_v28  ;;  %v669_v28 = vadd.f32 %v4175_v45, %v5533_v12 }
 0x111   :  { %v4696_v20 = vpop.eup %4695  ;;  %4237 = vmatprep.mubr.msk.f32.mxu1 %vm771_vm1, %v4694_v16  ;;  %4715 = vtanh.f32 %v564_v18  ;;  %v684_v18 = vadd.f32 %v5533_v12, %v683_v19 }
 0x112   :  { %4238 = vmatmul.mubr.msk.f32.gmra.mxu1 %vm771_vm1, %v4696_v20  ;;  %4717 = vtanh.f32 %v559_v34  ;;  %v679_v34 = vadd.f32 %v4178_v1, %v5533_v12 }
 0x113   :  { %4719 = vtanh.f32 %v574_v26 }
 0x114   :  { %v4698_v21 = vpop.eup %4697  ;;  %4721 = vtanh.f32 %v569_v50 }
 0x115   :  { %v4700_v25 = vpop.eup %4699  ;;  %4240 = vmatprep.mubr.msk.f32.mxu1 %vm771_vm1, %v4698_v21  ;;  %4723 = vtanh.f32 %v584_v30 }
 0x116   :  { %4241 = vmatmul.mubr.msk.f32.gmra.mxu1 %vm771_vm1, %v4700_v25  ;;  %v4702_v24 = vpop.eup %4701  ;;  %4725 = vtanh.f32 %v579_v2  ;;  %v2076_v2 = vld [vmem:[%s6279_s7 + $0x38] sm:$0xff] }
 0x117   :  { %4727 = vtanh.f32 %v594_v36  ;;  %4406 = vmatprep.subr.mxu1 %v2076_v2 }
 0x118   :  { %v4704_v29 = vpop.eup %4703  ;;  %4729 = vtanh.f32 %v589_v17  ;;  %4407 = vmatpush3.msra.mxu1 %v2076_v2 }
 0x119   :  { %v4706_v32 = vpop.eup %4705  ;;  %4243 = vmatprep.mubr.msk.f32.mxu1 %vm771_vm1, %v4704_v29  ;;  %4731 = vtanh.f32 %v604_v59  ;;  %4408 = vmatprep.subr.mxu1 %v2075_v35 }
 0x11a   :  { %4244 = vmatmul.mubr.msk.f32.gmra.mxu1 %vm771_vm1, %v4706_v32  ;;  %v4708_v33 = vpop.eup %4707  ;;  %4733 = vtanh.f32 %v599_v43  ;;  %v2074_v43 = vld [vmem:[%s6279_s7 + $0x28] sm:$0xff] }
 0x11b   :  { %4246 = vmatprep.mubr.msk.f32.mxu1 %vm771_vm1, %v4702_v24  ;;  %v4710_v41 = vpop.eup %4709  ;;  %4735 = vtanh.f32 %v614_v46  ;;  %v689_v24 = vadd.f32 %v4181_v13, %v5533_v12  ;;  %4409 = vmatpush3.msra.mxu1 %v2075_v35 }
 0x11c   :  { %v4712_v38 = vpop.eup %4711  ;;  %4737 = vtanh.f32 %v609_v48  ;;  %4410 = vmatprep.subr.mxu1 %v2074_v43 }
 0x11d   :  { %v4714_v40 = vpop.eup %4713  ;;  %4739 = vtanh.f32 %v624_v27  ;;  %4411 = vmatpush3.msra.mxu1 %v2074_v43 }
 0x11e   :  { %4247 = vmatmul.mubr.msk.f32.gmra.mxu1 %vm771_vm1, %v4710_v41  ;;  %v4716_v37 = vpop.eup %4715  ;;  %4741 = vtanh.f32 %v619_v54  ;;  %v5762_v41 = vld [vmem:[%s6276_s4] ss:$0 sm:$0xff]  ;;  %v2072_v54 = vld [vmem:[%s6279_s7 + $0x18] sm:$0xff] }
 0x11f   :  { %4249 = vmatprep.mubr.msk.f32.mxu1 %vm771_vm1, %v4708_v33  ;;  %v4718_v44 = vpop.eup %4717  ;;  %4743 = vtanh.f32 %v634_v56 }
 0x120   :  { %v4720_v47 = vpop.eup %4719  ;;  %4745 = vtanh.f32 %v629_v58 }
 0x121   :  { %v4722_v51 = vpop.eup %4721  ;;  %4747 = vtanh.f32 %v644_v61  ;;  %v2070_v61 = vld [vmem:[%s6279_s7 + $0x8] sm:$0xff] }
 0x122   :  { %4250 = vmatmul.mubr.msk.f32.gmra.mxu1 %vm771_vm1, %v4714_v40  ;;  %v4724_v53 = vpop.eup %4723  ;;  %4749 = vtanh.f32 %v639_v0 }
 0x123   :  { %4252 = vmatprep.mubr.msk.f32.mxu1 %vm771_vm1, %v4712_v38  ;;  %v4726_v55 = vpop.eup %4725  ;;  %4751 = vtanh.f32 %v654_v4 }
 0x124   :  { %v4728_v57 = vpop.eup %4727  ;;  %4753 = vtanh.f32 %v649_v6 }
 0x125   :  { %v4730_v62 = vpop.eup %4729  ;;  %4755 = vtanh.f32 %v664_v22 }
 0x126   :  { %4253 = vmatmul.mubr.msk.f32.gmra.mxu1 %vm771_vm1, %v4718_v44  ;;  %v4732_v63 = vpop.eup %4731  ;;  %4757 = vtanh.f32 %v659_v11 }
 0x127   :  { %4255 = vmatprep.mubr.msk.f32.mxu1 %vm771_vm1, %v4716_v37  ;;  %v4734_v3 = vpop.eup %4733  ;;  %4759 = vtanh.f32 %v674_v15 }
 0x128   :  { %v4736_v5 = vpop.eup %4735  ;;  %4761 = vtanh.f32 %v669_v28 }
 0x129   :  { %v4738_v8 = vpop.eup %4737  ;;  %4763 = vtanh.f32 %v684_v18 }
 0x12a   :  { %4256 = vmatmul.mubr.msk.f32.gmra.mxu1 %vm771_vm1, %v4722_v51  ;;  %v4740_v10 = vpop.eup %4739  ;;  %4765 = vtanh.f32 %v679_v34 }
 0x12b   :  { %4258 = vmatprep.mubr.msk.f32.mxu1 %vm771_vm1, %v4720_v47  ;;  %v4742_v14 = vpop.eup %4741  ;;  %4767 = vtanh.f32 %v689_v24 }
 0x12c   :  { %v4744_v16 = vpop.eup %4743 }
 0x12d   :  { %v4746_v20 = vpop.eup %4745 }
 0x12e   :  { %4259 = vmatmul.mubr.msk.f32.gmra.mxu1 %vm771_vm1, %v4726_v55  ;;  %v4748_v21 = vpop.eup %4747 }
 0x12f   :  { %4261 = vmatprep.mubr.msk.f32.mxu1 %vm771_vm1, %v4724_v53  ;;  %v4750_v23 = vpop.eup %4749  ;;  %v2073_v53 = vld [vmem:[%s6279_s7 + $0x20] sm:$0xff] }
 0x130   :  { %v4752_v25 = vpop.eup %4751  ;;  %4412 = vmatprep.subr.mxu1 %v2073_v53 }
 0x131   :  { %v4754_v26 = vpop.eup %4753  ;;  %4413 = vmatpush3.msra.mxu1 %v2073_v53 }
 0x132   :  { %4262 = vmatmul.mubr.msk.f32.gmra.mxu1 %vm771_vm1, %v4730_v62  ;;  %v4756_v29 = vpop.eup %4755  ;;  %4414 = vmatprep.subr.mxu1 %v2072_v54 }
 0x133   :  { %4264 = vmatprep.mubr.msk.f32.mxu1 %vm771_vm1, %v4728_v57  ;;  %v4758_v50 = vpop.eup %4757  ;;  %v2071_v57 = vld [vmem:[%s6279_s7 + $0x10] sm:$0xff]  ;;  %4415 = vmatpush3.msra.mxu1 %v2072_v54 }
 0x134   :  { %v4760_v31 = vpop.eup %4759  ;;  %4416 = vmatprep.subr.mxu1 %v2071_v57 }
 0x135   :  { %v4762_v32 = vpop.eup %4761  ;;  %4417 = vmatpush3.msra.mxu1 %v2071_v57 }
 0x136   :  { %4265 = vmatmul.mubr.msk.f32.gmra.mxu1 %vm771_vm1, %v4734_v3  ;;  %v4764_v30 = vpop.eup %4763  ;;  %4418 = vmatprep.subr.mxu1 %v2070_v61 }
 0x137   :  { %4267 = vmatprep.mubr.msk.f32.mxu1 %vm771_vm1, %v4732_v63  ;;  %v4766_v12 = vpop.eup %4765  ;;  %4419 = vmatpush3.msra.mxu1 %v2070_v61 }
 0x138   :  { %v4768_v33 = vpop.eup %4767 }
 0x13a   :  { %4268 = vmatmul.mubr.msk.f32.gmra.mxu1 %vm771_vm1, %v4738_v8 }
 0x13b   :  { %4270 = vmatprep.mubr.msk.f32.mxu1 %vm771_vm1, %v4736_v5 }
 0x13e   :  { %4271 = vmatmul.mubr.msk.f32.gmra.mxu1 %vm771_vm1, %v4742_v14 }
 0x13f   :  { %4273 = vmatprep.mubr.msk.f32.mxu1 %vm771_vm1, %v4740_v10 }
 0x142   :  { %4274 = vmatmul.mubr.msk.f32.gmra.mxu1 %vm771_vm1, %v4746_v20 }
 0x143   :  { %4276 = vmatprep.mubr.msk.f32.mxu1 %vm771_vm1, %v4744_v16 }
 0x146   :  { %4277 = vmatmul.mubr.msk.f32.gmra.mxu1 %vm771_vm1, %v4750_v23 }
 0x147   :  { %4279 = vmatprep.mubr.msk.f32.mxu1 %vm771_vm1, %v4748_v21 }
 0x14a   :  { %4280 = vmatmul.mubr.msk.f32.gmra.mxu1 %vm771_vm1, %v4754_v26 }
 0x14b   :  { %4282 = vmatprep.mubr.msk.f32.mxu1 %vm771_vm1, %v4752_v25 }
 0x14e   :  { %4283 = vmatmul.mubr.msk.f32.gmra.mxu1 %vm771_vm1, %v4758_v50 }
 0x14f   :  { %4285 = vmatprep.mubr.msk.f32.mxu1 %vm771_vm1, %v4756_v29 }
 0x152   :  { %4286 = vmatmul.mubr.msk.f32.gmra.mxu1 %vm771_vm1, %v4762_v32 }
 0x153   :  { %4288 = vmatprep.mubr.msk.f32.mxu1 %vm771_vm1, %v4760_v31 }
 0x156   :  { %4289 = vmatmul.mubr.msk.f32.gmra.mxu1 %vm771_vm1, %v4766_v12 }
 0x157   :  { %4291 = vmatprep.mubr.msk.f32.mxu1 %vm771_vm1, %v4764_v30 }
 0x15a   :  { %4292 = vmatmul.mubr.msk.f32.gmra.mxu1 %vm771_vm1, %v4768_v33 }
 0x19e   :  { %v4200_v36 = vpop.f32.mrf.mxu1 }
 0x19f   :  { %v1036_v38 = vadd.f32 %v4200_v36, %v5762_v41 }
 0x1a0   :  { %v1030_v17 = vpop.f32.mrf.mxu1 }
 0x1a1   :  { %v1031_v39 = vadd.f32 %v5762_v41, %v1030_v17 }
 0x1a2   :  { %v4203_v40 = vpop.f32.mrf.mxu1 }
 0x1a3   :  { %4769 = vtanh.f32 %v1031_v39  ;;  %v1046_v59 = vadd.f32 %v4203_v40, %v5762_v41 }
 0x1a4   :  { %4771 = vtanh.f32 %v1036_v38  ;;  %v1040_v42 = vpop.f32.mrf.mxu1 }
 0x1a5   :  { %v1041_v37 = vadd.f32 %v5762_v41, %v1040_v42 }
 0x1a6   :  { %v4206_v9 = vpop.f32.mrf.mxu1 }
 0x1a7   :  { %4773 = vtanh.f32 %v1041_v37  ;;  %v1056_v44 = vadd.f32 %v4206_v9, %v5762_v41 }
 0x1a8   :  { %4775 = vtanh.f32 %v1046_v59  ;;  %v1050_v46 = vpop.f32.mrf.mxu1 }
 0x1a9   :  { %v1051_v47 = vadd.f32 %v5762_v41, %v1050_v46 }
 0x1aa   :  { %v4209_v48 = vpop.f32.mrf.mxu1 }
 0x1ab   :  { %4777 = vtanh.f32 %v1051_v47  ;;  %v1066_v49 = vadd.f32 %v4209_v48, %v5762_v41 }
 0x1ac   :  { %4779 = vtanh.f32 %v1056_v44  ;;  %v1060_v51 = vpop.f32.mrf.mxu1 }
 0x1ad   :  { %v1061_v27 = vadd.f32 %v5762_v41, %v1060_v51 }
 0x1ae   :  { %v4212_v52 = vpop.f32.mrf.mxu1 }
 0x1af   :  { %4781 = vtanh.f32 %v1061_v27  ;;  %v1076_v55 = vadd.f32 %v4212_v52, %v5762_v41 }
 0x1b0   :  { %v4770_v45 = vpop.eup %4769  ;;  %4783 = vtanh.f32 %v1066_v49  ;;  %v1070_v56 = vpop.f32.mrf.mxu1 }
 0x1b1   :  { %v4772_v58 = vpop.eup %4771  ;;  %v1071_v60 = vadd.f32 %v5762_v41, %v1070_v56  ;;  %4310 = vmatprep.mubr.msk.f32.mxu0 %vm771_vm1, %v4770_v45 }
 0x1b2   :  { %v4215_v62 = vpop.f32.mrf.mxu1  ;;  %4311 = vmatmul.mubr.msk.f32.vlgmr.msra.gmra.mxu0 %vm771_vm1, %v4772_v58 }
 0x1b3   :  { %4785 = vtanh.f32 %v1071_v60  ;;  %v1086_v0 = vadd.f32 %v4215_v62, %v5762_v41 }
 0x1b4   :  { %v4774_v63 = vpop.eup %4773  ;;  %4787 = vtanh.f32 %v1076_v55  ;;  %v1080_v1 = vpop.f32.mrf.mxu1 }
 0x1b5   :  { %v4776_v3 = vpop.eup %4775  ;;  %v1081_v4 = vadd.f32 %v5762_v41, %v1080_v1  ;;  %4313 = vmatprep.mubr.msk.f32.mxu0 %vm771_vm1, %v4774_v63 }
 0x1b6   :  { %v4218_v5 = vpop.f32.mrf.mxu1  ;;  %4314 = vmatmul.mubr.msk.f32.gmra.mxu0 %vm771_vm1, %v4776_v3 }
 0x1b7   :  { %4789 = vtanh.f32 %v1081_v4  ;;  %v1096_v7 = vadd.f32 %v4218_v5, %v5762_v41 }
 0x1b8   :  { %v4778_v6 = vpop.eup %4777  ;;  %4791 = vtanh.f32 %v1086_v0  ;;  %v1090_v8 = vpop.f32.mrf.mxu1 }
 0x1b9   :  { %v4780_v22 = vpop.eup %4779  ;;  %v1091_v10 = vadd.f32 %v5762_v41, %v1090_v8  ;;  %4316 = vmatprep.mubr.msk.f32.mxu0 %vm771_vm1, %v4778_v6 }
 0x1ba   :  { %v4221_v11 = vpop.f32.mrf.mxu1  ;;  %4317 = vmatmul.mubr.msk.f32.gmra.mxu0 %vm771_vm1, %v4780_v22 }
 0x1bb   :  { %4793 = vtanh.f32 %v1091_v10  ;;  %v1106_v14 = vadd.f32 %v4221_v11, %v5762_v41 }
 0x1bc   :  { %v4782_v13 = vpop.eup %4781  ;;  %4795 = vtanh.f32 %v1096_v7  ;;  %v1100_v15 = vpop.f32.mrf.mxu1 }
 0x1bd   :  { %v4784_v16 = vpop.eup %4783  ;;  %v1101_v28 = vadd.f32 %v5762_v41, %v1100_v15  ;;  %4319 = vmatprep.mubr.msk.f32.mxu0 %vm771_vm1, %v4782_v13 }
 0x1be   :  { %v4224_v19 = vpop.f32.mrf.mxu1  ;;  %4320 = vmatmul.mubr.msk.f32.gmra.mxu0 %vm771_vm1, %v4784_v16 }
 0x1bf   :  { %4797 = vtanh.f32 %v1101_v28  ;;  %v1116_v18 = vadd.f32 %v4224_v19, %v5762_v41 }
 0x1c0   :  { %v4786_v20 = vpop.eup %4785  ;;  %4799 = vtanh.f32 %v1106_v14  ;;  %v1110_v21 = vpop.f32.mrf.mxu1 }
 0x1c1   :  { %v4788_v34 = vpop.eup %4787  ;;  %v1111_v23 = vadd.f32 %v5762_v41, %v1110_v21  ;;  %4322 = vmatprep.mubr.msk.f32.mxu0 %vm771_vm1, %v4786_v20 }
 0x1c2   :  { %v4227_v25 = vpop.f32.mrf.mxu1  ;;  %4323 = vmatmul.mubr.msk.f32.gmra.mxu0 %vm771_vm1, %v4788_v34 }
 0x1c3   :  { %4801 = vtanh.f32 %v1111_v23  ;;  %v1126_v26 = vadd.f32 %v4227_v25, %v5762_v41 }
 0x1c4   :  { %v4790_v24 = vpop.eup %4789  ;;  %4803 = vtanh.f32 %v1116_v18  ;;  %v1120_v29 = vpop.f32.mrf.mxu1 }
 0x1c5   :  { %v4792_v50 = vpop.eup %4791  ;;  %v1121_v31 = vadd.f32 %v5762_v41, %v1120_v29  ;;  %4325 = vmatprep.mubr.msk.f32.mxu0 %vm771_vm1, %v4790_v24 }
 0x1c6   :  { %v4230_v32 = vpop.f32.mrf.mxu1  ;;  %4326 = vmatmul.mubr.msk.f32.gmra.mxu0 %vm771_vm1, %v4792_v50 }
 0x1c7   :  { %4805 = vtanh.f32 %v1121_v31  ;;  %v1136_v12 = vadd.f32 %v4230_v32, %v5762_v41 }
 0x1c8   :  { %v4794_v30 = vpop.eup %4793  ;;  %4807 = vtanh.f32 %v1126_v26  ;;  %v1130_v33 = vpop.f32.mrf.mxu1 }
 0x1c9   :  { %v4796_v2 = vpop.eup %4795  ;;  %v1131_v35 = vadd.f32 %v5762_v41, %v1130_v33  ;;  %4328 = vmatprep.mubr.msk.f32.mxu0 %vm771_vm1, %v4794_v30 }
 0x1ca   :  { %v4233_v36 = vpop.f32.mrf.mxu1  ;;  %4329 = vmatmul.mubr.msk.f32.gmra.mxu0 %vm771_vm1, %v4796_v2 }
 0x1cb   :  { %4809 = vtanh.f32 %v1131_v35  ;;  %v1146_v17 = vadd.f32 %v4233_v36, %v5762_v41 }
 0x1cc   :  { %v4798_v38 = vpop.eup %4797  ;;  %4811 = vtanh.f32 %v1136_v12  ;;  %v1140_v39 = vpop.f32.mrf.mxu1 }
 0x1cd   :  { %v4800_v40 = vpop.eup %4799  ;;  %v1141_v59 = vadd.f32 %v5762_v41, %v1140_v39  ;;  %4331 = vmatprep.mubr.msk.f32.mxu0 %vm771_vm1, %v4798_v38 }
 0x1ce   :  { %v4236_v42 = vpop.f32.mrf.mxu1  ;;  %4332 = vmatmul.mubr.msk.f32.gmra.mxu0 %vm771_vm1, %v4800_v40  ;;  %v2069_v40 = vld [vmem:[%s6279_s7] sm:$0xff] }
 0x1cf   :  { %4813 = vtanh.f32 %v1141_v59  ;;  %v1156_v43 = vadd.f32 %v4236_v42, %v5762_v41  ;;  %4420 = vmatprep.subr.mxu1 %v2069_v40 }
 0x1d0   :  { %v4802_v37 = vpop.eup %4801  ;;  %4815 = vtanh.f32 %v1146_v17  ;;  %v1150_v9 = vpop.f32.mrf.mxu1  ;;  %4421 = vmatpush3.msra.mxu1 %v2069_v40 }
 0x1d1   :  { %v4804_v44 = vpop.eup %4803  ;;  %v1151_v46 = vadd.f32 %v5762_v41, %v1150_v9  ;;  %4334 = vmatprep.mubr.msk.f32.mxu0 %vm771_vm1, %v4802_v37 }
 0x1d2   :  { %v4239_v47 = vpop.f32.mrf.mxu1  ;;  %4335 = vmatmul.mubr.msk.f32.gmra.mxu0 %vm771_vm1, %v4804_v44 }
 0x1d3   :  { %4817 = vtanh.f32 %v1151_v46  ;;  %v1166_v49 = vadd.f32 %v4239_v47, %v5762_v41 }
 0x1d4   :  { %v4806_v48 = vpop.eup %4805  ;;  %4819 = vtanh.f32 %v1156_v43  ;;  %v1160_v51 = vpop.f32.mrf.mxu1 }
 0x1d5   :  { %v4808_v27 = vpop.eup %4807  ;;  %v1161_v52 = vadd.f32 %v5762_v41, %v1160_v51  ;;  %4337 = vmatprep.mubr.msk.f32.mxu0 %vm771_vm1, %v4806_v48 }
 0x1d6   :  { %v4242_v53 = vpop.f32.mrf.mxu1  ;;  %4338 = vmatmul.mubr.msk.f32.gmra.mxu0 %vm771_vm1, %v4808_v27 }
 0x1d7   :  { %4821 = vtanh.f32 %v1161_v52  ;;  %v1176_v45 = vadd.f32 %v4242_v53, %v5762_v41 }
 0x1d8   :  { %v4810_v54 = vpop.eup %4809  ;;  %4823 = vtanh.f32 %v1166_v49  ;;  %v1170_v55 = vpop.f32.mrf.mxu1 }
 0x1d9   :  { %v4812_v56 = vpop.eup %4811  ;;  %v1171_v57 = vadd.f32 %v5762_v41, %v1170_v55  ;;  %4340 = vmatprep.mubr.msk.f32.mxu0 %vm771_vm1, %v4810_v54 }
 0x1da   :  { %v4245_v58 = vpop.f32.mrf.mxu1  ;;  %4341 = vmatmul.mubr.msk.f32.gmra.mxu0 %vm771_vm1, %v4812_v56 }
 0x1db   :  { %4825 = vtanh.f32 %v1171_v57  ;;  %v1186_v62 = vadd.f32 %v4245_v58, %v5762_v41 }
 0x1dc   :  { %v4814_v60 = vpop.eup %4813  ;;  %4827 = vtanh.f32 %v1176_v45  ;;  %v1180_v61 = vpop.f32.mrf.mxu1 }
 0x1dd   :  { %v4816_v63 = vpop.eup %4815  ;;  %v1181_v0 = vadd.f32 %v5762_v41, %v1180_v61  ;;  %4343 = vmatprep.mubr.msk.f32.mxu0 %vm771_vm1, %v4814_v60 }
 0x1de   :  { %v4248_v1 = vpop.f32.mrf.mxu1  ;;  %4344 = vmatmul.mubr.msk.f32.gmra.mxu0 %vm771_vm1, %v4816_v63 }
 0x1df   :  { %4829 = vtanh.f32 %v1181_v0  ;;  %v1196_v4 = vadd.f32 %v4248_v1, %v5762_v41 }
 0x1e0   :  { %v4818_v3 = vpop.eup %4817  ;;  %4831 = vtanh.f32 %v1186_v62  ;;  %v1190_v5 = vpop.f32.mrf.mxu1 }
 0x1e1   :  { %v4820_v6 = vpop.eup %4819  ;;  %v1191_v7 = vadd.f32 %v5762_v41, %v1190_v5  ;;  %4346 = vmatprep.mubr.msk.f32.mxu0 %vm771_vm1, %v4818_v3 }
 0x1e2   :  { %v4251_v8 = vpop.f32.mrf.mxu1  ;;  %4347 = vmatmul.mubr.msk.f32.gmra.mxu0 %vm771_vm1, %v4820_v6 }
 0x1e3   :  { %4833 = vtanh.f32 %v1191_v7  ;;  %v1206_v10 = vadd.f32 %v4251_v8, %v5762_v41 }
 0x1e4   :  { %v4822_v22 = vpop.eup %4821  ;;  %4835 = vtanh.f32 %v1196_v4  ;;  %v1200_v11 = vpop.f32.mrf.mxu1 }
 0x1e5   :  { %v4824_v13 = vpop.eup %4823  ;;  %v1201_v14 = vadd.f32 %v5762_v41, %v1200_v11  ;;  %4349 = vmatprep.mubr.msk.f32.mxu0 %vm771_vm1, %v4822_v22 }
 0x1e6   :  { %v4254_v15 = vpop.f32.mrf.mxu1  ;;  %4350 = vmatmul.mubr.msk.f32.gmra.mxu0 %vm771_vm1, %v4824_v13 }
 0x1e7   :  { %4837 = vtanh.f32 %v1201_v14  ;;  %v1216_v28 = vadd.f32 %v4254_v15, %v5762_v41 }
 0x1e8   :  { %v4826_v16 = vpop.eup %4825  ;;  %4839 = vtanh.f32 %v1206_v10  ;;  %v1210_v19 = vpop.f32.mrf.mxu1 }
 0x1e9   :  { %v4828_v20 = vpop.eup %4827  ;;  %v1211_v18 = vadd.f32 %v5762_v41, %v1210_v19  ;;  %4352 = vmatprep.mubr.msk.f32.mxu0 %vm771_vm1, %v4826_v16 }
 0x1ea   :  { %v4257_v21 = vpop.f32.mrf.mxu1  ;;  %4353 = vmatmul.mubr.msk.f32.gmra.mxu0 %vm771_vm1, %v4828_v20 }
 0x1eb   :  { %4841 = vtanh.f32 %v1211_v18  ;;  %v1226_v23 = vadd.f32 %v4257_v21, %v5762_v41 }
 0x1ec   :  { %v4830_v34 = vpop.eup %4829  ;;  %4843 = vtanh.f32 %v1216_v28  ;;  %v1220_v25 = vpop.f32.mrf.mxu1 }
 0x1ed   :  { %v4832_v24 = vpop.eup %4831  ;;  %v1221_v26 = vadd.f32 %v5762_v41, %v1220_v25  ;;  %4355 = vmatprep.mubr.msk.f32.mxu0 %vm771_vm1, %v4830_v34 }
 0x1ee   :  { %v4260_v29 = vpop.f32.mrf.mxu1  ;;  %4356 = vmatmul.mubr.msk.f32.gmra.mxu0 %vm771_vm1, %v4832_v24 }
 0x1ef   :  { %4845 = vtanh.f32 %v1221_v26  ;;  %v1236_v31 = vadd.f32 %v4260_v29, %v5762_v41 }
 0x1f0   :  { %v4834_v50 = vpop.eup %4833  ;;  %4847 = vtanh.f32 %v1226_v23  ;;  %v1230_v32 = vpop.f32.mrf.mxu1 }
 0x1f1   :  { %v4836_v30 = vpop.eup %4835  ;;  %v1231_v12 = vadd.f32 %v5762_v41, %v1230_v32  ;;  %4358 = vmatprep.mubr.msk.f32.mxu0 %vm771_vm1, %v4834_v50 }
 0x1f2   :  { %v4263_v33 = vpop.f32.mrf.mxu1  ;;  %4359 = vmatmul.mubr.msk.f32.gmra.mxu0 %vm771_vm1, %v4836_v30 }
 0x1f3   :  { %4849 = vtanh.f32 %v1231_v12  ;;  %v1246_v35 = vadd.f32 %v4263_v33, %v5762_v41 }
 0x1f4   :  { %v4838_v2 = vpop.eup %4837  ;;  %4851 = vtanh.f32 %v1236_v31  ;;  %v1240_v36 = vpop.f32.mrf.mxu1 }
 0x1f5   :  { %v4840_v38 = vpop.eup %4839  ;;  %v1241_v17 = vadd.f32 %v5762_v41, %v1240_v36  ;;  %4361 = vmatprep.mubr.msk.f32.mxu0 %vm771_vm1, %v4838_v2 }
 0x1f6   :  { %v4266_v39 = vpop.f32.mrf.mxu1  ;;  %4362 = vmatmul.mubr.msk.f32.gmra.mxu0 %vm771_vm1, %v4840_v38 }
 0x1f7   :  { %4853 = vtanh.f32 %v1241_v17  ;;  %v1256_v42 = vadd.f32 %v4266_v39, %v5762_v41 }
 0x1f8   :  { %v4842_v59 = vpop.eup %4841  ;;  %4855 = vtanh.f32 %v1246_v35  ;;  %v1250_v37 = vpop.f32.mrf.mxu1 }
 0x1f9   :  { %v4844_v43 = vpop.eup %4843  ;;  %v1251_v9 = vadd.f32 %v5762_v41, %v1250_v37  ;;  %4364 = vmatprep.mubr.msk.f32.mxu0 %vm771_vm1, %v4842_v59 }
 0x1fa   :  { %v4269_v44 = vpop.f32.mrf.mxu1  ;;  %4365 = vmatmul.mubr.msk.f32.gmra.mxu0 %vm771_vm1, %v4844_v43  ;;  %v2732_v43 = vld [vmem:[%s6281_s9 + $0x38] sm:$0xff] }
 0x1fb   :  { %4857 = vtanh.f32 %v1251_v9  ;;  %v1266_v47 = vadd.f32 %v4269_v44, %v5762_v41  ;;  %4518 = vmatprep.subr.mxu0 %v2732_v43  ;;  %v2731_v9 = vld [vmem:[%s6281_s9 + $0x30] sm:$0xff]  ;;  %v5919_v44 = vld [vmem:[%s6278_s6] ss:$0 sm:$0xff] }
 0x1fc   :  { %v4846_v46 = vpop.eup %4845  ;;  %4859 = vtanh.f32 %v1256_v42  ;;  %v1260_v48 = vpop.f32.mrf.mxu1  ;;  %4519 = vmatpush3.msra.mxu0 %v2732_v43 }
 0x1fd   :  { %v4848_v49 = vpop.eup %4847  ;;  %v1261_v51 = vadd.f32 %v5762_v41, %v1260_v48  ;;  %4367 = vmatprep.mubr.msk.f32.mxu0 %vm771_vm1, %v4846_v46  ;;  %4520 = vmatprep.subr.mxu0 %v2731_v9 }
 0x1fe   :  { %v4272_v27 = vpop.f32.mrf.mxu1  ;;  %4368 = vmatmul.mubr.msk.f32.gmra.mxu0 %vm771_vm1, %v4848_v49 }
 0x1ff   :  { %4861 = vtanh.f32 %v1261_v51  ;;  %v1276_v53 = vadd.f32 %v4272_v27, %v5762_v41  ;;  %4521 = vmatpush3.msra.mxu0 %v2731_v9 }
 0x200   :  { %v4850_v52 = vpop.eup %4849  ;;  %4863 = vtanh.f32 %v1266_v47  ;;  %v1270_v54 = vpop.f32.mrf.mxu1 }
 0x201   :  { %v4852_v45 = vpop.eup %4851  ;;  %v1271_v55 = vadd.f32 %v5762_v41, %v1270_v54  ;;  %4370 = vmatprep.mubr.msk.f32.mxu0 %vm771_vm1, %v4850_v52  ;;  %v2730_v54 = vld [vmem:[%s6281_s9 + $0x28] sm:$0xff] }
 0x202   :  { %v4275_v56 = vpop.f32.mrf.mxu1  ;;  %4371 = vmatmul.mubr.msk.f32.gmra.mxu0 %vm771_vm1, %v4852_v45  ;;  %4522 = vmatprep.subr.mxu0 %v2730_v54 }
 0x203   :  { %4865 = vtanh.f32 %v1271_v55  ;;  %v1286_v58 = vadd.f32 %v4275_v56, %v5762_v41  ;;  %4523 = vmatpush3.msra.mxu0 %v2730_v54 }
 0x204   :  { %v4854_v57 = vpop.eup %4853  ;;  %4867 = vtanh.f32 %v1276_v53  ;;  %v1280_v60 = vpop.f32.mrf.mxu1 }
 0x205   :  { %v4856_v62 = vpop.eup %4855  ;;  %v1281_v61 = vadd.f32 %v5762_v41, %v1280_v60  ;;  %4373 = vmatprep.mubr.msk.f32.mxu0 %vm771_vm1, %v4854_v57 }
 0x206   :  { %v4278_v63 = vpop.f32.mrf.mxu1  ;;  %4374 = vmatmul.mubr.msk.f32.gmra.mxu0 %vm771_vm1, %v4856_v62 }
 0x207   :  { %4869 = vtanh.f32 %v1281_v61  ;;  %v1296_v1 = vadd.f32 %v4278_v63, %v5762_v41 }
 0x208   :  { %v4858_v0 = vpop.eup %4857  ;;  %4871 = vtanh.f32 %v1286_v58  ;;  %v1290_v3 = vpop.f32.mrf.mxu1 }
 0x209   :  { %v4860_v4 = vpop.eup %4859  ;;  %v1291_v5 = vadd.f32 %v5762_v41, %v1290_v3  ;;  %4376 = vmatprep.mubr.msk.f32.mxu0 %vm771_vm1, %v4858_v0  ;;  %v2729_v0 = vld [vmem:[%s6281_s9 + $0x20] sm:$0xff] }
 0x20a   :  { %v4281_v6 = vpop.f32.mrf.mxu1  ;;  %4377 = vmatmul.mubr.msk.f32.gmra.mxu0 %vm771_vm1, %v4860_v4  ;;  %4524 = vmatprep.subr.mxu0 %v2729_v0 }
 0x20b   :  { %4873 = vtanh.f32 %v1291_v5  ;;  %v1306_v8 = vadd.f32 %v4281_v6, %v5762_v41  ;;  %4525 = vmatpush3.msra.mxu0 %v2729_v0  ;;  %v2727_v6 = vld [vmem:[%s6281_s9 + $0x10] sm:$0xff] }
 0x20c   :  { %v4862_v7 = vpop.eup %4861  ;;  %4875 = vtanh.f32 %v1296_v1  ;;  %v1300_v22 = vpop.f32.mrf.mxu1  ;;  %v2728_v1 = vld [vmem:[%s6281_s9 + $0x18] sm:$0xff] }
 0x20d   :  { %v4864_v10 = vpop.eup %4863  ;;  %v1301_v11 = vadd.f32 %v5762_v41, %v1300_v22  ;;  %4379 = vmatprep.mubr.msk.f32.mxu0 %vm771_vm1, %v4862_v7  ;;  %4526 = vmatprep.subr.mxu0 %v2728_v1 }
 0x20e   :  { %v4284_v13 = vpop.f32.mrf.mxu1  ;;  %4380 = vmatmul.mubr.msk.f32.gmra.mxu0 %vm771_vm1, %v4864_v10  ;;  %v2726_v10 = vld [vmem:[%s6281_s9 + $0x8] sm:$0xff] }
 0x20f   :  { %4877 = vtanh.f32 %v1301_v11  ;;  %v1316_v15 = vadd.f32 %v4284_v13, %v5762_v41  ;;  %4527 = vmatpush3.msra.mxu0 %v2728_v1 }
 0x210   :  { %v4866_v14 = vpop.eup %4865  ;;  %4879 = vtanh.f32 %v1306_v8  ;;  %v1310_v16 = vpop.f32.mrf.mxu1  ;;  %4528 = vmatprep.subr.mxu0 %v2727_v6 }
 0x211   :  { %v4868_v28 = vpop.eup %4867  ;;  %v1311_v19 = vadd.f32 %v5762_v41, %v1310_v16  ;;  %4382 = vmatprep.mubr.msk.f32.mxu0 %vm771_vm1, %v4866_v14  ;;  %4529 = vmatpush3.msra.mxu0 %v2727_v6 }
 0x212   :  { %v4287_v20 = vpop.f32.mrf.mxu1  ;;  %4383 = vmatmul.mubr.msk.f32.gmra.mxu0 %vm771_vm1, %v4868_v28  ;;  %4530 = vmatprep.subr.mxu0 %v2726_v10 }
 0x213   :  { %4881 = vtanh.f32 %v1311_v19  ;;  %v1326_v21 = vadd.f32 %v4287_v20, %v5762_v41  ;;  %4531 = vmatpush3.msra.mxu0 %v2726_v10 }
 0x214   :  { %v4870_v18 = vpop.eup %4869  ;;  %4883 = vtanh.f32 %v1316_v15  ;;  %v1320_v34 = vpop.f32.mrf.mxu1 }
 0x215   :  { %v4872_v23 = vpop.eup %4871  ;;  %v1321_v25 = vadd.f32 %v5762_v41, %v1320_v34  ;;  %4385 = vmatprep.mubr.msk.f32.mxu0 %vm771_vm1, %v4870_v18 }
 0x216   :  { %v4290_v24 = vpop.f32.mrf.mxu1  ;;  %4386 = vmatmul.mubr.msk.f32.gmra.mxu0 %vm771_vm1, %v4872_v23 }
 0x217   :  { %4885 = vtanh.f32 %v1321_v25  ;;  %v1336_v29 = vadd.f32 %v4290_v24, %v5762_v41 }
 0x218   :  { %v4874_v26 = vpop.eup %4873  ;;  %4887 = vtanh.f32 %v1326_v21  ;;  %v1330_v50 = vpop.f32.mrf.mxu1 }
 0x219   :  { %v4876_v31 = vpop.eup %4875  ;;  %v1331_v32 = vadd.f32 %v5762_v41, %v1330_v50  ;;  %4388 = vmatprep.mubr.msk.f32.mxu0 %vm771_vm1, %v4874_v26 }
 0x21a   :  { %v4293_v30 = vpop.f32.mrf.mxu1  ;;  %4389 = vmatmul.mubr.msk.f32.gmra.mxu0 %vm771_vm1, %v4876_v31 }
 0x21b   :  { %4889 = vtanh.f32 %v1331_v32  ;;  %v1346_v33 = vadd.f32 %v4293_v30, %v5762_v41 }
 0x21c   :  { %v4878_v12 = vpop.eup %4877  ;;  %4891 = vtanh.f32 %v1336_v29  ;;  %v1340_v2 = vpop.f32.mrf.mxu1 }
 0x21d   :  { %v4880_v35 = vpop.eup %4879  ;;  %v1341_v36 = vadd.f32 %v5762_v41, %v1340_v2  ;;  %4391 = vmatprep.mubr.msk.f32.mxu0 %vm771_vm1, %v4878_v12 }
 0x21e   :  { %4392 = vmatmul.mubr.msk.f32.gmra.mxu0 %vm771_vm1, %v4880_v35 }
 0x21f   :  { %4893 = vtanh.f32 %v1341_v36 }
 0x220   :  { %v4882_v38 = vpop.eup %4881  ;;  %4895 = vtanh.f32 %v1346_v33 }
 0x221   :  { %v4884_v17 = vpop.eup %4883  ;;  %4394 = vmatprep.mubr.msk.f32.mxu0 %vm771_vm1, %v4882_v38 }
 0x222   :  { %4395 = vmatmul.mubr.msk.f32.gmra.mxu0 %vm771_vm1, %v4884_v17 }
 0x224   :  { %v4886_v39 = vpop.eup %4885 }
 0x225   :  { %v4888_v40 = vpop.eup %4887  ;;  %4397 = vmatprep.mubr.msk.f32.mxu0 %vm771_vm1, %v4886_v39 }
 0x226   :  { %4398 = vmatmul.mubr.msk.f32.gmra.mxu0 %vm771_vm1, %v4888_v40 }
 0x228   :  { %v4890_v59 = vpop.eup %4889 }
 0x229   :  { %v4892_v41 = vpop.eup %4891  ;;  %4400 = vmatprep.mubr.msk.f32.mxu0 %vm771_vm1, %v4890_v59 }
 0x22a   :  { %4401 = vmatmul.mubr.msk.f32.gmra.mxu0 %vm771_vm1, %v4892_v41 }
 0x22c   :  { %v4894_v42 = vpop.eup %4893 }
 0x22d   :  { %v4896_v37 = vpop.eup %4895  ;;  %4403 = vmatprep.mubr.msk.f32.mxu0 %vm771_vm1, %v4894_v42 }
 0x22e   :  { %4404 = vmatmul.mubr.msk.f32.gmra.mxu0 %vm771_vm1, %v4896_v37 }
 0x272   :  { %v4312_v46 = vpop.f32.mrf.mxu0 }
 0x273   :  { %v1692_v47 = vadd.f32 %v4312_v46, %v5919_v44 }
 0x274   :  { %v1686_v48 = vpop.f32.mrf.mxu0 }
 0x275   :  { %v1687_v49 = vadd.f32 %v5919_v44, %v1686_v48 }
 0x276   :  { %v4315_v51 = vpop.f32.mrf.mxu0 }
 0x277   :  { %4897 = vtanh.f32 %v1687_v49  ;;  %v1702_v27 = vadd.f32 %v4315_v51, %v5919_v44 }
 0x278   :  { %4899 = vtanh.f32 %v1692_v47  ;;  %v1696_v52 = vpop.f32.mrf.mxu0 }
 0x279   :  { %v1697_v53 = vadd.f32 %v5919_v44, %v1696_v52 }
 0x27a   :  { %v4318_v45 = vpop.f32.mrf.mxu0 }
 0x27b   :  { %4901 = vtanh.f32 %v1697_v53  ;;  %v1712_v55 = vadd.f32 %v4318_v45, %v5919_v44 }
 0x27c   :  { %4903 = vtanh.f32 %v1702_v27  ;;  %v1706_v56 = vpop.f32.mrf.mxu0 }
 0x27d   :  { %v1707_v57 = vadd.f32 %v5919_v44, %v1706_v56 }
 0x27e   :  { %v4321_v58 = vpop.f32.mrf.mxu0 }
 0x27f   :  { %4905 = vtanh.f32 %v1707_v57  ;;  %v1722_v60 = vadd.f32 %v4321_v58, %v5919_v44 }
 0x280   :  { %4907 = vtanh.f32 %v1712_v55  ;;  %v1716_v62 = vpop.f32.mrf.mxu0 }
 0x281   :  { %v1717_v61 = vadd.f32 %v5919_v44, %v1716_v62 }
 0x282   :  { %v4324_v63 = vpop.f32.mrf.mxu0 }
 0x283   :  { %4909 = vtanh.f32 %v1717_v61  ;;  %v1732_v4 = vadd.f32 %v4324_v63, %v5919_v44 }
 0x284   :  { %v4898_v3 = vpop.eup %4897  ;;  %4911 = vtanh.f32 %v1722_v60  ;;  %v1726_v5 = vpop.f32.mrf.mxu0 }
 0x285   :  { %v4900_v7 = vpop.eup %4899  ;;  %v1727_v8 = vadd.f32 %v5919_v44, %v1726_v5  ;;  %4422 = vmatprep.mubr.msk.f32.mxu1 %vm771_vm1, %v4898_v3 }
 0x286   :  { %v4327_v22 = vpop.f32.mrf.mxu0  ;;  %4423 = vmatmul.mubr.msk.f32.vlgmr.msra.gmra.mxu1 %vm771_vm1, %v4900_v7 }
 0x287   :  { %4913 = vtanh.f32 %v1727_v8  ;;  %v1742_v13 = vadd.f32 %v4327_v22, %v5919_v44 }
 0x288   :  { %v4902_v11 = vpop.eup %4901  ;;  %4915 = vtanh.f32 %v1732_v4  ;;  %v1736_v14 = vpop.f32.mrf.mxu0 }
 0x289   :  { %v4904_v15 = vpop.eup %4903  ;;  %v1737_v16 = vadd.f32 %v5919_v44, %v1736_v14  ;;  %4425 = vmatprep.mubr.msk.f32.mxu1 %vm771_vm1, %v4902_v11 }
 0x28a   :  { %v4330_v28 = vpop.f32.mrf.mxu0  ;;  %4426 = vmatmul.mubr.msk.f32.gmra.mxu1 %vm771_vm1, %v4904_v15 }
 0x28b   :  { %4917 = vtanh.f32 %v1737_v16  ;;  %v1752_v20 = vadd.f32 %v4330_v28, %v5919_v44 }
 0x28c   :  { %v4906_v19 = vpop.eup %4905  ;;  %4919 = vtanh.f32 %v1742_v13  ;;  %v1746_v18 = vpop.f32.mrf.mxu0 }
 0x28d   :  { %v4908_v21 = vpop.eup %4907  ;;  %v1747_v34 = vadd.f32 %v5919_v44, %v1746_v18  ;;  %4428 = vmatprep.mubr.msk.f32.mxu1 %vm771_vm1, %v4906_v19 }
 0x28e   :  { %v4333_v23 = vpop.f32.mrf.mxu0  ;;  %4429 = vmatmul.mubr.msk.f32.gmra.mxu1 %vm771_vm1, %v4908_v21 }
 0x28f   :  { %4921 = vtanh.f32 %v1747_v34  ;;  %v1762_v24 = vadd.f32 %v4333_v23, %v5919_v44 }
 0x290   :  { %v4910_v25 = vpop.eup %4909  ;;  %4923 = vtanh.f32 %v1752_v20  ;;  %v1756_v26 = vpop.f32.mrf.mxu0 }
 0x291   :  { %v4912_v29 = vpop.eup %4911  ;;  %v1757_v50 = vadd.f32 %v5919_v44, %v1756_v26  ;;  %4431 = vmatprep.mubr.msk.f32.mxu1 %vm771_vm1, %v4910_v25 }
 0x292   :  { %v4336_v31 = vpop.f32.mrf.mxu0  ;;  %4432 = vmatmul.mubr.msk.f32.gmra.mxu1 %vm771_vm1, %v4912_v29 }
 0x293   :  { %4925 = vtanh.f32 %v1757_v50  ;;  %v1772_v30 = vadd.f32 %v4336_v31, %v5919_v44 }
 0x294   :  { %v4914_v32 = vpop.eup %4913  ;;  %4927 = vtanh.f32 %v1762_v24  ;;  %v1766_v12 = vpop.f32.mrf.mxu0 }
 0x295   :  { %v4916_v33 = vpop.eup %4915  ;;  %v1767_v2 = vadd.f32 %v5919_v44, %v1766_v12  ;;  %4434 = vmatprep.mubr.msk.f32.mxu1 %vm771_vm1, %v4914_v32 }
 0x296   :  { %v4339_v35 = vpop.f32.mrf.mxu0  ;;  %4435 = vmatmul.mubr.msk.f32.gmra.mxu1 %vm771_vm1, %v4916_v33 }
 0x297   :  { %4929 = vtanh.f32 %v1767_v2  ;;  %v1782_v38 = vadd.f32 %v4339_v35, %v5919_v44 }
 0x298   :  { %v4918_v36 = vpop.eup %4917  ;;  %4931 = vtanh.f32 %v1772_v30  ;;  %v1776_v17 = vpop.f32.mrf.mxu0 }
 0x299   :  { %v4920_v39 = vpop.eup %4919  ;;  %v1777_v40 = vadd.f32 %v5919_v44, %v1776_v17  ;;  %4437 = vmatprep.mubr.msk.f32.mxu1 %vm771_vm1, %v4918_v36 }
 0x29a   :  { %v4342_v59 = vpop.f32.mrf.mxu0  ;;  %4438 = vmatmul.mubr.msk.f32.gmra.mxu1 %vm771_vm1, %v4920_v39 }
 0x29b   :  { %4933 = vtanh.f32 %v1777_v40  ;;  %v1792_v42 = vadd.f32 %v4342_v59, %v5919_v44 }
 0x29c   :  { %v4922_v41 = vpop.eup %4921  ;;  %4935 = vtanh.f32 %v1782_v38  ;;  %v1786_v37 = vpop.f32.mrf.mxu0 }
 0x29d   :  { %v4924_v43 = vpop.eup %4923  ;;  %v1787_v9 = vadd.f32 %v5919_v44, %v1786_v37  ;;  %4440 = vmatprep.mubr.msk.f32.mxu1 %vm771_vm1, %v4922_v41 }
 0x29e   :  { %v4345_v46 = vpop.f32.mrf.mxu0  ;;  %4441 = vmatmul.mubr.msk.f32.gmra.mxu1 %vm771_vm1, %v4924_v43 }
 0x29f   :  { %4937 = vtanh.f32 %v1787_v9  ;;  %v1802_v48 = vadd.f32 %v4345_v46, %v5919_v44 }
 0x2a0   :  { %v4926_v47 = vpop.eup %4925  ;;  %4939 = vtanh.f32 %v1792_v42  ;;  %v1796_v49 = vpop.f32.mrf.mxu0 }
 0x2a1   :  { %v4928_v51 = vpop.eup %4927  ;;  %v1797_v27 = vadd.f32 %v5919_v44, %v1796_v49  ;;  %4443 = vmatprep.mubr.msk.f32.mxu1 %vm771_vm1, %v4926_v47 }
 0x2a2   :  { %v4348_v52 = vpop.f32.mrf.mxu0  ;;  %4444 = vmatmul.mubr.msk.f32.gmra.mxu1 %vm771_vm1, %v4928_v51  ;;  %v2725_v51 = vld [vmem:[%s6281_s9] sm:$0xff] }
 0x2a3   :  { %4941 = vtanh.f32 %v1797_v27  ;;  %v1812_v54 = vadd.f32 %v4348_v52, %v5919_v44  ;;  %4532 = vmatprep.subr.mxu0 %v2725_v51 }
 0x2a4   :  { %v4930_v53 = vpop.eup %4929  ;;  %4943 = vtanh.f32 %v1802_v48  ;;  %v1806_v45 = vpop.f32.mrf.mxu0  ;;  %4533 = vmatpush3.msra.mxu0 %v2725_v51 }
 0x2a5   :  { %v4932_v55 = vpop.eup %4931  ;;  %v1807_v56 = vadd.f32 %v5919_v44, %v1806_v45  ;;  %4446 = vmatprep.mubr.msk.f32.mxu1 %vm771_vm1, %v4930_v53 }
 0x2a6   :  { %v4351_v57 = vpop.f32.mrf.mxu0  ;;  %4447 = vmatmul.mubr.msk.f32.gmra.mxu1 %vm771_vm1, %v4932_v55 }
 0x2a7   :  { %4945 = vtanh.f32 %v1807_v56  ;;  %v1822_v60 = vadd.f32 %v4351_v57, %v5919_v44 }
 0x2a8   :  { %v4934_v58 = vpop.eup %4933  ;;  %4947 = vtanh.f32 %v1812_v54  ;;  %v1816_v62 = vpop.f32.mrf.mxu0 }
 0x2a9   :  { %v4936_v61 = vpop.eup %4935  ;;  %v1817_v63 = vadd.f32 %v5919_v44, %v1816_v62  ;;  %4449 = vmatprep.mubr.msk.f32.mxu1 %vm771_vm1, %v4934_v58 }
 0x2aa   :  { %v4354_v0 = vpop.f32.mrf.mxu0  ;;  %4450 = vmatmul.mubr.msk.f32.gmra.mxu1 %vm771_vm1, %v4936_v61 }
 0x2ab   :  { %4949 = vtanh.f32 %v1817_v63  ;;  %v1832_v3 = vadd.f32 %v4354_v0, %v5919_v44 }
 0x2ac   :  { %v4938_v1 = vpop.eup %4937  ;;  %4951 = vtanh.f32 %v1822_v60  ;;  %v1826_v4 = vpop.f32.mrf.mxu0 }
 0x2ad   :  { %v4940_v5 = vpop.eup %4939  ;;  %v1827_v6 = vadd.f32 %v5919_v44, %v1826_v4  ;;  %4452 = vmatprep.mubr.msk.f32.mxu1 %vm771_vm1, %v4938_v1 }
 0x2ae   :  { %v4357_v7 = vpop.f32.mrf.mxu0  ;;  %4453 = vmatmul.mubr.msk.f32.gmra.mxu1 %vm771_vm1, %v4940_v5 }
 0x2af   :  { %4953 = vtanh.f32 %v1827_v6  ;;  %v1842_v22 = vadd.f32 %v4357_v7, %v5919_v44 }
 0x2b0   :  { %v4942_v8 = vpop.eup %4941  ;;  %4955 = vtanh.f32 %v1832_v3  ;;  %v1836_v10 = vpop.f32.mrf.mxu0 }
 0x2b1   :  { %v4944_v11 = vpop.eup %4943  ;;  %v1837_v13 = vadd.f32 %v5919_v44, %v1836_v10  ;;  %4455 = vmatprep.mubr.msk.f32.mxu1 %vm771_vm1, %v4942_v8 }
 0x2b2   :  { %v4360_v14 = vpop.f32.mrf.mxu0  ;;  %4456 = vmatmul.mubr.msk.f32.gmra.mxu1 %vm771_vm1, %v4944_v11 }
 0x2b3   :  { %4957 = vtanh.f32 %v1837_v13  ;;  %v1852_v16 = vadd.f32 %v4360_v14, %v5919_v44 }
 0x2b4   :  { %v4946_v15 = vpop.eup %4945  ;;  %4959 = vtanh.f32 %v1842_v22  ;;  %v1846_v28 = vpop.f32.mrf.mxu0 }
 0x2b5   :  { %v4948_v19 = vpop.eup %4947  ;;  %v1847_v20 = vadd.f32 %v5919_v44, %v1846_v28  ;;  %4458 = vmatprep.mubr.msk.f32.mxu1 %vm771_vm1, %v4946_v15 }
 0x2b6   :  { %v4363_v18 = vpop.f32.mrf.mxu0  ;;  %4459 = vmatmul.mubr.msk.f32.gmra.mxu1 %vm771_vm1, %v4948_v19 }
 0x2b7   :  { %4961 = vtanh.f32 %v1847_v20  ;;  %v1862_v34 = vadd.f32 %v4363_v18, %v5919_v44 }
 0x2b8   :  { %v4950_v21 = vpop.eup %4949  ;;  %4963 = vtanh.f32 %v1852_v16  ;;  %v1856_v23 = vpop.f32.mrf.mxu0 }
 0x2b9   :  { %v4952_v25 = vpop.eup %4951  ;;  %v1857_v24 = vadd.f32 %v5919_v44, %v1856_v23  ;;  %4461 = vmatprep.mubr.msk.f32.mxu1 %vm771_vm1, %v4950_v21 }
 0x2ba   :  { %v4366_v26 = vpop.f32.mrf.mxu0  ;;  %4462 = vmatmul.mubr.msk.f32.gmra.mxu1 %vm771_vm1, %v4952_v25 }
 0x2bb   :  { %4965 = vtanh.f32 %v1857_v24  ;;  %v1872_v50 = vadd.f32 %v4366_v26, %v5919_v44 }
 0x2bc   :  { %v4954_v29 = vpop.eup %4953  ;;  %4967 = vtanh.f32 %v1862_v34  ;;  %v1866_v31 = vpop.f32.mrf.mxu0 }
 0x2bd   :  { %v4956_v32 = vpop.eup %4955  ;;  %v1867_v30 = vadd.f32 %v5919_v44, %v1866_v31  ;;  %4464 = vmatprep.mubr.msk.f32.mxu1 %vm771_vm1, %v4954_v29 }
 0x2be   :  { %v4369_v12 = vpop.f32.mrf.mxu0  ;;  %4465 = vmatmul.mubr.msk.f32.gmra.mxu1 %vm771_vm1, %v4956_v32 }
 0x2bf   :  { %4969 = vtanh.f32 %v1867_v30  ;;  %v1882_v2 = vadd.f32 %v4369_v12, %v5919_v44 }
 0x2c0   :  { %v4958_v33 = vpop.eup %4957  ;;  %4971 = vtanh.f32 %v1872_v50  ;;  %v1876_v35 = vpop.f32.mrf.mxu0 }
 0x2c1   :  { %v4960_v36 = vpop.eup %4959  ;;  %v1877_v38 = vadd.f32 %v5919_v44, %v1876_v35  ;;  %4467 = vmatprep.mubr.msk.f32.mxu1 %vm771_vm1, %v4958_v33 }
 0x2c2   :  { %v4372_v17 = vpop.f32.mrf.mxu0  ;;  %4468 = vmatmul.mubr.msk.f32.gmra.mxu1 %vm771_vm1, %v4960_v36 }
 0x2c3   :  { %4973 = vtanh.f32 %v1877_v38  ;;  %v1892_v40 = vadd.f32 %v4372_v17, %v5919_v44 }
 0x2c4   :  { %v4962_v39 = vpop.eup %4961  ;;  %4975 = vtanh.f32 %v1882_v2  ;;  %v1886_v59 = vpop.f32.mrf.mxu0 }
 0x2c5   :  { %v4964_v41 = vpop.eup %4963  ;;  %v1887_v42 = vadd.f32 %v5919_v44, %v1886_v59  ;;  %4470 = vmatprep.mubr.msk.f32.mxu1 %vm771_vm1, %v4962_v39 }
 0x2c6   :  { %v4375_v37 = vpop.f32.mrf.mxu0  ;;  %4471 = vmatmul.mubr.msk.f32.gmra.mxu1 %vm771_vm1, %v4964_v41 }
 0x2c7   :  { %4977 = vtanh.f32 %v1887_v42  ;;  %v1902_v9 = vadd.f32 %v4375_v37, %v5919_v44 }
 0x2c8   :  { %v4966_v43 = vpop.eup %4965  ;;  %4979 = vtanh.f32 %v1892_v40  ;;  %v1896_v46 = vpop.f32.mrf.mxu0 }
 0x2c9   :  { %v4968_v47 = vpop.eup %4967  ;;  %v1897_v48 = vadd.f32 %v5919_v44, %v1896_v46  ;;  %4473 = vmatprep.mubr.msk.f32.mxu1 %vm771_vm1, %v4966_v43 }
 0x2ca   :  { %v4378_v49 = vpop.f32.mrf.mxu0  ;;  %4474 = vmatmul.mubr.msk.f32.gmra.mxu1 %vm771_vm1, %v4968_v47 }
 0x2cb   :  { %4981 = vtanh.f32 %v1897_v48  ;;  %v1912_v52 = vadd.f32 %v4378_v49, %v5919_v44 }
 0x2cc   :  { %v4970_v27 = vpop.eup %4969  ;;  %4983 = vtanh.f32 %v1902_v9  ;;  %v1906_v53 = vpop.f32.mrf.mxu0 }
 0x2cd   :  { %v4972_v54 = vpop.eup %4971  ;;  %v1907_v45 = vadd.f32 %v5919_v44, %v1906_v53  ;;  %4476 = vmatprep.mubr.msk.f32.mxu1 %vm771_vm1, %v4970_v27 }
 0x2ce   :  { %v4381_v55 = vpop.f32.mrf.mxu0  ;;  %4477 = vmatmul.mubr.msk.f32.gmra.mxu1 %vm771_vm1, %v4972_v54  ;;  %v6070_v54 = vld [vmem:[%s6280_s8] ss:$0 sm:$0xff] }
 0x2cf   :  { %4985 = vtanh.f32 %v1907_v45  ;;  %v1922_v57 = vadd.f32 %v4381_v55, %v5919_v44 }
 0x2d0   :  { %v4974_v56 = vpop.eup %4973  ;;  %4987 = vtanh.f32 %v1912_v52  ;;  %v1916_v58 = vpop.f32.mrf.mxu0 }
 0x2d1   :  { %v4976_v60 = vpop.eup %4975  ;;  %v1917_v62 = vadd.f32 %v5919_v44, %v1916_v58  ;;  %4479 = vmatprep.mubr.msk.f32.mxu1 %vm771_vm1, %v4974_v56 }
 0x2d2   :  { %v4384_v61 = vpop.f32.mrf.mxu0  ;;  %4480 = vmatmul.mubr.msk.f32.gmra.mxu1 %vm771_vm1, %v4976_v60 }
 0x2d3   :  { %4989 = vtanh.f32 %v1917_v62  ;;  %v1932_v0 = vadd.f32 %v4384_v61, %v5919_v44 }
 0x2d4   :  { %v4978_v63 = vpop.eup %4977  ;;  %4991 = vtanh.f32 %v1922_v57  ;;  %v1926_v1 = vpop.f32.mrf.mxu0 }
 0x2d5   :  { %v4980_v3 = vpop.eup %4979  ;;  %v1927_v4 = vadd.f32 %v5919_v44, %v1926_v1  ;;  %4482 = vmatprep.mubr.msk.f32.mxu1 %vm771_vm1, %v4978_v63 }
 0x2d6   :  { %v4387_v5 = vpop.f32.mrf.mxu0  ;;  %4483 = vmatmul.mubr.msk.f32.gmra.mxu1 %vm771_vm1, %v4980_v3 }
 0x2d7   :  { %4993 = vtanh.f32 %v1927_v4  ;;  %v1942_v7 = vadd.f32 %v4387_v5, %v5919_v44 }
 0x2d8   :  { %v4982_v6 = vpop.eup %4981  ;;  %4995 = vtanh.f32 %v1932_v0  ;;  %v1936_v8 = vpop.f32.mrf.mxu0 }
 0x2d9   :  { %v4984_v22 = vpop.eup %4983  ;;  %v1937_v10 = vadd.f32 %v5919_v44, %v1936_v8  ;;  %4485 = vmatprep.mubr.msk.f32.mxu1 %vm771_vm1, %v4982_v6 }
 0x2da   :  { %v4390_v11 = vpop.f32.mrf.mxu0  ;;  %4486 = vmatmul.mubr.msk.f32.gmra.mxu1 %vm771_vm1, %v4984_v22 }
 0x2db   :  { %4997 = vtanh.f32 %v1937_v10  ;;  %v1952_v14 = vadd.f32 %v4390_v11, %v5919_v44 }
 0x2dc   :  { %v4986_v13 = vpop.eup %4985  ;;  %4999 = vtanh.f32 %v1942_v7  ;;  %v1946_v15 = vpop.f32.mrf.mxu0 }
 0x2dd   :  { %v4988_v16 = vpop.eup %4987  ;;  %v1947_v28 = vadd.f32 %v5919_v44, %v1946_v15  ;;  %4488 = vmatprep.mubr.msk.f32.mxu1 %vm771_vm1, %v4986_v13 }
 0x2de   :  { %v4393_v19 = vpop.f32.mrf.mxu0  ;;  %4489 = vmatmul.mubr.msk.f32.gmra.mxu1 %vm771_vm1, %v4988_v16 }
 0x2df   :  { %5001 = vtanh.f32 %v1947_v28  ;;  %v1962_v18 = vadd.f32 %v4393_v19, %v5919_v44 }
 0x2e0   :  { %v4990_v20 = vpop.eup %4989  ;;  %5003 = vtanh.f32 %v1952_v14  ;;  %v1956_v21 = vpop.f32.mrf.mxu0 }
 0x2e1   :  { %v4992_v34 = vpop.eup %4991  ;;  %v1957_v23 = vadd.f32 %v5919_v44, %v1956_v21  ;;  %4491 = vmatprep.mubr.msk.f32.mxu1 %vm771_vm1, %v4990_v20 }
 0x2e2   :  { %v4396_v25 = vpop.f32.mrf.mxu0  ;;  %4492 = vmatmul.mubr.msk.f32.gmra.mxu1 %vm771_vm1, %v4992_v34 }
 0x2e3   :  { %5005 = vtanh.f32 %v1957_v23  ;;  %v1972_v26 = vadd.f32 %v4396_v25, %v5919_v44 }
 0x2e4   :  { %v4994_v24 = vpop.eup %4993  ;;  %5007 = vtanh.f32 %v1962_v18  ;;  %v1966_v29 = vpop.f32.mrf.mxu0 }
 0x2e5   :  { %v4996_v50 = vpop.eup %4995  ;;  %v1967_v31 = vadd.f32 %v5919_v44, %v1966_v29  ;;  %4494 = vmatprep.mubr.msk.f32.mxu1 %vm771_vm1, %v4994_v24 }
 0x2e6   :  { %v4399_v32 = vpop.f32.mrf.mxu0  ;;  %4495 = vmatmul.mubr.msk.f32.gmra.mxu1 %vm771_vm1, %v4996_v50 }
 0x2e7   :  { %5009 = vtanh.f32 %v1967_v31  ;;  %v1982_v12 = vadd.f32 %v4399_v32, %v5919_v44 }
 0x2e8   :  { %v4998_v30 = vpop.eup %4997  ;;  %5011 = vtanh.f32 %v1972_v26  ;;  %v1976_v33 = vpop.f32.mrf.mxu0 }
 0x2e9   :  { %v5000_v2 = vpop.eup %4999  ;;  %v1977_v35 = vadd.f32 %v5919_v44, %v1976_v33  ;;  %4497 = vmatprep.mubr.msk.f32.mxu1 %vm771_vm1, %v4998_v30 }
 0x2ea   :  { %v4402_v36 = vpop.f32.mrf.mxu0  ;;  %4498 = vmatmul.mubr.msk.f32.gmra.mxu1 %vm771_vm1, %v5000_v2 }
 0x2eb   :  { %5013 = vtanh.f32 %v1977_v35  ;;  %v1992_v17 = vadd.f32 %v4402_v36, %v5919_v44 }
 0x2ec   :  { %v5002_v38 = vpop.eup %5001  ;;  %5015 = vtanh.f32 %v1982_v12  ;;  %v1986_v39 = vpop.f32.mrf.mxu0 }
 0x2ed   :  { %v5004_v40 = vpop.eup %5003  ;;  %v1987_v59 = vadd.f32 %v5919_v44, %v1986_v39  ;;  %4500 = vmatprep.mubr.msk.f32.mxu1 %vm771_vm1, %v5002_v38 }
 0x2ee   :  { %v4405_v41 = vpop.f32.mrf.mxu0  ;;  %4501 = vmatmul.mubr.msk.f32.gmra.mxu1 %vm771_vm1, %v5004_v40 }
 0x2ef   :  { %5017 = vtanh.f32 %v1987_v59  ;;  %v2002_v37 = vadd.f32 %v4405_v41, %v5919_v44 }
 0x2f0   :  { %v5006_v42 = vpop.eup %5005  ;;  %5019 = vtanh.f32 %v1992_v17  ;;  %v1996_v43 = vpop.f32.mrf.mxu0 }
 0x2f1   :  { %v5008_v9 = vpop.eup %5007  ;;  %v1997_v46 = vadd.f32 %v5919_v44, %v1996_v43  ;;  %4503 = vmatprep.mubr.msk.f32.mxu1 %vm771_vm1, %v5006_v42 }
 0x2f2   :  { %4504 = vmatmul.mubr.msk.f32.gmra.mxu1 %vm771_vm1, %v5008_v9 }
 0x2f3   :  { %5021 = vtanh.f32 %v1997_v46 }
 0x2f4   :  { %v5010_v47 = vpop.eup %5009  ;;  %5023 = vtanh.f32 %v2002_v37 }
 0x2f5   :  { %v5012_v48 = vpop.eup %5011  ;;  %4506 = vmatprep.mubr.msk.f32.mxu1 %vm771_vm1, %v5010_v47 }
 0x2f6   :  { %4507 = vmatmul.mubr.msk.f32.gmra.mxu1 %vm771_vm1, %v5012_v48 }
 0x2f8   :  { %v5014_v49 = vpop.eup %5013 }
 0x2f9   :  { %v5016_v51 = vpop.eup %5015  ;;  %4509 = vmatprep.mubr.msk.f32.mxu1 %vm771_vm1, %v5014_v49 }
 0x2fa   :  { %4510 = vmatmul.mubr.msk.f32.gmra.mxu1 %vm771_vm1, %v5016_v51 }
 0x2fc   :  { %v5018_v27 = vpop.eup %5017 }
 0x2fd   :  { %v5020_v44 = vpop.eup %5019  ;;  %4512 = vmatprep.mubr.msk.f32.mxu1 %vm771_vm1, %v5018_v27 }
 0x2fe   :  { %4513 = vmatmul.mubr.msk.f32.gmra.mxu1 %vm771_vm1, %v5020_v44 }
 0x300   :  { %v5022_v52 = vpop.eup %5021 }
 0x301   :  { %v5024_v53 = vpop.eup %5023  ;;  %4515 = vmatprep.mubr.msk.f32.mxu1 %vm771_vm1, %v5022_v52 }
 0x302   :  { %4516 = vmatmul.mubr.msk.f32.gmra.mxu1 %vm771_vm1, %v5024_v53 }
 0x346   :  { %v4424_v45 = vpop.f32.mrf.mxu1 }
 0x347   :  { %v2348_v55 = vadd.f32 %v4424_v45, %v6070_v54 }
 0x348   :  { %v2342_v56 = vpop.f32.mrf.mxu1 }
 0x349   :  { %v2343_v57 = vadd.f32 %v6070_v54, %v2342_v56 }
 0x34a   :  { %v4427_v58 = vpop.f32.mrf.mxu1 }
 0x34b   :  { %5025 = vtanh.f32 %v2343_v57  ;;  %v2358_v60 = vadd.f32 %v4427_v58, %v6070_v54 }
 0x34c   :  { %5027 = vtanh.f32 %v2348_v55  ;;  %v2352_v62 = vpop.f32.mrf.mxu1 }
 0x34d   :  { %v2353_v61 = vadd.f32 %v6070_v54, %v2352_v62 }
 0x34e   :  { %v4430_v63 = vpop.f32.mrf.mxu1 }
 0x34f   :  { %5029 = vtanh.f32 %v2353_v61  ;;  %v2368_v0 = vadd.f32 %v4430_v63, %v6070_v54 }
 0x350   :  { %5031 = vtanh.f32 %v2358_v60  ;;  %v2362_v1 = vpop.f32.mrf.mxu1 }
 0x351   :  { %v2363_v3 = vadd.f32 %v6070_v54, %v2362_v1 }
 0x352   :  { %v4433_v4 = vpop.f32.mrf.mxu1 }
 0x353   :  { %5033 = vtanh.f32 %v2363_v3  ;;  %v2378_v5 = vadd.f32 %v4433_v4, %v6070_v54 }
 0x354   :  { %5035 = vtanh.f32 %v2368_v0  ;;  %v2372_v6 = vpop.f32.mrf.mxu1 }
 0x355   :  { %v2373_v7 = vadd.f32 %v6070_v54, %v2372_v6 }
 0x356   :  { %v4436_v8 = vpop.f32.mrf.mxu1 }
 0x357   :  { %5037 = vtanh.f32 %v2373_v7  ;;  %v2388_v10 = vadd.f32 %v4436_v8, %v6070_v54 }
 0x358   :  { %v5026_v22 = vpop.eup %5025  ;;  %5039 = vtanh.f32 %v2378_v5  ;;  %v2382_v11 = vpop.f32.mrf.mxu1 }
 0x359   :  { %v5028_v13 = vpop.eup %5027  ;;  %v2383_v14 = vadd.f32 %v6070_v54, %v2382_v11  ;;  %4534 = vmatprep.mubr.msk.f32.mxu0 %vm771_vm1, %v5026_v22 }
 0x35a   :  { %v4439_v15 = vpop.f32.mrf.mxu1  ;;  %4535 = vmatmul.mubr.msk.f32.vlgmr.msra.gmra.mxu0 %vm771_vm1, %v5028_v13 }
 0x35b   :  { %5041 = vtanh.f32 %v2383_v14  ;;  %v2398_v28 = vadd.f32 %v4439_v15, %v6070_v54 }
 0x35c   :  { %v5030_v16 = vpop.eup %5029  ;;  %5043 = vtanh.f32 %v2388_v10  ;;  %v2392_v19 = vpop.f32.mrf.mxu1 }
 0x35d   :  { %v5032_v20 = vpop.eup %5031  ;;  %v2393_v18 = vadd.f32 %v6070_v54, %v2392_v19  ;;  %4537 = vmatprep.mubr.msk.f32.mxu0 %vm771_vm1, %v5030_v16 }
 0x35e   :  { %v4442_v21 = vpop.f32.mrf.mxu1  ;;  %4538 = vmatmul.mubr.msk.f32.gmra.mxu0 %vm771_vm1, %v5032_v20 }
 0x35f   :  { %5045 = vtanh.f32 %v2393_v18  ;;  %v2408_v23 = vadd.f32 %v4442_v21, %v6070_v54 }
 0x360   :  { %v5034_v34 = vpop.eup %5033  ;;  %5047 = vtanh.f32 %v2398_v28  ;;  %v2402_v25 = vpop.f32.mrf.mxu1 }
 0x361   :  { %v5036_v24 = vpop.eup %5035  ;;  %v2403_v26 = vadd.f32 %v6070_v54, %v2402_v25  ;;  %4540 = vmatprep.mubr.msk.f32.mxu0 %vm771_vm1, %v5034_v34 }
 0x362   :  { %v4445_v29 = vpop.f32.mrf.mxu1  ;;  %4541 = vmatmul.mubr.msk.f32.gmra.mxu0 %vm771_vm1, %v5036_v24 }
 0x363   :  { %5049 = vtanh.f32 %v2403_v26  ;;  %v2418_v31 = vadd.f32 %v4445_v29, %v6070_v54 }
 0x364   :  { %v5038_v50 = vpop.eup %5037  ;;  %5051 = vtanh.f32 %v2408_v23  ;;  %v2412_v32 = vpop.f32.mrf.mxu1 }
 0x365   :  { %v5040_v30 = vpop.eup %5039  ;;  %v2413_v12 = vadd.f32 %v6070_v54, %v2412_v32  ;;  %4543 = vmatprep.mubr.msk.f32.mxu0 %vm771_vm1, %v5038_v50 }
 0x366   :  { %v4448_v33 = vpop.f32.mrf.mxu1  ;;  %4544 = vmatmul.mubr.msk.f32.gmra.mxu0 %vm771_vm1, %v5040_v30 }
 0x367   :  { %5053 = vtanh.f32 %v2413_v12  ;;  %v2428_v35 = vadd.f32 %v4448_v33, %v6070_v54 }
 0x368   :  { %v5042_v2 = vpop.eup %5041  ;;  %5055 = vtanh.f32 %v2418_v31  ;;  %v2422_v36 = vpop.f32.mrf.mxu1 }
 0x369   :  { %v5044_v38 = vpop.eup %5043  ;;  %v2423_v17 = vadd.f32 %v6070_v54, %v2422_v36  ;;  %4546 = vmatprep.mubr.msk.f32.mxu0 %vm771_vm1, %v5042_v2 }
 0x36a   :  { %v4451_v39 = vpop.f32.mrf.mxu1  ;;  %4547 = vmatmul.mubr.msk.f32.gmra.mxu0 %vm771_vm1, %v5044_v38 }
 0x36b   :  { %5057 = vtanh.f32 %v2423_v17  ;;  %v2438_v59 = vadd.f32 %v4451_v39, %v6070_v54 }
 0x36c   :  { %v5046_v40 = vpop.eup %5045  ;;  %5059 = vtanh.f32 %v2428_v35  ;;  %v2432_v41 = vpop.f32.mrf.mxu1 }
 0x36d   :  { %v5048_v42 = vpop.eup %5047  ;;  %v2433_v37 = vadd.f32 %v6070_v54, %v2432_v41  ;;  %4549 = vmatprep.mubr.msk.f32.mxu0 %vm771_vm1, %v5046_v40 }
 0x36e   :  { %v4454_v43 = vpop.f32.mrf.mxu1  ;;  %4550 = vmatmul.mubr.msk.f32.gmra.mxu0 %vm771_vm1, %v5048_v42 }
 0x36f   :  { %5061 = vtanh.f32 %v2433_v37  ;;  %v2448_v46 = vadd.f32 %v4454_v43, %v6070_v54 }
 0x370   :  { %v5050_v9 = vpop.eup %5049  ;;  %5063 = vtanh.f32 %v2438_v59  ;;  %v2442_v47 = vpop.f32.mrf.mxu1 }
 0x371   :  { %v5052_v48 = vpop.eup %5051  ;;  %v2443_v49 = vadd.f32 %v6070_v54, %v2442_v47  ;;  %4552 = vmatprep.mubr.msk.f32.mxu0 %vm771_vm1, %v5050_v9 }
 0x372   :  { %v4457_v51 = vpop.f32.mrf.mxu1  ;;  %4553 = vmatmul.mubr.msk.f32.gmra.mxu0 %vm771_vm1, %v5052_v48 }
 0x373   :  { %5065 = vtanh.f32 %v2443_v49  ;;  %v2458_v44 = vadd.f32 %v4457_v51, %v6070_v54 }
 0x374   :  { %v5054_v27 = vpop.eup %5053  ;;  %5067 = vtanh.f32 %v2448_v46  ;;  %v2452_v52 = vpop.f32.mrf.mxu1 }
 0x375   :  { %v5056_v53 = vpop.eup %5055  ;;  %v2453_v45 = vadd.f32 %v6070_v54, %v2452_v52  ;;  %4555 = vmatprep.mubr.msk.f32.mxu0 %vm771_vm1, %v5054_v27 }
 0x376   :  { %v4460_v55 = vpop.f32.mrf.mxu1  ;;  %4556 = vmatmul.mubr.msk.f32.gmra.mxu0 %vm771_vm1, %v5056_v53 }
 0x377   :  { %5069 = vtanh.f32 %v2453_v45  ;;  %v2468_v57 = vadd.f32 %v4460_v55, %v6070_v54 }
 0x378   :  { %v5058_v56 = vpop.eup %5057  ;;  %5071 = vtanh.f32 %v2458_v44  ;;  %v2462_v58 = vpop.f32.mrf.mxu1 }
 0x379   :  { %v5060_v60 = vpop.eup %5059  ;;  %v2463_v62 = vadd.f32 %v6070_v54, %v2462_v58  ;;  %4558 = vmatprep.mubr.msk.f32.mxu0 %vm771_vm1, %v5058_v56 }
 0x37a   :  { %v4463_v61 = vpop.f32.mrf.mxu1  ;;  %4559 = vmatmul.mubr.msk.f32.gmra.mxu0 %vm771_vm1, %v5060_v60 }
 0x37b   :  { %5073 = vtanh.f32 %v2463_v62  ;;  %v2478_v0 = vadd.f32 %v4463_v61, %v6070_v54 }
 0x37c   :  { %v5062_v63 = vpop.eup %5061  ;;  %5075 = vtanh.f32 %v2468_v57  ;;  %v2472_v1 = vpop.f32.mrf.mxu1 }
 0x37d   :  { %v5064_v3 = vpop.eup %5063  ;;  %v2473_v4 = vadd.f32 %v6070_v54, %v2472_v1  ;;  %4561 = vmatprep.mubr.msk.f32.mxu0 %vm771_vm1, %v5062_v63 }
 0x37e   :  { %v4466_v5 = vpop.f32.mrf.mxu1  ;;  %4562 = vmatmul.mubr.msk.f32.gmra.mxu0 %vm771_vm1, %v5064_v3 }
 0x37f   :  { %5077 = vtanh.f32 %v2473_v4  ;;  %v2488_v7 = vadd.f32 %v4466_v5, %v6070_v54 }
 0x380   :  { %v5066_v6 = vpop.eup %5065  ;;  %5079 = vtanh.f32 %v2478_v0  ;;  %v2482_v8 = vpop.f32.mrf.mxu1 }
 0x381   :  { %v5068_v22 = vpop.eup %5067  ;;  %v2483_v10 = vadd.f32 %v6070_v54, %v2482_v8  ;;  %4564 = vmatprep.mubr.msk.f32.mxu0 %vm771_vm1, %v5066_v6 }
 0x382   :  { %v4469_v11 = vpop.f32.mrf.mxu1  ;;  %4565 = vmatmul.mubr.msk.f32.gmra.mxu0 %vm771_vm1, %v5068_v22 }
 0x383   :  { %5081 = vtanh.f32 %v2483_v10  ;;  %v2498_v14 = vadd.f32 %v4469_v11, %v6070_v54 }
 0x384   :  { %v5070_v13 = vpop.eup %5069  ;;  %5083 = vtanh.f32 %v2488_v7  ;;  %v2492_v15 = vpop.f32.mrf.mxu1 }
 0x385   :  { %v5072_v16 = vpop.eup %5071  ;;  %v2493_v28 = vadd.f32 %v6070_v54, %v2492_v15  ;;  %4567 = vmatprep.mubr.msk.f32.mxu0 %vm771_vm1, %v5070_v13 }
 0x386   :  { %v4472_v19 = vpop.f32.mrf.mxu1  ;;  %4568 = vmatmul.mubr.msk.f32.gmra.mxu0 %vm771_vm1, %v5072_v16 }
 0x387   :  { %5085 = vtanh.f32 %v2493_v28  ;;  %v2508_v18 = vadd.f32 %v4472_v19, %v6070_v54 }
 0x388   :  { %v5074_v20 = vpop.eup %5073  ;;  %5087 = vtanh.f32 %v2498_v14  ;;  %v2502_v21 = vpop.f32.mrf.mxu1 }
 0x389   :  { %v5076_v34 = vpop.eup %5075  ;;  %v2503_v23 = vadd.f32 %v6070_v54, %v2502_v21  ;;  %4570 = vmatprep.mubr.msk.f32.mxu0 %vm771_vm1, %v5074_v20 }
 0x38a   :  { %v4475_v25 = vpop.f32.mrf.mxu1  ;;  %4571 = vmatmul.mubr.msk.f32.gmra.mxu0 %vm771_vm1, %v5076_v34 }
 0x38b   :  { %5089 = vtanh.f32 %v2503_v23  ;;  %v2518_v26 = vadd.f32 %v4475_v25, %v6070_v54 }
 0x38c   :  { %v5078_v24 = vpop.eup %5077  ;;  %5091 = vtanh.f32 %v2508_v18  ;;  %v2512_v29 = vpop.f32.mrf.mxu1 }
 0x38d   :  { %v5080_v50 = vpop.eup %5079  ;;  %v2513_v31 = vadd.f32 %v6070_v54, %v2512_v29  ;;  %4573 = vmatprep.mubr.msk.f32.mxu0 %vm771_vm1, %v5078_v24 }
 0x38e   :  { %v4478_v32 = vpop.f32.mrf.mxu1  ;;  %4574 = vmatmul.mubr.msk.f32.gmra.mxu0 %vm771_vm1, %v5080_v50 }
 0x38f   :  { %5093 = vtanh.f32 %v2513_v31  ;;  %v2528_v12 = vadd.f32 %v4478_v32, %v6070_v54 }
 0x390   :  { %v5082_v30 = vpop.eup %5081  ;;  %5095 = vtanh.f32 %v2518_v26  ;;  %v2522_v33 = vpop.f32.mrf.mxu1 }
 0x391   :  { %v5084_v2 = vpop.eup %5083  ;;  %v2523_v35 = vadd.f32 %v6070_v54, %v2522_v33  ;;  %4576 = vmatprep.mubr.msk.f32.mxu0 %vm771_vm1, %v5082_v30 }
 0x392   :  { %v4481_v36 = vpop.f32.mrf.mxu1  ;;  %4577 = vmatmul.mubr.msk.f32.gmra.mxu0 %vm771_vm1, %v5084_v2 }
 0x393   :  { %5097 = vtanh.f32 %v2523_v35  ;;  %v2538_v17 = vadd.f32 %v4481_v36, %v6070_v54 }
 0x394   :  { %v5086_v38 = vpop.eup %5085  ;;  %5099 = vtanh.f32 %v2528_v12  ;;  %v2532_v39 = vpop.f32.mrf.mxu1 }
 0x395   :  { %v5088_v40 = vpop.eup %5087  ;;  %v2533_v59 = vadd.f32 %v6070_v54, %v2532_v39  ;;  %4579 = vmatprep.mubr.msk.f32.mxu0 %vm771_vm1, %v5086_v38 }
 0x396   :  { %v4484_v41 = vpop.f32.mrf.mxu1  ;;  %4580 = vmatmul.mubr.msk.f32.gmra.mxu0 %vm771_vm1, %v5088_v40 }
 0x397   :  { %5101 = vtanh.f32 %v2533_v59  ;;  %v2548_v37 = vadd.f32 %v4484_v41, %v6070_v54 }
 0x398   :  { %v5090_v42 = vpop.eup %5089  ;;  %5103 = vtanh.f32 %v2538_v17  ;;  %v2542_v43 = vpop.f32.mrf.mxu1 }
 0x399   :  { %v5092_v9 = vpop.eup %5091  ;;  %v2543_v46 = vadd.f32 %v6070_v54, %v2542_v43  ;;  %4582 = vmatprep.mubr.msk.f32.mxu0 %vm771_vm1, %v5090_v42 }
 0x39a   :  { %v4487_v47 = vpop.f32.mrf.mxu1  ;;  %4583 = vmatmul.mubr.msk.f32.gmra.mxu0 %vm771_vm1, %v5092_v9 }
 0x39b   :  { %5105 = vtanh.f32 %v2543_v46  ;;  %v2558_v49 = vadd.f32 %v4487_v47, %v6070_v54 }
 0x39c   :  { %v5094_v48 = vpop.eup %5093  ;;  %5107 = vtanh.f32 %v2548_v37  ;;  %v2552_v51 = vpop.f32.mrf.mxu1 }
 0x39d   :  { %v5096_v27 = vpop.eup %5095  ;;  %v2553_v44 = vadd.f32 %v6070_v54, %v2552_v51  ;;  %4585 = vmatprep.mubr.msk.f32.mxu0 %vm771_vm1, %v5094_v48 }
 0x39e   :  { %v4490_v52 = vpop.f32.mrf.mxu1  ;;  %4586 = vmatmul.mubr.msk.f32.gmra.mxu0 %vm771_vm1, %v5096_v27 }
 0x39f   :  { %5109 = vtanh.f32 %v2553_v44  ;;  %v2568_v45 = vadd.f32 %v4490_v52, %v6070_v54 }
 0x3a0   :  { %v5098_v53 = vpop.eup %5097  ;;  %5111 = vtanh.f32 %v2558_v49  ;;  %v2562_v55 = vpop.f32.mrf.mxu1 }
 0x3a1   :  { %v5100_v56 = vpop.eup %5099  ;;  %v2563_v57 = vadd.f32 %v6070_v54, %v2562_v55  ;;  %4588 = vmatprep.mubr.msk.f32.mxu0 %vm771_vm1, %v5098_v53 }
 0x3a2   :  { %v4493_v58 = vpop.f32.mrf.mxu1  ;;  %4589 = vmatmul.mubr.msk.f32.gmra.mxu0 %vm771_vm1, %v5100_v56  ;;  %v6203_v56 = vld [vmem:[%s6282_s10] ss:$0 sm:$0xff]  ;;  %s5175_s10 = smov [#allocation2]  }
 0x3a3   :  { %5113 = vtanh.f32 %v2563_v57  ;;  %v2578_v62 = vadd.f32 %v4493_v58, %v6070_v54  ;;  %s3386_s3 = sshll.u32 %s5175_s10, 4  ;;  %s3387_s3 = int_to_ptr.vmem [resolvable:$true] %s3386_s3 }
 0x3a4   :  { %v5102_v60 = vpop.eup %5101  ;;  %5115 = vtanh.f32 %v2568_v45  ;;  %v2572_v61 = vpop.f32.mrf.mxu1  ;;  %s5153_s1 = scalar_lea.vmem %s3387_s3, 8192  ;;  %p5158_p1 = scmp.lt.s32.totalorder %s3387_s3, %s3387_s3 }
 0x3a5   :  { %v5104_v63 = vpop.eup %5103  ;;  %v2573_v0 = vadd.f32 %v6070_v54, %v2572_v61  ;;  %4591 = vmatprep.mubr.msk.f32.mxu0 %vm771_vm1, %v5102_v60  ;;  %p5154_p0 = scmp.ne.s32.totalorder %s3387_s3, %s5153_s1  ;;  %p5159_p2 = scmp.lt.s32.totalorder %s5153_s1, %s5153_s1 }
 0x3a6   :  { %v4496_v1 = vpop.f32.mrf.mxu1  ;;  %4592 = vmatmul.mubr.msk.f32.gmra.mxu0 %vm771_vm1, %v5104_v63 }
 0x3a7   :  { %5117 = vtanh.f32 %v2573_v0  ;;  %v2588_v4 = vadd.f32 %v4496_v1, %v6070_v54  ;;  %p5160_p3 = por %p5159_p2, %p5158_p1 }
 0x3a8   :  { %v5106_v3 = vpop.eup %5105  ;;  %5119 = vtanh.f32 %v2578_v62  ;;  %v2582_v5 = vpop.f32.mrf.mxu1 }
 0x3a9   :  { %v5108_v6 = vpop.eup %5107  ;;  %v2583_v7 = vadd.f32 %v6070_v54, %v2582_v5  ;;  %4594 = vmatprep.mubr.msk.f32.mxu0 %vm771_vm1, %v5106_v3  ;;  %p5161_p4 = pnand %p5160_p3, %p5154_p0 }
 0x3aa   :  { %v4499_v8 = vpop.f32.mrf.mxu1  ;;  %4595 = vmatmul.mubr.msk.f32.gmra.mxu0 %vm771_vm1, %v5108_v6 }
 0x3ab   :  { %5121 = vtanh.f32 %v2583_v7  ;;  %v2598_v10 = vadd.f32 %v4499_v8, %v6070_v54 }
 0x3ac   :  { %v5110_v22 = vpop.eup %5109  ;;  %5123 = vtanh.f32 %v2588_v4  ;;  %v2592_v11 = vpop.f32.mrf.mxu1 }
 0x3ad   :  { %v5112_v13 = vpop.eup %5111  ;;  %v2593_v14 = vadd.f32 %v6070_v54, %v2592_v11  ;;  %4597 = vmatprep.mubr.msk.f32.mxu0 %vm771_vm1, %v5110_v22 }
 0x3ae   :  { %v4502_v15 = vpop.f32.mrf.mxu1  ;;  %4598 = vmatmul.mubr.msk.f32.gmra.mxu0 %vm771_vm1, %v5112_v13 }
 0x3af   :  { %5125 = vtanh.f32 %v2593_v14  ;;  %v2608_v28 = vadd.f32 %v4502_v15, %v6070_v54 }
 0x3b0   :  { %v5114_v16 = vpop.eup %5113  ;;  %5127 = vtanh.f32 %v2598_v10  ;;  %v2602_v19 = vpop.f32.mrf.mxu1 }
 0x3b1   :  { %v5116_v20 = vpop.eup %5115  ;;  %v2603_v18 = vadd.f32 %v6070_v54, %v2602_v19  ;;  %4600 = vmatprep.mubr.msk.f32.mxu0 %vm771_vm1, %v5114_v16 }
 0x3b2   :  { %v4505_v21 = vpop.f32.mrf.mxu1  ;;  %4601 = vmatmul.mubr.msk.f32.gmra.mxu0 %vm771_vm1, %v5116_v20 }
 0x3b3   :  { %5129 = vtanh.f32 %v2603_v18  ;;  %v2618_v23 = vadd.f32 %v4505_v21, %v6070_v54 }
 0x3b4   :  { %v5118_v34 = vpop.eup %5117  ;;  %5131 = vtanh.f32 %v2608_v28  ;;  %v2612_v25 = vpop.f32.mrf.mxu1 }
 0x3b5   :  { %v5120_v24 = vpop.eup %5119  ;;  %v2613_v26 = vadd.f32 %v6070_v54, %v2612_v25  ;;  %4603 = vmatprep.mubr.msk.f32.mxu0 %vm771_vm1, %v5118_v34 }
 0x3b6   :  { %v4508_v29 = vpop.f32.mrf.mxu1  ;;  %4604 = vmatmul.mubr.msk.f32.gmra.mxu0 %vm771_vm1, %v5120_v24 }
 0x3b7   :  { %5133 = vtanh.f32 %v2613_v26  ;;  %v2628_v31 = vadd.f32 %v4508_v29, %v6070_v54 }
 0x3b8   :  { %v5122_v50 = vpop.eup %5121  ;;  %5135 = vtanh.f32 %v2618_v23  ;;  %v2622_v32 = vpop.f32.mrf.mxu1 }
 0x3b9   :  { %v5124_v30 = vpop.eup %5123  ;;  %v2623_v12 = vadd.f32 %v6070_v54, %v2622_v32  ;;  %4606 = vmatprep.mubr.msk.f32.mxu0 %vm771_vm1, %v5122_v50 }
 0x3ba   :  { %v4511_v33 = vpop.f32.mrf.mxu1  ;;  %4607 = vmatmul.mubr.msk.f32.gmra.mxu0 %vm771_vm1, %v5124_v30 }
 0x3bb   :  { %5137 = vtanh.f32 %v2623_v12  ;;  %v2638_v35 = vadd.f32 %v4511_v33, %v6070_v54 }
 0x3bc   :  { %v5126_v2 = vpop.eup %5125  ;;  %5139 = vtanh.f32 %v2628_v31  ;;  %v2632_v36 = vpop.f32.mrf.mxu1 }
 0x3bd   :  { %v5128_v38 = vpop.eup %5127  ;;  %v2633_v17 = vadd.f32 %v6070_v54, %v2632_v36  ;;  %4609 = vmatprep.mubr.msk.f32.mxu0 %vm771_vm1, %v5126_v2 }
 0x3be   :  { %v4514_v39 = vpop.f32.mrf.mxu1  ;;  %4610 = vmatmul.mubr.msk.f32.gmra.mxu0 %vm771_vm1, %v5128_v38 }
 0x3bf   :  { %5141 = vtanh.f32 %v2633_v17  ;;  %v2648_v59 = vadd.f32 %v4514_v39, %v6070_v54 }
 0x3c0   :  { %v5130_v40 = vpop.eup %5129  ;;  %5143 = vtanh.f32 %v2638_v35  ;;  %v2642_v41 = vpop.f32.mrf.mxu1 }
 0x3c1   :  { %v5132_v42 = vpop.eup %5131  ;;  %v2643_v37 = vadd.f32 %v6070_v54, %v2642_v41  ;;  %4612 = vmatprep.mubr.msk.f32.mxu0 %vm771_vm1, %v5130_v40 }
 0x3c2   :  { %v4517_v43 = vpop.f32.mrf.mxu1  ;;  %4613 = vmatmul.mubr.msk.f32.gmra.mxu0 %vm771_vm1, %v5132_v42 }
 0x3c3   :  { %5145 = vtanh.f32 %v2643_v37  ;;  %v2658_v46 = vadd.f32 %v4517_v43, %v6070_v54 }
 0x3c4   :  { %v5134_v9 = vpop.eup %5133  ;;  %5147 = vtanh.f32 %v2648_v59  ;;  %v2652_v47 = vpop.f32.mrf.mxu1 }
 0x3c5   :  { %v5136_v48 = vpop.eup %5135  ;;  %v2653_v49 = vadd.f32 %v6070_v54, %v2652_v47  ;;  %4615 = vmatprep.mubr.msk.f32.mxu0 %vm771_vm1, %v5134_v9 }
 0x3c6   :  { %4616 = vmatmul.mubr.msk.f32.gmra.mxu0 %vm771_vm1, %v5136_v48 }
 0x3c7   :  { %5149 = vtanh.f32 %v2653_v49 }
 0x3c8   :  { %v5138_v51 = vpop.eup %5137  ;;  %5151 = vtanh.f32 %v2658_v46 }
 0x3c9   :  { %v5140_v27 = vpop.eup %5139  ;;  %4618 = vmatprep.mubr.msk.f32.mxu0 %vm771_vm1, %v5138_v51 }
 0x3ca   :  { %4619 = vmatmul.mubr.msk.f32.gmra.mxu0 %vm771_vm1, %v5140_v27 }
 0x3cc   :  { %v5142_v44 = vpop.eup %5141 }
 0x3cd   :  { %v5144_v52 = vpop.eup %5143  ;;  %4621 = vmatprep.mubr.msk.f32.mxu0 %vm771_vm1, %v5142_v44 }
 0x3ce   :  { %4622 = vmatmul.mubr.msk.f32.gmra.mxu0 %vm771_vm1, %v5144_v52 }
 0x3d0   :  { %v5146_v53 = vpop.eup %5145 }
 0x3d1   :  { %v5148_v54 = vpop.eup %5147  ;;  %4624 = vmatprep.mubr.msk.f32.mxu0 %vm771_vm1, %v5146_v53 }
 0x3d2   :  { %4625 = vmatmul.mubr.msk.f32.gmra.mxu0 %vm771_vm1, %v5148_v54 }
 0x3d4   :  { %v5150_v45 = vpop.eup %5149 }
 0x3d5   :  { %v5152_v55 = vpop.eup %5151  ;;  %4627 = vmatprep.mubr.msk.f32.mxu0 %vm771_vm1, %v5150_v45 }
 0x3d6   :  { %4628 = vmatmul.mubr.msk.f32.gmra.mxu0 %vm771_vm1, %v5152_v55 }
 0x41a   :  { %v4536_v57 = vpop.f32.mrf.mxu0 }
 0x41b   :  { %v3004_v58 = vadd.f32 %v4536_v57, %v6203_v56 }
 0x41c   :  { %v2998_v60 = vpop.f32.mrf.mxu0 }
 0x41d   :  { %3318 = vst [vmem:[#allocation2 + $0x8] sm:$0xff] %v3004_v58  ;;  %v2999_v62 = vadd.f32 %v6203_v56, %v2998_v60 }
 0x41e   :  { %v4539_v61 = vpop.f32.mrf.mxu0 }
 0x41f   :  { %3317 = vst [vmem:[#allocation2] sm:$0xff] %v2999_v62  ;;  %v3014_v63 = vadd.f32 %v4539_v61, %v6203_v56 }
 0x420   :  { %v3008_v0 = vpop.f32.mrf.mxu0 }
 0x421   :  { %3320 = vst [vmem:[#allocation2 + $0x18] sm:$0xff] %v3014_v63  ;;  %v3009_v1 = vadd.f32 %v6203_v56, %v3008_v0 }
 0x422   :  { %v4542_v3 = vpop.f32.mrf.mxu0 }
 0x423   :  { %3319 = vst [vmem:[#allocation2 + $0x10] sm:$0xff] %v3009_v1  ;;  %v3024_v4 = vadd.f32 %v4542_v3, %v6203_v56 }
 0x424   :  { %v3018_v5 = vpop.f32.mrf.mxu0 }
 0x425   :  { %3322 = vst [vmem:[#allocation2 + $0x28] sm:$0xff] %v3024_v4  ;;  %v3019_v6 = vadd.f32 %v6203_v56, %v3018_v5 }
 0x426   :  { %v4545_v7 = vpop.f32.mrf.mxu0 }
 0x427   :  { %3321 = vst [vmem:[#allocation2 + $0x20] sm:$0xff] %v3019_v6  ;;  %v3034_v8 = vadd.f32 %v4545_v7, %v6203_v56 }
 0x428   :  { %v3028_v22 = vpop.f32.mrf.mxu0 }
 0x429   :  { %3324 = vst [vmem:[#allocation2 + $0x38] sm:$0xff] %v3034_v8  ;;  %v3029_v10 = vadd.f32 %v6203_v56, %v3028_v22 }
 0x42a   :  { %v4548_v11 = vpop.f32.mrf.mxu0 }
 0x42b   :  { %3323 = vst [vmem:[#allocation2 + $0x30] sm:$0xff] %v3029_v10  ;;  %v3044_v13 = vadd.f32 %v4548_v11, %v6203_v56 }
 0x42c   :  { %v3038_v14 = vpop.f32.mrf.mxu0 }
 0x42d   :  { %3326 = vst [vmem:[#allocation2 + $0x48] sm:$0xff] %v3044_v13  ;;  %v3039_v15 = vadd.f32 %v6203_v56, %v3038_v14 }
 0x42e   :  { %v4551_v16 = vpop.f32.mrf.mxu0 }
 0x42f   :  { %3325 = vst [vmem:[#allocation2 + $0x40] sm:$0xff] %v3039_v15  ;;  %v3054_v28 = vadd.f32 %v4551_v16, %v6203_v56 }
 0x430   :  { %v3048_v19 = vpop.f32.mrf.mxu0 }
 0x431   :  { %3328 = vst [vmem:[#allocation2 + $0x58] sm:$0xff] %v3054_v28  ;;  %v3049_v20 = vadd.f32 %v6203_v56, %v3048_v19 }
 0x432   :  { %v4554_v18 = vpop.f32.mrf.mxu0 }
 0x433   :  { %3327 = vst [vmem:[#allocation2 + $0x50] sm:$0xff] %v3049_v20  ;;  %v3064_v21 = vadd.f32 %v4554_v18, %v6203_v56 }
 0x434   :  { %v3058_v34 = vpop.f32.mrf.mxu0 }
 0x435   :  { %3330 = vst [vmem:[#allocation2 + $0x68] sm:$0xff] %v3064_v21  ;;  %v3059_v23 = vadd.f32 %v6203_v56, %v3058_v34 }
 0x436   :  { %v4557_v25 = vpop.f32.mrf.mxu0 }
 0x437   :  { %3329 = vst [vmem:[#allocation2 + $0x60] sm:$0xff] %v3059_v23  ;;  %v3074_v24 = vadd.f32 %v4557_v25, %v6203_v56 }
 0x438   :  { %v3068_v26 = vpop.f32.mrf.mxu0 }
 0x439   :  { %3332 = vst [vmem:[#allocation2 + $0x78] sm:$0xff] %v3074_v24  ;;  %v3069_v29 = vadd.f32 %v6203_v56, %v3068_v26 }
 0x43a   :  { %v4560_v50 = vpop.f32.mrf.mxu0 }
 0x43b   :  { %3331 = vst [vmem:[#allocation2 + $0x70] sm:$0xff] %v3069_v29  ;;  %v3084_v31 = vadd.f32 %v4560_v50, %v6203_v56 }
 0x43c   :  { %v3078_v32 = vpop.f32.mrf.mxu0 }
 0x43d   :  { %3334 = vst [vmem:[#allocation2 + $0x88] sm:$0xff] %v3084_v31  ;;  %v3079_v30 = vadd.f32 %v6203_v56, %v3078_v32 }
 0x43e   :  { %v4563_v12 = vpop.f32.mrf.mxu0 }
 0x43f   :  { %3333 = vst [vmem:[#allocation2 + $0x80] sm:$0xff] %v3079_v30  ;;  %v3094_v33 = vadd.f32 %v4563_v12, %v6203_v56 }
 0x440   :  { %v3088_v2 = vpop.f32.mrf.mxu0 }
 0x441   :  { %3336 = vst [vmem:[#allocation2 + $0x98] sm:$0xff] %v3094_v33  ;;  %v3089_v35 = vadd.f32 %v6203_v56, %v3088_v2 }
 0x442   :  { %v4566_v36 = vpop.f32.mrf.mxu0 }
 0x443   :  { %3335 = vst [vmem:[#allocation2 + $0x90] sm:$0xff] %v3089_v35  ;;  %v3104_v38 = vadd.f32 %v4566_v36, %v6203_v56 }
 0x444   :  { %v3098_v17 = vpop.f32.mrf.mxu0 }
 0x445   :  { %3338 = vst [vmem:[#allocation2 + $0xa8] sm:$0xff] %v3104_v38  ;;  %v3099_v39 = vadd.f32 %v6203_v56, %v3098_v17 }
 0x446   :  { %v4569_v40 = vpop.f32.mrf.mxu0 }
 0x447   :  { %3337 = vst [vmem:[#allocation2 + $0xa0] sm:$0xff] %v3099_v39  ;;  %v3114_v59 = vadd.f32 %v4569_v40, %v6203_v56 }
 0x448   :  { %v3108_v41 = vpop.f32.mrf.mxu0 }
 0x449   :  { %3340 = vst [vmem:[#allocation2 + $0xb8] sm:$0xff] %v3114_v59  ;;  %v3109_v42 = vadd.f32 %v6203_v56, %v3108_v41 }
 0x44a   :  { %v4572_v37 = vpop.f32.mrf.mxu0 }
 0x44b   :  { %3339 = vst [vmem:[#allocation2 + $0xb0] sm:$0xff] %v3109_v42  ;;  %v3124_v43 = vadd.f32 %v4572_v37, %v6203_v56 }
 0x44c   :  { %v3118_v9 = vpop.f32.mrf.mxu0 }
 0x44d   :  { %3342 = vst [vmem:[#allocation2 + $0xc8] sm:$0xff] %v3124_v43  ;;  %v3119_v46 = vadd.f32 %v6203_v56, %v3118_v9 }
 0x44e   :  { %v4575_v47 = vpop.f32.mrf.mxu0 }
 0x44f   :  { %3341 = vst [vmem:[#allocation2 + $0xc0] sm:$0xff] %v3119_v46  ;;  %v3134_v48 = vadd.f32 %v4575_v47, %v6203_v56 }
 0x450   :  { %v3128_v49 = vpop.f32.mrf.mxu0 }
 0x451   :  { %3344 = vst [vmem:[#allocation2 + $0xd8] sm:$0xff] %v3134_v48  ;;  %v3129_v51 = vadd.f32 %v6203_v56, %v3128_v49 }
 0x452   :  { %v4578_v27 = vpop.f32.mrf.mxu0 }
 0x453   :  { %3343 = vst [vmem:[#allocation2 + $0xd0] sm:$0xff] %v3129_v51  ;;  %v3144_v44 = vadd.f32 %v4578_v27, %v6203_v56 }
 0x454   :  { %v3138_v52 = vpop.f32.mrf.mxu0 }
 0x455   :  { %3346 = vst [vmem:[#allocation2 + $0xe8] sm:$0xff] %v3144_v44  ;;  %v3139_v53 = vadd.f32 %v6203_v56, %v3138_v52 }
 0x456   :  { %v4581_v54 = vpop.f32.mrf.mxu0 }
 0x457   :  { %3345 = vst [vmem:[#allocation2 + $0xe0] sm:$0xff] %v3139_v53  ;;  %v3154_v45 = vadd.f32 %v4581_v54, %v6203_v56 }
 0x458   :  { %v3148_v55 = vpop.f32.mrf.mxu0 }
 0x459   :  { %3348 = vst [vmem:[#allocation2 + $0xf8] sm:$0xff] %v3154_v45  ;;  %v3149_v57 = vadd.f32 %v6203_v56, %v3148_v55 }
 0x45a   :  { %v4584_v58 = vpop.f32.mrf.mxu0 }
 0x45b   :  { %3347 = vst [vmem:[#allocation2 + $0xf0] sm:$0xff] %v3149_v57  ;;  %v3164_v60 = vadd.f32 %v4584_v58, %v6203_v56 }
 0x45c   :  { %v3158_v62 = vpop.f32.mrf.mxu0 }
 0x45d   :  { %3350 = vst [vmem:[#allocation2 + $0x108] sm:$0xff] %v3164_v60  ;;  %v3159_v61 = vadd.f32 %v6203_v56, %v3158_v62 }
 0x45e   :  { %v4587_v63 = vpop.f32.mrf.mxu0 }
 0x45f   :  { %3349 = vst [vmem:[#allocation2 + $0x100] sm:$0xff] %v3159_v61  ;;  %v3174_v0 = vadd.f32 %v4587_v63, %v6203_v56 }
 0x460   :  { %v3168_v1 = vpop.f32.mrf.mxu0 }
 0x461   :  { %3352 = vst [vmem:[#allocation2 + $0x118] sm:$0xff] %v3174_v0  ;;  %v3169_v3 = vadd.f32 %v6203_v56, %v3168_v1 }
 0x462   :  { %v4590_v4 = vpop.f32.mrf.mxu0 }
 0x463   :  { %3351 = vst [vmem:[#allocation2 + $0x110] sm:$0xff] %v3169_v3  ;;  %v3184_v5 = vadd.f32 %v4590_v4, %v6203_v56 }
 0x464   :  { %v3178_v6 = vpop.f32.mrf.mxu0 }
 0x465   :  { %3354 = vst [vmem:[#allocation2 + $0x128] sm:$0xff] %v3184_v5  ;;  %v3179_v7 = vadd.f32 %v6203_v56, %v3178_v6 }
 0x466   :  { %v4593_v8 = vpop.f32.mrf.mxu0 }
 0x467   :  { %3353 = vst [vmem:[#allocation2 + $0x120] sm:$0xff] %v3179_v7  ;;  %v3194_v22 = vadd.f32 %v4593_v8, %v6203_v56 }
 0x468   :  { %v3188_v10 = vpop.f32.mrf.mxu0 }
 0x469   :  { %3356 = vst [vmem:[#allocation2 + $0x138] sm:$0xff] %v3194_v22  ;;  %v3189_v11 = vadd.f32 %v6203_v56, %v3188_v10 }
 0x46a   :  { %v4596_v13 = vpop.f32.mrf.mxu0 }
 0x46b   :  { %3355 = vst [vmem:[#allocation2 + $0x130] sm:$0xff] %v3189_v11  ;;  %v3204_v14 = vadd.f32 %v4596_v13, %v6203_v56 }
 0x46c   :  { %v3198_v15 = vpop.f32.mrf.mxu0 }
 0x46d   :  { %3358 = vst [vmem:[#allocation2 + $0x148] sm:$0xff] %v3204_v14  ;;  %v3199_v16 = vadd.f32 %v6203_v56, %v3198_v15 }
 0x46e   :  { %v4599_v28 = vpop.f32.mrf.mxu0 }
 0x46f   :  { %3357 = vst [vmem:[#allocation2 + $0x140] sm:$0xff] %v3199_v16  ;;  %v3214_v19 = vadd.f32 %v4599_v28, %v6203_v56 }
 0x470   :  { %v3208_v20 = vpop.f32.mrf.mxu0 }
 0x471   :  { %3360 = vst [vmem:[#allocation2 + $0x158] sm:$0xff] %v3214_v19  ;;  %v3209_v18 = vadd.f32 %v6203_v56, %v3208_v20 }
 0x472   :  { %v4602_v21 = vpop.f32.mrf.mxu0 }
 0x473   :  { %3359 = vst [vmem:[#allocation2 + $0x150] sm:$0xff] %v3209_v18  ;;  %v3224_v34 = vadd.f32 %v4602_v21, %v6203_v56 }
 0x474   :  { %v3218_v23 = vpop.f32.mrf.mxu0 }
 0x475   :  { %3362 = vst [vmem:[#allocation2 + $0x168] sm:$0xff] %v3224_v34  ;;  %v3219_v25 = vadd.f32 %v6203_v56, %v3218_v23 }
 0x476   :  { %v4605_v24 = vpop.f32.mrf.mxu0 }
 0x477   :  { %3361 = vst [vmem:[#allocation2 + $0x160] sm:$0xff] %v3219_v25  ;;  %v3234_v26 = vadd.f32 %v4605_v24, %v6203_v56 }
 0x478   :  { %v3228_v29 = vpop.f32.mrf.mxu0 }
 0x479   :  { %3364 = vst [vmem:[#allocation2 + $0x178] sm:$0xff] %v3234_v26  ;;  %v3229_v50 = vadd.f32 %v6203_v56, %v3228_v29 }
 0x47a   :  { %v4608_v31 = vpop.f32.mrf.mxu0 }
 0x47b   :  { %3363 = vst [vmem:[#allocation2 + $0x170] sm:$0xff] %v3229_v50  ;;  %v3244_v32 = vadd.f32 %v4608_v31, %v6203_v56 }
 0x47c   :  { %v3238_v30 = vpop.f32.mrf.mxu0 }
 0x47d   :  { %3366 = vst [vmem:[#allocation2 + $0x188] sm:$0xff] %v3244_v32  ;;  %v3239_v12 = vadd.f32 %v6203_v56, %v3238_v30 }
 0x47e   :  { %v4611_v33 = vpop.f32.mrf.mxu0 }
 0x47f   :  { %3365 = vst [vmem:[#allocation2 + $0x180] sm:$0xff] %v3239_v12  ;;  %v3254_v2 = vadd.f32 %v4611_v33, %v6203_v56 }
 0x480   :  { %v3248_v35 = vpop.f32.mrf.mxu0 }
 0x481   :  { %3368 = vst [vmem:[#allocation2 + $0x198] sm:$0xff] %v3254_v2  ;;  %v3249_v36 = vadd.f32 %v6203_v56, %v3248_v35 }
 0x482   :  { %v4614_v38 = vpop.f32.mrf.mxu0 }
 0x483   :  { %3367 = vst [vmem:[#allocation2 + $0x190] sm:$0xff] %v3249_v36  ;;  %v3264_v17 = vadd.f32 %v4614_v38, %v6203_v56 }
 0x484   :  { %v3258_v39 = vpop.f32.mrf.mxu0 }
 0x485   :  { %3370 = vst [vmem:[#allocation2 + $0x1a8] sm:$0xff] %v3264_v17  ;;  %v3259_v40 = vadd.f32 %v6203_v56, %v3258_v39 }
 0x486   :  { %v4617_v59 = vpop.f32.mrf.mxu0 }
 0x487   :  { %3369 = vst [vmem:[#allocation2 + $0x1a0] sm:$0xff] %v3259_v40  ;;  %v3274_v41 = vadd.f32 %v4617_v59, %v6203_v56 }
 0x488   :  { %v3268_v42 = vpop.f32.mrf.mxu0 }
 0x489   :  { %3372 = vst [vmem:[#allocation2 + $0x1b8] sm:$0xff] %v3274_v41  ;;  %v3269_v37 = vadd.f32 %v6203_v56, %v3268_v42 }
 0x48a   :  { %v4620_v43 = vpop.f32.mrf.mxu0 }
 0x48b   :  { %3371 = vst [vmem:[#allocation2 + $0x1b0] sm:$0xff] %v3269_v37  ;;  %v3284_v9 = vadd.f32 %v4620_v43, %v6203_v56 }
 0x48c   :  { %v3278_v46 = vpop.f32.mrf.mxu0 }
 0x48d   :  { %3374 = vst [vmem:[#allocation2 + $0x1c8] sm:$0xff] %v3284_v9  ;;  %v3279_v47 = vadd.f32 %v6203_v56, %v3278_v46 }
 0x48e   :  { %v4623_v48 = vpop.f32.mrf.mxu0 }
 0x48f   :  { %3373 = vst [vmem:[#allocation2 + $0x1c0] sm:$0xff] %v3279_v47  ;;  %v3294_v49 = vadd.f32 %v4623_v48, %v6203_v56 }
 0x490   :  { %v3288_v51 = vpop.f32.mrf.mxu0 }
 0x491   :  { %3376 = vst [vmem:[#allocation2 + $0x1d8] sm:$0xff] %v3294_v49  ;;  %v3289_v27 = vadd.f32 %v6203_v56, %v3288_v51 }
 0x492   :  { %v4626_v44 = vpop.f32.mrf.mxu0 }
 0x493   :  { %3375 = vst [vmem:[#allocation2 + $0x1d0] sm:$0xff] %v3289_v27  ;;  %v3304_v52 = vadd.f32 %v4626_v44, %v6203_v56 }
 0x494   :  { %v3298_v53 = vpop.f32.mrf.mxu0 }
 0x495   :  { %3378 = vst [vmem:[#allocation2 + $0x1e8] sm:$0xff] %v3304_v52  ;;  %v3299_v54 = vadd.f32 %v6203_v56, %v3298_v53 }
 0x496   :  { %v4629_v45 = vpop.f32.mrf.mxu0 }
 0x497   :  { %3377 = vst [vmem:[#allocation2 + $0x1e0] sm:$0xff] %v3299_v54  ;;  %v3314_v55 = vadd.f32 %v4629_v45, %v6203_v56 }
 0x498   :  { %v3308_v57 = vpop.f32.mrf.mxu0 }
 0x499   :  { %3380 = vst [vmem:[#allocation2 + $0x1f8] sm:$0xff] %v3314_v55  ;;  %v3309_v58 = vadd.f32 %v6203_v56, %v3308_v57 }
 0x49b   :  { %3379 = vst [vmem:[#allocation2 + $0x1f0] sm:$0xff] %v3309_v58 }
 0x49c   :  { %5164 = shalt.err (!%p5161_p4)
}
 0x49d   :  { %s5176_s12 = smov 128   ;;  %s5177_s13 = smov 8  }
 0x49e   :  { %3392 = dma.vmem_to_hbm [thread:$0]  %s3387_s3, 8192, %s6283_s11, [#allocation3], %s5176_s12, %s5176_s12, %s5177_s13  }
 0x49f   :  { %5173 = dma.done.wait [#allocation3], 8192  }
 0x4a0   :  { %5174 = vsyncadd [#allocation3], 4294959104 }
 0x4a1   :  { %3396 = vsyncpa [#allocation3], 1 }

</bundles_post_ra>
